<compile_context>
chip_gen: v5e
topology: v5e:2x2
jax: 0.10.0
libtpu: 0.0.40
codegen_flags: <defaults>
</compile_context>

<pallas_src>
import functools

import numpy as np
import jax
import jax.numpy as jnp
from jax.experimental import pallas as pl
from jax.experimental.pallas import tpu as pltpu


# --------------------------- fused forward kernel ---------------------------

def _qnet_kernel(xs_ref, w1_ref, b1_ref, w2_ref, b2_ref, w3_ref, b3_ref,
                 w4_ref, b4_ref, w5_ref, b5_ref, out_ref,
                 h1_ref, h2_ref, h3_ref,
                 *, nb, gj, oh3, ow3, m1, m2, m3, k1b):
    """Entire Qnet forward for one batch tile, fully VMEM-resident.

    Row layout: row(n, i, j) = (i*gj + j)*nb + n (batch innermost), so every
    conv kernel offset is a static row shift that is a multiple of nb.
    """
    f32 = jnp.float32
    bf16 = jnp.bfloat16

    def conv_relu(src_ref, w_ref, b_ref, shifts, m, kb):
        # Split-K: one MXU GEMM per kernel offset, accumulated in f32.
        acc = None
        for s, sh in enumerate(shifts):
            part = jnp.dot(src_ref[sh:sh + m, :],
                           w_ref[s * kb:(s + 1) * kb, :],
                           preferred_element_type=f32)
            acc = part if acc is None else acc + part
        return jnp.maximum(acc + b_ref[...], 0.0).astype(bf16)

    # ---- conv1 (k=8, s=4): 2x2 neighborhood of 8x8 input blocks; the 2x2
    # output parities are packed into lanes (4 parities * 32 oc = 128 lanes).
    sh2 = [(dh * gj + dw) * nb for dh in (0, 1) for dw in (0, 1)]
    h1_ref[...] = conv_relu(xs_ref, w1_ref, b1_ref, sh2, m1, k1b)

    # ---- conv2 (k=4, s=2): 2x2 neighborhood of parity-packed conv1 rows.
    # Output channels padded 64 -> 128 lanes.
    h2_ref[...] = conv_relu(h1_ref, w2_ref, b2_ref, sh2, m2, 128)

    # ---- conv3 (k=3, s=1): 3x3 neighborhood.  Output channels padded to 128.
    sh3 = [(kh * gj + kw) * nb for kh in range(3) for kw in range(3)]
    h3_ref[...] = conv_relu(h2_ref, w3_ref, b3_ref, sh3, m3, 128)

    # ---- flatten + mlp1 + relu: no copies -- sum over the valid patch
    # positions of (nb,128) x (128,512) GEMMs.  The PyTorch NCHW flatten order
    # is folded into w4's slab packing (rows ordered (position, channel)).
    z = None
    positions = [i * gj + j for i in range(oh3) for j in range(ow3)]
    for p_idx, p in enumerate(positions):
        part = jnp.dot(h3_ref[p * nb:(p + 1) * nb, :],
                       w4_ref[p_idx * 128:(p_idx + 1) * 128, :],
                       preferred_element_type=f32)
        z = part if z is None else z + part
    z = jnp.maximum(z + b4_ref[...], 0.0).astype(bf16)

    # ---- mlp2 (output lane-padded to 128 columns for a lane-dense store).
    q = jnp.dot(z, w5_ref[...], preferred_element_type=f32)
    out_ref[0, :, :] = q + b5_ref[...]


# ------------------------------ host wrappers --------------------------------

def _space_to_depth8(x_nchw, nb, xs_rows):
    """(N,C,H,W) -> (num_tiles*xs_rows, 64*C) bf16 with batch-innermost rows.

    Within a tile: row = (i*gj + j)*nb + n_in_tile, lane = rh*8*C + rw*C + c for
    the 8x8 block (i, j).  Zero rows pad each tile up to xs_rows.
    """
    n, c, h, w = x_nchw.shape
    gi, gj = h // 8, w // 8
    nt = n // nb
    x = x_nchw.transpose(0, 2, 3, 1)                                # (n,h,w,c)
    x = x.reshape(n, gi, 8, gj, 8, c).transpose(0, 1, 3, 2, 4, 5)   # (n,gi,gj,8,8,c)
    x = x.reshape(nt, nb, gi * gj, 64 * c).transpose(0, 2, 1, 3)    # (nt,p,nb,64c)
    x = x.reshape(nt, nb * gi * gj, 64 * c)
    x = jnp.pad(x, ((0, 0), (0, xs_rows - nb * gi * gj), (0, 0)))
    return x.reshape(nt * xs_rows, 64 * c).astype(jnp.bfloat16)


def qnet_forward(prepped, x, *, n_actions, batch_tile=None):
    """Fused Qnet forward.  x is NCHW float32 (PyTorch layout)."""
    n, c, h, w = x.shape
    assert h % 8 == 0 and w % 8 == 0, "H, W must be multiples of 8"
    gi, gj = h // 8, w // 8
    oh3, ow3 = gi - 4, gj - 4                 # conv3 output spatial size
    assert oh3 >= 1 and ow3 >= 1, "input too small for the conv stack"
    assert n_actions <= 128

    if batch_tile is None:
        batch_tile = min(n, max(1, -(-256 // (gi * gj))))   # aim for M >= 256
    nb = batch_tile
    nt = -(-n // nb)
    n_pad = nt * nb
    if n_pad != n:
        x = jnp.pad(x, ((0, n_pad - n), (0, 0), (0, 0), (0, 0)))

    # Row geometry (per batch tile); all row shifts are multiples of nb.
    rows_t = nb * gi * gj                     # "real" activation rows per tile
    s2 = (gj + 1) * nb                        # max shift for the 2x2-offset convs
    s3 = (2 * gj + 2) * nb                    # max shift for conv3's 3x3 offsets
    rup16 = lambda v: -(-v // 16) * 16        # bf16 native tiling is (16, 128)
    m3 = rup16(rows_t)                        # conv3 GEMM M / h3 rows
    m2 = rup16(m3 + s3)                       # conv2 GEMM M / h2 rows
    m1 = rup16(m2 + s2)                       # conv1 GEMM M / h1 rows
    xs_rows = rup16(m1 + s2)                  # input rows per tile
    k1 = 64 * c

    xs = _space_to_depth8(x, nb, xs_rows)     # (nt*xs_rows, 64*c) bf16

    kernel = functools.partial(_qnet_kernel, nb=nb, gj=gj, oh3=oh3, ow3=ow3,
                               m1=m1, m2=m2, m3=m3, k1b=64 * c)

    def full_spec(arr):                       # VMEM-resident, constant block index
        return pl.BlockSpec(arr.shape, lambda t: (0,) * arr.ndim)

    wkeys = ("w1", "b1", "w2", "b2", "w3", "b3", "w4", "b4", "w5", "b5")
    out = pl.pallas_call(
        kernel,
        out_shape=jax.ShapeDtypeStruct((nt, nb, 128), jnp.float32),
        grid=(nt,),
        in_specs=[pl.BlockSpec((xs_rows, k1), lambda t: (t, 0))]
                 + [full_spec(prepped[k]) for k in wkeys],
        out_specs=pl.BlockSpec((1, nb, 128), lambda t: (t, 0, 0)),
        scratch_shapes=[
            pltpu.VMEM((m1, 128), jnp.bfloat16),   # conv1 out (parity-packed)
            pltpu.VMEM((m2, 128), jnp.bfloat16),   # conv2 out (lane-padded)
            pltpu.VMEM((m3, 128), jnp.bfloat16),   # conv3 out (lane-padded)
        ],
        compiler_params=pltpu.CompilerParams(
            dimension_semantics=("parallel",),
            vmem_limit_bytes=32 * 1024 * 1024),
    )(xs, *[prepped[k] for k in wkeys])

    return out.reshape(nt * nb, 128)[:n, :n_actions]


def prepare_params(params, n_actions, height, width):
    """One-time repack of PyTorch-layout weights into the kernel's GEMM layout."""
    gi, gj = height // 8, width // 8
    oh3, ow3 = gi - 4, gj - 4

    # conv1: (32, IC, 8, 8) -> 4 shift blocks of (64*IC, 128); output lanes are
    # (rh1, rw1, oc) = the 2x2 output parities packed with the 32 channels.
    w1 = np.asarray(params["conv1_w"], np.float32)
    oc1, c_in = w1.shape[0], w1.shape[1]
    w1big = np.zeros((2, 2, 8, 8, c_in, 2, 2, oc1), np.float32)
    for dh in range(2):
        for dw in range(2):
            for rh1 in range(2):
                for rw1 in range(2):
                    for rh in range(8):
                        kh = 8 * dh + rh - 4 * rh1
                        if not 0 <= kh < 8:
                            continue
                        for rw in range(8):
                            kw = 8 * dw + rw - 4 * rw1
                            if not 0 <= kw < 8:
                                continue
                            w1big[dh, dw, rh, rw, :, rh1, rw1, :] = w1[:, :, kh, kw].T
    w1p = w1big.reshape(4 * 64 * c_in, 4 * oc1)
    b1 = np.tile(np.asarray(params["conv1_b"], np.float32), 4)[None, :]

    # conv2: (64, 32, 4, 4) -> 4 shift blocks of (128, 128); per-shift rows are
    # ordered (rh1, rw1, ic) to match conv1's packed lanes; out padded 64->128.
    w2 = np.asarray(params["conv2_w"], np.float32)
    oc2, ic2 = w2.shape[0], w2.shape[1]
    w2p = (w2.reshape(oc2, ic2, 2, 2, 2, 2)
             .transpose(2, 4, 3, 5, 1, 0)          # (dh, dw, rh1, rw1, ic, oc)
             .reshape(4, 4 * ic2, oc2))
    w2p = np.pad(w2p, ((0, 0), (0, 0), (0, 128 - oc2))).reshape(4 * 4 * ic2, 128)
    b2 = np.zeros((1, 128), np.float32)
    b2[0, :oc2] = np.asarray(params["conv2_b"], np.float32)

    # conv3: (64, 64, 3, 3) -> 9 shift blocks of (128, 128); in/out padded to 128.
    w3 = np.asarray(params["conv3_w"], np.float32)
    oc3, ic3 = w3.shape[0], w3.shape[1]
    w3p = w3.transpose(2, 3, 1, 0).reshape(9, ic3, oc3)      # (kh*3+kw, ic, oc)
    w3p = np.pad(w3p, ((0, 0), (0, 128 - ic3), (0, 128 - oc3))).reshape(9 * 128, 128)
    b3 = np.zeros((1, 128), np.float32)
    b3[0, :oc3] = np.asarray(params["conv3_b"], np.float32)

    # mlp1: one (128, 512) slab per valid patch position p = i*ow3 + j, rows
    # ordered (p, channel) with channels padded 64->128 (zero rows), folding the
    # PyTorch NCHW flatten order (c*(oh3*ow3) + p) into the slab packing.
    w4 = np.asarray(params["mlp1_w"], np.float32)            # (512, oc3*oh3*ow3)
    hid = w4.shape[0]
    assert w4.shape[1] == oc3 * oh3 * ow3, "mlp1 in_features must match conv stack"
    w4p = w4.reshape(hid, oc3, oh3 * ow3).transpose(2, 1, 0)  # (p, c, hid)
    w4p = np.pad(w4p, ((0, 0), (0, 128 - oc3), (0, 0))).reshape(oh3 * ow3 * 128, hid)
    b4 = np.asarray(params["mlp1_b"], np.float32)[None, :]

    # mlp2: lane-pad the tiny action head to 128 output columns.
    w5 = np.asarray(params["mlp2_w"], np.float32)            # (n_actions, 512)
    w5p = np.zeros((w5.shape[1], 128), np.float32)
    w5p[:, :n_actions] = w5.T
    b5 = np.zeros((1, 128), np.float32)
    b5[0, :n_actions] = np.asarray(params["mlp2_b"], np.float32)

    bf = lambda a: jnp.asarray(a, jnp.bfloat16)
    f32 = lambda a: jnp.asarray(a, jnp.float32)
    return {"w1": bf(w1p), "b1": f32(b1),
            "w2": bf(w2p), "b2": f32(b2),
            "w3": bf(w3p), "b3": f32(b3),
            "w4": bf(w4p), "b4": f32(b4),
            "w5": bf(w5p), "b5": f32(b5)}


def init_params(key, n_input_channels, n_actions, flat_dim):
    ks = jax.random.split(key, 10)
    w = lambda k, shape, s: jax.random.normal(k, shape, jnp.float32) * s
    return {
        "conv1_w": w(ks[0], (32, n_input_channels, 8, 8), 0.05),
        "conv1_b": w(ks[1], (32,), 0.05),
        "conv2_w": w(ks[2], (64, 32, 4, 4), 0.05),
        "conv2_b": w(ks[3], (64,), 0.05),
        "conv3_w": w(ks[4], (64, 64, 3, 3), 0.05),
        "conv3_b": w(ks[5], (64,), 0.05),
        "mlp1_w": w(ks[6], (512, flat_dim), 0.05),    # PyTorch Linear: (out, in)
        "mlp1_b": w(ks[7], (512,), 0.05),
        "mlp2_w": w(ks[8], (n_actions, 512), 0.05),
        "mlp2_b": w(ks[9], (n_actions,), 0.05),
    }


# ---------------------------- plain-JAX reference ----------------------------

def _ref_conv(x, w, b, stride):
    y = jax.lax.conv_general_dilated(
        x, w, window_strides=(stride, stride), padding="VALID",
        dimension_numbers=("NCHW", "OIHW", "NCHW"))
    return y + b[None, :, None, None]


def qnet_ref(params, x):
    x = jax.nn.relu(_ref_conv(x, params["conv1_w"], params["conv1_b"], 4))
    x = jax.nn.relu(_ref_conv(x, params["conv2_w"], params["conv2_b"], 2))
    x = jax.nn.relu(_ref_conv(x, params["conv3_w"], params["conv3_b"], 1))
    x = x.reshape(x.shape[0], -1)
    x = jax.nn.relu(x @ params["mlp1_w"].T + params["mlp1_b"])
    return x @ params["mlp2_w"].T + params["mlp2_b"]


# ----------------------------------- main ------------------------------------

if __name__ == "__main__":
    N, C, H, W = 4, 4, 48, 48            # small NCHW input (PyTorch layout)
    n_actions = 3

    gi, gj = H // 8, W // 8
    flat_dim = 64 * (gi - 4) * (gj - 4)  # = 256 for 48x48 input

    key = jax.random.PRNGKey(0)
    k_par, k_x = jax.random.split(key)
    params = init_params(k_par, C, n_actions, flat_dim)
    x = jax.random.uniform(k_x, (N, C, H, W), jnp.float32)

    prepped = prepare_params(params, n_actions, H, W)   # one-time weight repack
    fwd = jax.jit(lambda p, xx: qnet_forward(p, xx, n_actions=n_actions,
                                             batch_tile=2))   # grid=(2,)

    out = jax.block_until_ready(fwd(prepped, x))
    assert out.shape == (N, n_actions), out.shape

    ref = qnet_ref(params, x)
    err = float(jnp.max(jnp.abs(out - ref)))
    assert jnp.allclose(out, ref, rtol=2e-2, atol=2e-2), f"mismatch, max abs err={err}"

    print("KERNEL_OK")
</pallas_src>

<mosaic_0001>
module attributes {stable_mosaic.version = 11 : i64} {
  func.func @_qnet_kernel(%arg0: i32, %arg1: memref<144x256xbf16, #tpu.memory_space<vmem>>, %arg2: memref<1024x128xbf16, #tpu.memory_space<vmem>>, %arg3: memref<1x128xf32, #tpu.memory_space<vmem>>, %arg4: memref<512x128xbf16, #tpu.memory_space<vmem>>, %arg5: memref<1x128xf32, #tpu.memory_space<vmem>>, %arg6: memref<1152x128xbf16, #tpu.memory_space<vmem>>, %arg7: memref<1x128xf32, #tpu.memory_space<vmem>>, %arg8: memref<512x512xbf16, #tpu.memory_space<vmem>>, %arg9: memref<1x512xf32, #tpu.memory_space<vmem>>, %arg10: memref<512x128xbf16, #tpu.memory_space<vmem>>, %arg11: memref<1x128xf32, #tpu.memory_space<vmem>>, %arg12: memref<1x2x128xf32, #tpu.memory_space<vmem>>, %arg13: memref<128x128xbf16, #tpu.memory_space<vmem>>, %arg14: memref<112x128xbf16, #tpu.memory_space<vmem>>, %arg15: memref<80x128xbf16, #tpu.memory_space<vmem>>) attributes {dimension_semantics = [#tpu.dimension_semantics<parallel>], iteration_bounds = array<i64: 2>, scalar_prefetch = 0 : i64, scratch_operands = 3 : i64, tpu.core_type = #tpu.core_type<tc>, window_params = [{transform_indices = @transform_0, window_bounds = array<i64: 144, 256>}, {pipeline_mode = #tpu.pipeline_mode<synchronous>, transform_indices = @transform_1, window_bounds = array<i64: 1024, 128>}, {pipeline_mode = #tpu.pipeline_mode<synchronous>, transform_indices = @transform_2, window_bounds = array<i64: 1, 128>}, {pipeline_mode = #tpu.pipeline_mode<synchronous>, transform_indices = @transform_3, window_bounds = array<i64: 512, 128>}, {pipeline_mode = #tpu.pipeline_mode<synchronous>, transform_indices = @transform_4, window_bounds = array<i64: 1, 128>}, {pipeline_mode = #tpu.pipeline_mode<synchronous>, transform_indices = @transform_5, window_bounds = array<i64: 1152, 128>}, {pipeline_mode = #tpu.pipeline_mode<synchronous>, transform_indices = @transform_6, window_bounds = array<i64: 1, 128>}, {pipeline_mode = #tpu.pipeline_mode<synchronous>, transform_indices = @transform_7, window_bounds = array<i64: 512, 512>}, {pipeline_mode = #tpu.pipeline_mode<synchronous>, transform_indices = @transform_8, window_bounds = array<i64: 1, 512>}, {pipeline_mode = #tpu.pipeline_mode<synchronous>, transform_indices = @transform_9, window_bounds = array<i64: 512, 128>}, {pipeline_mode = #tpu.pipeline_mode<synchronous>, transform_indices = @transform_10, window_bounds = array<i64: 1, 128>}, {transform_indices = @transform_11, window_bounds = array<i64: 1, 2, 128>}]} {
    %c0 = arith.constant 0 : index
    %c0_0 = arith.constant 0 : index
    %0 = vector.load %arg1[%c0, %c0_0] : memref<144x256xbf16, #tpu.memory_space<vmem>>, vector<128x256xbf16>
    %c0_1 = arith.constant 0 : index
    %c0_2 = arith.constant 0 : index
    %1 = vector.load %arg2[%c0_1, %c0_2] : memref<1024x128xbf16, #tpu.memory_space<vmem>>, vector<256x128xbf16>
    %cst = arith.constant dense<0.000000e+00> : vector<128x128xf32>
    %2 = tpu.matmul %0, %1, %cst {dimension_numbers = #tpu.dot_dimension_numbers<[1], [0], [0], [1], [0, 0, 1, 1], [], []>} : vector<128x256xbf16>, vector<256x128xbf16>, vector<128x128xf32> -> vector<128x128xf32>
    %c2 = arith.constant 2 : index
    %c0_3 = arith.constant 0 : index
    %3 = vector.load %arg1[%c2, %c0_3] : memref<144x256xbf16, #tpu.memory_space<vmem>>, vector<128x256xbf16>
    %c256 = arith.constant 256 : index
    %c0_4 = arith.constant 0 : index
    %4 = vector.load %arg2[%c256, %c0_4] : memref<1024x128xbf16, #tpu.memory_space<vmem>>, vector<256x128xbf16>
    %cst_5 = arith.constant dense<0.000000e+00> : vector<128x128xf32>
    %5 = tpu.matmul %3, %4, %cst_5 {dimension_numbers = #tpu.dot_dimension_numbers<[1], [0], [0], [1], [0, 0, 1, 1], [], []>} : vector<128x256xbf16>, vector<256x128xbf16>, vector<128x128xf32> -> vector<128x128xf32>
    %6 = arith.addf %2, %5 : vector<128x128xf32>
    %c12 = arith.constant 12 : index
    %c0_6 = arith.constant 0 : index
    %7 = vector.load %arg1[%c12, %c0_6] : memref<144x256xbf16, #tpu.memory_space<vmem>>, vector<128x256xbf16>
    %c512 = arith.constant 512 : index
    %c0_7 = arith.constant 0 : index
    %8 = vector.load %arg2[%c512, %c0_7] : memref<1024x128xbf16, #tpu.memory_space<vmem>>, vector<256x128xbf16>
    %cst_8 = arith.constant dense<0.000000e+00> : vector<128x128xf32>
    %9 = tpu.matmul %7, %8, %cst_8 {dimension_numbers = #tpu.dot_dimension_numbers<[1], [0], [0], [1], [0, 0, 1, 1], [], []>} : vector<128x256xbf16>, vector<256x128xbf16>, vector<128x128xf32> -> vector<128x128xf32>
    %10 = arith.addf %6, %9 : vector<128x128xf32>
    %c14 = arith.constant 14 : index
    %c0_9 = arith.constant 0 : index
    %11 = vector.load %arg1[%c14, %c0_9] : memref<144x256xbf16, #tpu.memory_space<vmem>>, vector<128x256xbf16>
    %c768 = arith.constant 768 : index
    %c0_10 = arith.constant 0 : index
    %12 = vector.load %arg2[%c768, %c0_10] : memref<1024x128xbf16, #tpu.memory_space<vmem>>, vector<256x128xbf16>
    %cst_11 = arith.constant dense<0.000000e+00> : vector<128x128xf32>
    %13 = tpu.matmul %11, %12, %cst_11 {dimension_numbers = #tpu.dot_dimension_numbers<[1], [0], [0], [1], [0, 0, 1, 1], [], []>} : vector<128x256xbf16>, vector<256x128xbf16>, vector<128x128xf32> -> vector<128x128xf32>
    %14 = arith.addf %10, %13 : vector<128x128xf32>
    %c0_12 = arith.constant 0 : index
    %c0_13 = arith.constant 0 : index
    %15 = vector.load %arg3[%c0_12, %c0_13] : memref<1x128xf32, #tpu.memory_space<vmem>>, vector<1x128xf32>
    %16 = vector.broadcast %15 : vector<1x128xf32> to vector<128x128xf32>
    %17 = arith.addf %14, %16 : vector<128x128xf32>
    %cst_14 = arith.constant 0.000000e+00 : f32
    %18 = vector.broadcast %cst_14 : f32 to vector<128x128xf32>
    %19 = arith.maximumf %17, %18 : vector<128x128xf32>
    %20 = arith.truncf %19 : vector<128x128xf32> to vector<128x128xbf16>
    %c0_15 = arith.constant 0 : index
    %c0_16 = arith.constant 0 : index
    %21 = vector.load %arg13[%c0_15, %c0_16] : memref<128x128xbf16, #tpu.memory_space<vmem>>, vector<128x128xbf16>
    tpu.vector_store %arg13[%c0_15, %c0_16], %20 {strides = array<i32>} : memref<128x128xbf16, #tpu.memory_space<vmem>>, vector<128x128xbf16>,
    %c0_17 = arith.constant 0 : index
    %c0_18 = arith.constant 0 : index
    %22 = vector.load %arg13[%c0_17, %c0_18] : memref<128x128xbf16, #tpu.memory_space<vmem>>, vector<112x128xbf16>
    %c0_19 = arith.constant 0 : index
    %c0_20 = arith.constant 0 : index
    %23 = vector.load %arg4[%c0_19, %c0_20] : memref<512x128xbf16, #tpu.memory_space<vmem>>, vector<128x128xbf16>
    %cst_21 = arith.constant dense<0.000000e+00> : vector<112x128xf32>
    %24 = tpu.matmul %22, %23, %cst_21 {dimension_numbers = #tpu.dot_dimension_numbers<[1], [0], [0], [1], [0, 0, 1, 1], [], []>} : vector<112x128xbf16>, vector<128x128xbf16>, vector<112x128xf32> -> vector<112x128xf32>
    %c2_22 = arith.constant 2 : index
    %c0_23 = arith.constant 0 : index
    %25 = vector.load %arg13[%c2_22, %c0_23] : memref<128x128xbf16, #tpu.memory_space<vmem>>, vector<112x128xbf16>
    %c128 = arith.constant 128 : index
    %c0_24 = arith.constant 0 : index
    %26 = vector.load %arg4[%c128, %c0_24] : memref<512x128xbf16, #tpu.memory_space<vmem>>, vector<128x128xbf16>
    %cst_25 = arith.constant dense<0.000000e+00> : vector<112x128xf32>
    %27 = tpu.matmul %25, %26, %cst_25 {dimension_numbers = #tpu.dot_dimension_numbers<[1], [0], [0], [1], [0, 0, 1, 1], [], []>} : vector<112x128xbf16>, vector<128x128xbf16>, vector<112x128xf32> -> vector<112x128xf32>
    %28 = arith.addf %24, %27 : vector<112x128xf32>
    %c12_26 = arith.constant 12 : index
    %c0_27 = arith.constant 0 : index
    %29 = vector.load %arg13[%c12_26, %c0_27] : memref<128x128xbf16, #tpu.memory_space<vmem>>, vector<112x128xbf16>
    %c256_28 = arith.constant 256 : index
    %c0_29 = arith.constant 0 : index
    %30 = vector.load %arg4[%c256_28, %c0_29] : memref<512x128xbf16, #tpu.memory_space<vmem>>, vector<128x128xbf16>
    %cst_30 = arith.constant dense<0.000000e+00> : vector<112x128xf32>
    %31 = tpu.matmul %29, %30, %cst_30 {dimension_numbers = #tpu.dot_dimension_numbers<[1], [0], [0], [1], [0, 0, 1, 1], [], []>} : vector<112x128xbf16>, vector<128x128xbf16>, vector<112x128xf32> -> vector<112x128xf32>
    %32 = arith.addf %28, %31 : vector<112x128xf32>
    %c14_31 = arith.constant 14 : index
    %c0_32 = arith.constant 0 : index
    %33 = vector.load %arg13[%c14_31, %c0_32] : memref<128x128xbf16, #tpu.memory_space<vmem>>, vector<112x128xbf16>
    %c384 = arith.constant 384 : index
    %c0_33 = arith.constant 0 : index
    %34 = vector.load %arg4[%c384, %c0_33] : memref<512x128xbf16, #tpu.memory_space<vmem>>, vector<128x128xbf16>
    %cst_34 = arith.constant dense<0.000000e+00> : vector<112x128xf32>
    %35 = tpu.matmul %33, %34, %cst_34 {dimension_numbers = #tpu.dot_dimension_numbers<[1], [0], [0], [1], [0, 0, 1, 1], [], []>} : vector<112x128xbf16>, vector<128x128xbf16>, vector<112x128xf32> -> vector<112x128xf32>
    %36 = arith.addf %32, %35 : vector<112x128xf32>
    %c0_35 = arith.constant 0 : index
    %c0_36 = arith.constant 0 : index
    %37 = vector.load %arg5[%c0_35, %c0_36] : memref<1x128xf32, #tpu.memory_space<vmem>>, vector<1x128xf32>
    %38 = vector.broadcast %37 : vector<1x128xf32> to vector<112x128xf32>
    %39 = arith.addf %36, %38 : vector<112x128xf32>
    %cst_37 = arith.constant 0.000000e+00 : f32
    %40 = vector.broadcast %cst_37 : f32 to vector<112x128xf32>
    %41 = arith.maximumf %39, %40 : vector<112x128xf32>
    %42 = arith.truncf %41 : vector<112x128xf32> to vector<112x128xbf16>
    %c0_38 = arith.constant 0 : index
    %c0_39 = arith.constant 0 : index
    %43 = vector.load %arg14[%c0_38, %c0_39] : memref<112x128xbf16, #tpu.memory_space<vmem>>, vector<112x128xbf16>
    tpu.vector_store %arg14[%c0_38, %c0_39], %42 {strides = array<i32>} : memref<112x128xbf16, #tpu.memory_space<vmem>>, vector<112x128xbf16>,
    %c0_40 = arith.constant 0 : index
    %c0_41 = arith.constant 0 : index
    %44 = vector.load %arg14[%c0_40, %c0_41] : memref<112x128xbf16, #tpu.memory_space<vmem>>, vector<80x128xbf16>
    %c0_42 = arith.constant 0 : index
    %c0_43 = arith.constant 0 : index
    %45 = vector.load %arg6[%c0_42, %c0_43] : memref<1152x128xbf16, #tpu.memory_space<vmem>>, vector<128x128xbf16>
    %cst_44 = arith.constant dense<0.000000e+00> : vector<80x128xf32>
    %46 = tpu.matmul %44, %45, %cst_44 {dimension_numbers = #tpu.dot_dimension_numbers<[1], [0], [0], [1], [0, 0, 1, 1], [], []>} : vector<80x128xbf16>, vector<128x128xbf16>, vector<80x128xf32> -> vector<80x128xf32>
    %c2_45 = arith.constant 2 : index
    %c0_46 = arith.constant 0 : index
    %47 = vector.load %arg14[%c2_45, %c0_46] : memref<112x128xbf16, #tpu.memory_space<vmem>>, vector<80x128xbf16>
    %c128_47 = arith.constant 128 : index
    %c0_48 = arith.constant 0 : index
    %48 = vector.load %arg6[%c128_47, %c0_48] : memref<1152x128xbf16, #tpu.memory_space<vmem>>, vector<128x128xbf16>
    %cst_49 = arith.constant dense<0.000000e+00> : vector<80x128xf32>
    %49 = tpu.matmul %47, %48, %cst_49 {dimension_numbers = #tpu.dot_dimension_numbers<[1], [0], [0], [1], [0, 0, 1, 1], [], []>} : vector<80x128xbf16>, vector<128x128xbf16>, vector<80x128xf32> -> vector<80x128xf32>
    %50 = arith.addf %46, %49 : vector<80x128xf32>
    %c4 = arith.constant 4 : index
    %c0_50 = arith.constant 0 : index
    %51 = vector.load %arg14[%c4, %c0_50] : memref<112x128xbf16, #tpu.memory_space<vmem>>, vector<80x128xbf16>
    %c256_51 = arith.constant 256 : index
    %c0_52 = arith.constant 0 : index
    %52 = vector.load %arg6[%c256_51, %c0_52] : memref<1152x128xbf16, #tpu.memory_space<vmem>>, vector<128x128xbf16>
    %cst_53 = arith.constant dense<0.000000e+00> : vector<80x128xf32>
    %53 = tpu.matmul %51, %52, %cst_53 {dimension_numbers = #tpu.dot_dimension_numbers<[1], [0], [0], [1], [0, 0, 1, 1], [], []>} : vector<80x128xbf16>, vector<128x128xbf16>, vector<80x128xf32> -> vector<80x128xf32>
    %54 = arith.addf %50, %53 : vector<80x128xf32>
    %c12_54 = arith.constant 12 : index
    %c0_55 = arith.constant 0 : index
    %55 = vector.load %arg14[%c12_54, %c0_55] : memref<112x128xbf16, #tpu.memory_space<vmem>>, vector<80x128xbf16>
    %c384_56 = arith.constant 384 : index
    %c0_57 = arith.constant 0 : index
    %56 = vector.load %arg6[%c384_56, %c0_57] : memref<1152x128xbf16, #tpu.memory_space<vmem>>, vector<128x128xbf16>
    %cst_58 = arith.constant dense<0.000000e+00> : vector<80x128xf32>
    %57 = tpu.matmul %55, %56, %cst_58 {dimension_numbers = #tpu.dot_dimension_numbers<[1], [0], [0], [1], [0, 0, 1, 1], [], []>} : vector<80x128xbf16>, vector<128x128xbf16>, vector<80x128xf32> -> vector<80x128xf32>
    %58 = arith.addf %54, %57 : vector<80x128xf32>
    %c14_59 = arith.constant 14 : index
    %c0_60 = arith.constant 0 : index
    %59 = vector.load %arg14[%c14_59, %c0_60] : memref<112x128xbf16, #tpu.memory_space<vmem>>, vector<80x128xbf16>
    %c512_61 = arith.constant 512 : index
    %c0_62 = arith.constant 0 : index
    %60 = vector.load %arg6[%c512_61, %c0_62] : memref<1152x128xbf16, #tpu.memory_space<vmem>>, vector<128x128xbf16>
    %cst_63 = arith.constant dense<0.000000e+00> : vector<80x128xf32>
    %61 = tpu.matmul %59, %60, %cst_63 {dimension_numbers = #tpu.dot_dimension_numbers<[1], [0], [0], [1], [0, 0, 1, 1], [], []>} : vector<80x128xbf16>, vector<128x128xbf16>, vector<80x128xf32> -> vector<80x128xf32>
    %62 = arith.addf %58, %61 : vector<80x128xf32>
    %c16 = arith.constant 16 : index
    %c0_64 = arith.constant 0 : index
    %63 = vector.load %arg14[%c16, %c0_64] : memref<112x128xbf16, #tpu.memory_space<vmem>>, vector<80x128xbf16>
    %c640 = arith.constant 640 : index
    %c0_65 = arith.constant 0 : index
    %64 = vector.load %arg6[%c640, %c0_65] : memref<1152x128xbf16, #tpu.memory_space<vmem>>, vector<128x128xbf16>
    %cst_66 = arith.constant dense<0.000000e+00> : vector<80x128xf32>
    %65 = tpu.matmul %63, %64, %cst_66 {dimension_numbers = #tpu.dot_dimension_numbers<[1], [0], [0], [1], [0, 0, 1, 1], [], []>} : vector<80x128xbf16>, vector<128x128xbf16>, vector<80x128xf32> -> vector<80x128xf32>
    %66 = arith.addf %62, %65 : vector<80x128xf32>
    %c24 = arith.constant 24 : index
    %c0_67 = arith.constant 0 : index
    %67 = vector.load %arg14[%c24, %c0_67] : memref<112x128xbf16, #tpu.memory_space<vmem>>, vector<80x128xbf16>
    %c768_68 = arith.constant 768 : index
    %c0_69 = arith.constant 0 : index
    %68 = vector.load %arg6[%c768_68, %c0_69] : memref<1152x128xbf16, #tpu.memory_space<vmem>>, vector<128x128xbf16>
    %cst_70 = arith.constant dense<0.000000e+00> : vector<80x128xf32>
    %69 = tpu.matmul %67, %68, %cst_70 {dimension_numbers = #tpu.dot_dimension_numbers<[1], [0], [0], [1], [0, 0, 1, 1], [], []>} : vector<80x128xbf16>, vector<128x128xbf16>, vector<80x128xf32> -> vector<80x128xf32>
    %70 = arith.addf %66, %69 : vector<80x128xf32>
    %c26 = arith.constant 26 : index
    %c0_71 = arith.constant 0 : index
    %71 = vector.load %arg14[%c26, %c0_71] : memref<112x128xbf16, #tpu.memory_space<vmem>>, vector<80x128xbf16>
    %c896 = arith.constant 896 : index
    %c0_72 = arith.constant 0 : index
    %72 = vector.load %arg6[%c896, %c0_72] : memref<1152x128xbf16, #tpu.memory_space<vmem>>, vector<128x128xbf16>
    %cst_73 = arith.constant dense<0.000000e+00> : vector<80x128xf32>
    %73 = tpu.matmul %71, %72, %cst_73 {dimension_numbers = #tpu.dot_dimension_numbers<[1], [0], [0], [1], [0, 0, 1, 1], [], []>} : vector<80x128xbf16>, vector<128x128xbf16>, vector<80x128xf32> -> vector<80x128xf32>
    %74 = arith.addf %70, %73 : vector<80x128xf32>
    %c28 = arith.constant 28 : index
    %c0_74 = arith.constant 0 : index
    %75 = vector.load %arg14[%c28, %c0_74] : memref<112x128xbf16, #tpu.memory_space<vmem>>, vector<80x128xbf16>
    %c1024 = arith.constant 1024 : index
    %c0_75 = arith.constant 0 : index
    %76 = vector.load %arg6[%c1024, %c0_75] : memref<1152x128xbf16, #tpu.memory_space<vmem>>, vector<128x128xbf16>
    %cst_76 = arith.constant dense<0.000000e+00> : vector<80x128xf32>
    %77 = tpu.matmul %75, %76, %cst_76 {dimension_numbers = #tpu.dot_dimension_numbers<[1], [0], [0], [1], [0, 0, 1, 1], [], []>} : vector<80x128xbf16>, vector<128x128xbf16>, vector<80x128xf32> -> vector<80x128xf32>
    %78 = arith.addf %74, %77 : vector<80x128xf32>
    %c0_77 = arith.constant 0 : index
    %c0_78 = arith.constant 0 : index
    %79 = vector.load %arg7[%c0_77, %c0_78] : memref<1x128xf32, #tpu.memory_space<vmem>>, vector<1x128xf32>
    %80 = vector.broadcast %79 : vector<1x128xf32> to vector<80x128xf32>
    %81 = arith.addf %78, %80 : vector<80x128xf32>
    %cst_79 = arith.constant 0.000000e+00 : f32
    %82 = vector.broadcast %cst_79 : f32 to vector<80x128xf32>
    %83 = arith.maximumf %81, %82 : vector<80x128xf32>
    %84 = arith.truncf %83 : vector<80x128xf32> to vector<80x128xbf16>
    %c0_80 = arith.constant 0 : index
    %c0_81 = arith.constant 0 : index
    %85 = vector.load %arg15[%c0_80, %c0_81] : memref<80x128xbf16, #tpu.memory_space<vmem>>, vector<80x128xbf16>
    tpu.vector_store %arg15[%c0_80, %c0_81], %84 {strides = array<i32>} : memref<80x128xbf16, #tpu.memory_space<vmem>>, vector<80x128xbf16>,
    %c0_82 = arith.constant 0 : index
    %c0_83 = arith.constant 0 : index
    %86 = vector.load %arg15[%c0_82, %c0_83] : memref<80x128xbf16, #tpu.memory_space<vmem>>, vector<2x128xbf16>
    %c0_84 = arith.constant 0 : index
    %c0_85 = arith.constant 0 : index
    %87 = vector.load %arg8[%c0_84, %c0_85] : memref<512x512xbf16, #tpu.memory_space<vmem>>, vector<128x512xbf16>
    %cst_86 = arith.constant dense<0.000000e+00> : vector<2x512xf32>
    %88 = tpu.matmul %86, %87, %cst_86 {dimension_numbers = #tpu.dot_dimension_numbers<[1], [0], [0], [1], [0, 0, 1, 1], [], []>} : vector<2x128xbf16>, vector<128x512xbf16>, vector<2x512xf32> -> vector<2x512xf32>
    %c2_87 = arith.constant 2 : index
    %c0_88 = arith.constant 0 : index
    %89 = vector.load %arg15[%c2_87, %c0_88] : memref<80x128xbf16, #tpu.memory_space<vmem>>, vector<2x128xbf16>
    %c128_89 = arith.constant 128 : index
    %c0_90 = arith.constant 0 : index
    %90 = vector.load %arg8[%c128_89, %c0_90] : memref<512x512xbf16, #tpu.memory_space<vmem>>, vector<128x512xbf16>
    %cst_91 = arith.constant dense<0.000000e+00> : vector<2x512xf32>
    %91 = tpu.matmul %89, %90, %cst_91 {dimension_numbers = #tpu.dot_dimension_numbers<[1], [0], [0], [1], [0, 0, 1, 1], [], []>} : vector<2x128xbf16>, vector<128x512xbf16>, vector<2x512xf32> -> vector<2x512xf32>
    %92 = arith.addf %88, %91 : vector<2x512xf32>
    %c12_92 = arith.constant 12 : index
    %c0_93 = arith.constant 0 : index
    %93 = vector.load %arg15[%c12_92, %c0_93] : memref<80x128xbf16, #tpu.memory_space<vmem>>, vector<2x128xbf16>
    %c256_94 = arith.constant 256 : index
    %c0_95 = arith.constant 0 : index
    %94 = vector.load %arg8[%c256_94, %c0_95] : memref<512x512xbf16, #tpu.memory_space<vmem>>, vector<128x512xbf16>
    %cst_96 = arith.constant dense<0.000000e+00> : vector<2x512xf32>
    %95 = tpu.matmul %93, %94, %cst_96 {dimension_numbers = #tpu.dot_dimension_numbers<[1], [0], [0], [1], [0, 0, 1, 1], [], []>} : vector<2x128xbf16>, vector<128x512xbf16>, vector<2x512xf32> -> vector<2x512xf32>
    %96 = arith.addf %92, %95 : vector<2x512xf32>
    %c14_97 = arith.constant 14 : index
    %c0_98 = arith.constant 0 : index
    %97 = vector.load %arg15[%c14_97, %c0_98] : memref<80x128xbf16, #tpu.memory_space<vmem>>, vector<2x128xbf16>
    %c384_99 = arith.constant 384 : index
    %c0_100 = arith.constant 0 : index
    %98 = vector.load %arg8[%c384_99, %c0_100] : memref<512x512xbf16, #tpu.memory_space<vmem>>, vector<128x512xbf16>
    %cst_101 = arith.constant dense<0.000000e+00> : vector<2x512xf32>
    %99 = tpu.matmul %97, %98, %cst_101 {dimension_numbers = #tpu.dot_dimension_numbers<[1], [0], [0], [1], [0, 0, 1, 1], [], []>} : vector<2x128xbf16>, vector<128x512xbf16>, vector<2x512xf32> -> vector<2x512xf32>
    %100 = arith.addf %96, %99 : vector<2x512xf32>
    %c0_102 = arith.constant 0 : index
    %c0_103 = arith.constant 0 : index
    %101 = vector.load %arg9[%c0_102, %c0_103] : memref<1x512xf32, #tpu.memory_space<vmem>>, vector<1x512xf32>
    %102 = vector.broadcast %101 : vector<1x512xf32> to vector<2x512xf32>
    %103 = arith.addf %100, %102 : vector<2x512xf32>
    %cst_104 = arith.constant 0.000000e+00 : f32
    %104 = vector.broadcast %cst_104 : f32 to vector<2x512xf32>
    %105 = arith.maximumf %103, %104 : vector<2x512xf32>
    %106 = arith.truncf %105 : vector<2x512xf32> to vector<2x512xbf16>
    %c0_105 = arith.constant 0 : index
    %c0_106 = arith.constant 0 : index
    %107 = vector.load %arg10[%c0_105, %c0_106] : memref<512x128xbf16, #tpu.memory_space<vmem>>, vector<512x128xbf16>
    %cst_107 = arith.constant dense<0.000000e+00> : vector<2x128xf32>
    %108 = tpu.matmul %106, %107, %cst_107 {dimension_numbers = #tpu.dot_dimension_numbers<[1], [0], [0], [1], [0, 0, 1, 1], [], []>} : vector<2x512xbf16>, vector<512x128xbf16>, vector<2x128xf32> -> vector<2x128xf32>
    %c0_108 = arith.constant 0 : index
    %c0_109 = arith.constant 0 : index
    %109 = vector.load %arg11[%c0_108, %c0_109] : memref<1x128xf32, #tpu.memory_space<vmem>>, vector<1x128xf32>
    %110 = vector.broadcast %109 : vector<1x128xf32> to vector<2x128xf32>
    %111 = arith.addf %108, %110 : vector<2x128xf32>
    %c0_110 = arith.constant 0 : index
    %c0_111 = arith.constant 0 : index
    %c0_112 = arith.constant 0 : index
    %112 = vector.load %arg12[%c0_110, %c0_111, %c0_112] : memref<1x2x128xf32, #tpu.memory_space<vmem>>, vector<1x2x128xf32>
    %113 = vector.shape_cast %112 : vector<1x2x128xf32> to vector<2x128xf32>
    %114 = vector.shape_cast %111 : vector<2x128xf32> to vector<1x2x128xf32>
    tpu.vector_store %arg12[%c0_110, %c0_111, %c0_112], %114 {strides = array<i32>} : memref<1x2x128xf32, #tpu.memory_space<vmem>>, vector<1x2x128xf32>,
    return
  }
  func.func @transform_0(%arg0: i32) -> (i32, i32) {
    %c0_i32 = arith.constant 0 : i32
    %c0_i32_0 = arith.constant 0 : i32
    return %arg0, %c0_i32 : i32, i32
  }
  func.func @transform_1(%arg0: i32) -> (i32, i32) {
    %c0_i32 = arith.constant 0 : i32
    %c0_i32_0 = arith.constant 0 : i32
    %c0_i32_1 = arith.constant 0 : i32
    return %c0_i32, %c0_i32_0 : i32, i32
  }
  func.func @transform_2(%arg0: i32) -> (i32, i32) {
    %c0_i32 = arith.constant 0 : i32
    %c0_i32_0 = arith.constant 0 : i32
    %c0_i32_1 = arith.constant 0 : i32
    return %c0_i32, %c0_i32_0 : i32, i32
  }
  func.func @transform_3(%arg0: i32) -> (i32, i32) {
    %c0_i32 = arith.constant 0 : i32
    %c0_i32_0 = arith.constant 0 : i32
    %c0_i32_1 = arith.constant 0 : i32
    return %c0_i32, %c0_i32_0 : i32, i32
  }
  func.func @transform_4(%arg0: i32) -> (i32, i32) {
    %c0_i32 = arith.constant 0 : i32
    %c0_i32_0 = arith.constant 0 : i32
    %c0_i32_1 = arith.constant 0 : i32
    return %c0_i32, %c0_i32_0 : i32, i32
  }
  func.func @transform_5(%arg0: i32) -> (i32, i32) {
    %c0_i32 = arith.constant 0 : i32
    %c0_i32_0 = arith.constant 0 : i32
    %c0_i32_1 = arith.constant 0 : i32
    return %c0_i32, %c0_i32_0 : i32, i32
  }
  func.func @transform_6(%arg0: i32) -> (i32, i32) {
    %c0_i32 = arith.constant 0 : i32
    %c0_i32_0 = arith.constant 0 : i32
    %c0_i32_1 = arith.constant 0 : i32
    return %c0_i32, %c0_i32_0 : i32, i32
  }
  func.func @transform_7(%arg0: i32) -> (i32, i32) {
    %c0_i32 = arith.constant 0 : i32
    %c0_i32_0 = arith.constant 0 : i32
    %c0_i32_1 = arith.constant 0 : i32
    return %c0_i32, %c0_i32_0 : i32, i32
  }
  func.func @transform_8(%arg0: i32) -> (i32, i32) {
    %c0_i32 = arith.constant 0 : i32
    %c0_i32_0 = arith.constant 0 : i32
    %c0_i32_1 = arith.constant 0 : i32
    return %c0_i32, %c0_i32_0 : i32, i32
  }
  func.func @transform_9(%arg0: i32) -> (i32, i32) {
    %c0_i32 = arith.constant 0 : i32
    %c0_i32_0 = arith.constant 0 : i32
    %c0_i32_1 = arith.constant 0 : i32
    return %c0_i32, %c0_i32_0 : i32, i32
  }
  func.func @transform_10(%arg0: i32) -> (i32, i32) {
    %c0_i32 = arith.constant 0 : i32
    %c0_i32_0 = arith.constant 0 : i32
    %c0_i32_1 = arith.constant 0 : i32
    return %c0_i32, %c0_i32_0 : i32, i32
  }
  func.func @transform_11(%arg0: i32) -> (i32, i32, i32) {
    %c0_i32 = arith.constant 0 : i32
    %c0_i32_0 = arith.constant 0 : i32
    %c0_i32_1 = arith.constant 0 : i32
    return %arg0, %c0_i32, %c0_i32_0 : i32, i32, i32
  }
}

</mosaic_0001>

<bundles_post_ra>
// kernel: _lambda_.1
= control target key start
LH: loop header
LB: loop body
LE: loop exit
PB: predicated region body
PF: predicated region fallthrough
CT: control target
= control target key end

     0   :  { %16 = vsyncpa [#allocation6], 0  ;;  %s9425_s0 = inlined_call_operand.vmem [shape: bf16[288,256], index: 0, kind: input, shape index: {}]   ;;  %s9426_s1 = inlined_call_operand.vmem [shape: bf16[1024,128], index: 1, kind: input, shape index: {}]   ;;  %s9427_s2 = inlined_call_operand.vmem [shape: f32[1,128], index: 2, kind: input, shape index: {}]   ;;  %s9428_s3 = inlined_call_operand.vmem [shape: bf16[512,128], index: 3, kind: input, shape index: {}]   ;;  %s9429_s4 = inlined_call_operand.vmem [shape: f32[1,128], index: 4, kind: input, shape index: {}]   ;;  %s9430_s5 = inlined_call_operand.vmem [shape: bf16[1152,128], index: 5, kind: input, shape index: {}]   ;;  %s9431_s6 = inlined_call_operand.vmem [shape: f32[1,128], index: 6, kind: input, shape index: {}]   ;;  %s9432_s7 = inlined_call_operand.vmem [shape: bf16[512,512], index: 7, kind: input, shape index: {}]   ;;  %s9433_s8 = inlined_call_operand.vmem [shape: f32[1,512], index: 8, kind: input, shape index: {}]   ;;  %s9434_s9 = inlined_call_operand.vmem [shape: bf16[512,128], index: 9, kind: input, shape index: {}]   ;;  %s9435_s10 = inlined_call_operand.vmem [shape: f32[1,128], index: 10, kind: input, shape index: {}]   ;;  %s9436_s11 = inlined_call_operand.hbm [shape: f32[2,2,128], index: 11, kind: output, shape index: {}]  }
   0x1   :  { %18 = vsyncpa [#allocation6 + $0x1], 0  ;;  %s7425_s17 = smov 0   ;;  %s7427_s18 = smov 0  }
   0x2   :  { %s7429_s19 = smov 0   ;;  %s7431_s20 = smov 0  }
   0x3 LB: > { %9438 = sst [smem:[#allocation8_spill]] %s7359_s19  ;;  %s7446_s21 = sadd.s32 4294967295, %s7363_s20   ;;  %s7363_s20 = sphi %s7431_s20, %s9446_s20   ;;  %s7359_s19 = sphi %s7429_s19, %s9443_s19   ;;  %s7355_s18 = sphi %s7427_s18, %s9445_s18   ;;  %s7351_s17 = sphi %s7425_s17, %s9444_s17  }
   0x4   : > { %s5172_s22 = sadd.s32 4294967294, %s7363_s20   ;;  %s7450_s23 = sadd.s32 1, %s7363_s20  }
   0x5   : > { %s267_s24 = sadd.s32 1, %s7359_s19  ;;  %s264_s25 = ssub.s32 %s7363_s20, %s7450_s23 }
   0x6   : > { %p277_p0 = scmp.ne.s32.totalorder %s7359_s19, %s7355_s18  ;;  %p265_p1 = scmp.eq.s32.totalorder %s264_s25, 0 }
   0x7   : > { %p278_p2 = scmp.eq.s32.totalorder %s7446_s21, 1  ;;  %p283_p3 = scmp.ne.s32.totalorder %s7355_s18, %s7351_s17 }
   0x8   : > { %p284_p4 = scmp.eq.s32.totalorder %s5172_s22, 1  ;;  %p5175_p7 = scmp.ge.s32.totalorder %s7363_s20, 1 }
   0x9   : > { %s7461_s26 = scalar_select %p265_p1, %s7359_s19, %s267_s24  }
   0xa   : > { %p7463_p5 = por %p278_p2, %p277_p0  ;;  %p7467_p6 = por %p284_p4, %p283_p3 }
   0xb   : > { %9439 = sst [smem:[#allocation9_spill]] %s7461_s26  ;;  %p342_p8 = scmp.lt.s32.totalorder %s7363_s20, 3 }
   0xd   : > { %p343_p9 = pnand %p5175_p7, %p342_p8 }
   0xe   : > { %s383_s16 = smul.u32 (!%p343_p9), 18, %s7446_s21  ;;  %s380_s15 = sand.u32 (!%p343_p9), 1, %s7355_s18  }
   0xf   : > { %346 = sbr.rel (%p343_p9) target bundleno = 1251 (0x4e3), region = 64  ;;  %s6704_s26 = sshll.u32 (!%p343_p9), %s7446_s21, 1 }
  0x10   : > { %p384_p10 = scmp.lt.s32.totalorder (!%p343_p9), %s383_s16, 35  ;;  %s5176_s22 = sshll.u32 (!%p343_p9), %s380_s15, 1 }
  0x11   : > { %s5108_s29 = scalar_lea.hbm (!%p343_p9), %s9436_s11, %s6704_s26 }
  0x12   : > { %s5112_s12 = sshll.u32 (!%p343_p9), %s5108_s29, 4  ;;  %s5113_s12 = int_to_ptr.hbm [resolvable:$true] %s5112_s12 }
  0x13   : > { %s7315_s21 = sshra.s32 (!%p343_p9), %s5113_s12, 4  ;;  %s7316_s21 = int_to_ptr.hbm [resolvable:$true] %s7315_s21 }
  0x14   : > { %v6745_v0 = vld [vmem:[%s9426_s1 + $0xb8] sm:$0xff]  ;;  %v6744_v4 = vld [vmem:[%s9426_s1 + $0xb0] sm:$0xff]  ;;  %s9448_s16 = smov (!%p384_p10, %s383_s16), 35  ;;  %v6743_v8 = vld [vmem:[%s9426_s1 + $0xa8] sm:$0xff]  ;;  %vm541_vm0 = vcmask 1046528   ;;  %vm1119_vm1 = vcmask 1045504   ;;  %p7322_p0 = scmp.lt.s32.totalorder %s7316_s21, %s9436_s11 }
  0x15   : > { %v6753_v1 = vld [vmem:[%s9426_s1 + $0xf8] sm:$0xff]  ;;  %688 = vmatpush.bf16.msra.mxu0 %v6745_v0  ;;  %v6752_v5 = vld [vmem:[%s9426_s1 + $0xf0] sm:$0xff]  ;;  %v6751_v9 = vld [vmem:[%s9426_s1 + $0xe8] sm:$0xff]  ;;  %s6707_s14 = sshll.u32 %s9448_s16, 3  ;;  %vm1424_vm2 = vcmask 1044480   ;;  %s5098_s16 = scalar_lea.sflag [#allocation6], %s380_s15 }
  0x16   : > { %v6729_v2 = vld [vmem:[%s9426_s1 + $0x38] sm:$0xff]  ;;  %737 = vmatpush.bf16.msra.mxu1 %v6753_v1  ;;  %v6728_v6 = vld [vmem:[%s9426_s1 + $0x30] sm:$0xff]  ;;  %v6727_v10 = vld [vmem:[%s9426_s1 + $0x28] sm:$0xff]  ;;  %s7525_s19 = scalar_lea.vmem %s9425_s0, %s6707_s14  ;;  %s382_s14 = scalar_lea.vmem [#allocation5], %s5176_s22 }
  0x17   : > { %v6737_v3 = vld [vmem:[%s9426_s1 + $0x78] sm:$0xff]  ;;  %903 = vmatpush.bf16.msra.mxu2 %v6729_v2  ;;  %v6736_v7 = vld [vmem:[%s9426_s1 + $0x70] sm:$0xff]  ;;  %v6735_v11 = vld [vmem:[%s9426_s1 + $0x68] sm:$0xff]  ;;  %s5110_s30 = sshll.u32 %s382_s14, 4  ;;  %s7321_s22 = scalar_lea.hbm %s9436_s11, 4  ;;  %s5111_s30 = int_to_ptr.vmem [resolvable:$true] %s5110_s30 }
  0x18   : > { %952 = vmatpush.bf16.msra.mxu3 %v6737_v3  ;;  %v6742_v12 = vld [vmem:[%s9426_s1 + $0xa0] sm:$0xff]  ;;  %v6741_v16 = vld [vmem:[%s9426_s1 + $0x98] sm:$0xff]  ;;  %v391_v20 = vld [vmem:[%s7525_s19 + $0x8] sm:$0xff] }
  0x19   : > { %689 = vmatpush.bf16.msra.mxu0 %v6744_v4  ;;  %v6750_v13 = vld [vmem:[%s9426_s1 + $0xe0] sm:$0xff]  ;;  %v6749_v17 = vld [vmem:[%s9426_s1 + $0xd8] sm:$0xff]  ;;  %v6740_v22 = vld [vmem:[%s9426_s1 + $0x90] sm:$0xff]  ;;  %v491_v28 = vunpack.c.l.b16 %v391_v20  ;;  %v492_v30 = vunpack.c.h.b16 %v391_v20 }
  0x1a   : > { %738 = vmatpush.bf16.msra.mxu1 %v6752_v5  ;;  %v6726_v14 = vld [vmem:[%s9426_s1 + $0x20] sm:$0xff]  ;;  %v6725_v18 = vld [vmem:[%s9426_s1 + $0x18] sm:$0xff]  ;;  %v6748_v23 = vld [vmem:[%s9426_s1 + $0xd0] sm:$0xff] }
  0x1b   : > { %904 = vmatpush.bf16.msra.mxu2 %v6728_v6  ;;  %v6734_v15 = vld [vmem:[%s9426_s1 + $0x60] sm:$0xff]  ;;  %v6733_v19 = vld [vmem:[%s9426_s1 + $0x58] sm:$0xff]  ;;  %v6724_v24 = vld [vmem:[%s9426_s1 + $0x10] sm:$0xff] }
  0x1c   : > { %953 = vmatpush.bf16.msra.mxu3 %v6736_v7  ;;  %v438_v21 = vld [vmem:[%s7525_s19] sm:$0xee]  ;;  %v5181_v25 = vld [vmem:[%s7525_s19 + $0x10] sm:$0xf]  ;;  %v6709_v26 = vld [vmem:[%s7525_s19 + $0x14] sm:$0xf0] }
  0x1d   : > { %690 = vmatpush.bf16.msra.mxu0 %v6743_v8  ;;  %v489_v27 = vunpack.c.l.b16 %v438_v21  ;;  %v490_v29 = vunpack.c.h.b16 %v438_v21  ;;  %v6732_v31 = vld [vmem:[%s9426_s1 + $0x50] sm:$0xff]  ;;  %v5183_v33 = vld [vmem:[%s7525_s19 + $0x18] sm:$0xf0]  ;;  %v7557_v34 = vor.u32 %v6709_v26, %v5181_v25  ;;  %v6739_v35 = vld [vmem:[%s9426_s1 + $0x88] sm:$0xff] }
  0x1e   : > { %739 = vmatpush.bf16.msra.mxu1 %v6751_v9  ;;  %v6708_v32 = vld [vmem:[%s7525_s19 + $0x14] sm:$0xf]  ;;  %v6747_v36 = vld [vmem:[%s9426_s1 + $0xc8] sm:$0xff]  ;;  %v390_v40 = vld [vmem:[%s7525_s19] sm:$0xff] }
  0x1f   : > { %905 = vmatpush.bf16.msra.mxu2 %v6727_v10  ;;  %v523_v37 = vpack.c.b16 %v491_v28, %v489_v27  ;;  %v524_v38 = vpack.c.b16 %v492_v30, %v490_v29  ;;  %v7565_v39 = vor.u32 %v6708_v32, %v5183_v33  ;;  %v6723_v41 = vld [vmem:[%s9426_s1 + $0x8] sm:$0xff]  ;;  %v787_v43 = vunpack.c.l.b16 %v390_v40  ;;  %v6738_v45 = vld [vmem:[%s9426_s1 + $0x80] sm:$0xff]  ;;  %v6791_v53 = vld [vmem:[%s9426_s1 + $0x1b8] sm:$0xff] }
  0x20   : > { %954 = vmatpush.bf16.msra.mxu3 %v6735_v11  ;;  %v6731_v42 = vld [vmem:[%s9426_s1 + $0x48] sm:$0xff]  ;;  %v788_v44 = vunpack.c.h.b16 %v390_v40  ;;  %v6746_v46 = vld [vmem:[%s9426_s1 + $0xc0] sm:$0xff]  ;;  %v543_v48 = vrot.slane %v7557_v34, 1  ;;  %v6799_v54 = vld [vmem:[%s9426_s1 + $0x1f8] sm:$0xff] }
  0x21   : > { %691 = vmatpush.bf16.msra.mxu0 %v6742_v12  ;;  %v542_v47 = vrot.slane %v523_v37, 1  ;;  %v545_v49 = vrot.slane %v524_v38, 1  ;;  %v546_v50 = vrot.slane %v7565_v39, 1  ;;  %v6722_v51 = vld [vmem:[%s9426_s1] sm:$0xff]  ;;  %v789_v55 = vpack.c.b16 %v491_v28, %v787_v43  ;;  %v6775_v59 = vld [vmem:[%s9426_s1 + $0x138] sm:$0xff]  ;;  %v6790_v0 = vld [vmem:[%s9426_s1 + $0x1b0] sm:$0xff] }
  0x22   : > { %740 = vmatpush.bf16.msra.mxu1 %v6750_v13  ;;  %v6730_v52 = vld [vmem:[%s9426_s1 + $0x40] sm:$0xff]  ;;  %v790_v58 = vpack.c.b16 %v492_v30, %v788_v44  ;;  %v6783_v60 = vld [vmem:[%s9426_s1 + $0x178] sm:$0xff]  ;;  %v6711_v62 = vld [vmem:[%s7525_s19 + $0x24] sm:$0xf0] }
  0x23   : > { %906 = vmatpush.bf16.msra.mxu2 %v6726_v14  ;;  %v544_v56 = vsel %vm541_vm0, %v542_v47, %v543_v48  ;;  %v547_v57 = vsel %vm541_vm0, %v545_v49, %v546_v50  ;;  %v5189_v61 = vld [vmem:[%s7525_s19 + $0x20] sm:$0xf]  ;;  %v6710_v63 = vld [vmem:[%s7525_s19 + $0x24] sm:$0xf]  ;;  %v6798_v1 = vld [vmem:[%s9426_s1 + $0x1f0] sm:$0xff] }
  0x24   : > { %955 = vmatpush.bf16.msra.mxu3 %v6734_v15  ;;  %v5191_v2 = vld [vmem:[%s7525_s19 + $0x28] sm:$0xf0]  ;;  %v6774_v3 = vld [vmem:[%s9426_s1 + $0x130] sm:$0xff]  ;;  %v5190_v5 = vor.u32 %v6711_v62, %v5189_v61  ;;  %v6713_v12 = vld [vmem:[%s7525_s19 + $0x34] sm:$0xf0] }
  0x25   : > { %692 = vmatpush.bf16.msra.mxu0 %v6741_v16  ;;  %v6782_v4 = vld [vmem:[%s9426_s1 + $0x170] sm:$0xff]  ;;  %v5194_v6 = vor.u32 %v6710_v63, %v5191_v2  ;;  %v6789_v13 = vld [vmem:[%s9426_s1 + $0x1a8] sm:$0xff]  ;;  %v5205_v25 = vld [vmem:[%s7525_s19 + $0x40] sm:$0xf] }
  0x26   : > { %741 = vmatpush.bf16.msra.mxu1 %v6749_v17  ;;  %v548_v7 = vrot.slane %v5190_v5, 1  ;;  %v5197_v11 = vld [vmem:[%s7525_s19 + $0x30] sm:$0xf]  ;;  %v6797_v14 = vld [vmem:[%s9426_s1 + $0x1e8] sm:$0xff]  ;;  %v6712_v16 = vld [vmem:[%s7525_s19 + $0x34] sm:$0xf] }
  0x27   : > { %907 = vmatpush.bf16.msra.mxu2 %v6725_v18  ;;  %v550_v8 = vrot.slane %v5194_v6, 1  ;;  %v6773_v15 = vld [vmem:[%s9426_s1 + $0x128] sm:$0xff]  ;;  %v5199_v17 = vld [vmem:[%s7525_s19 + $0x38] sm:$0xf0]  ;;  %v6788_v27 = vld [vmem:[%s9426_s1 + $0x1a0] sm:$0xff] }
  0x28   : > { %956 = vmatpush.bf16.msra.mxu3 %v6733_v19  ;;  %v549_v9 = vsel %vm541_vm0, %v543_v48, %v548_v7  ;;  %v6781_v18 = vld [vmem:[%s9426_s1 + $0x168] sm:$0xff]  ;;  %v5198_v19 = vor.u32 %v6713_v12, %v5197_v11  ;;  %v5202_v20 = vor.u32 %v6712_v16, %v5199_v17  ;;  %v6796_v28 = vld [vmem:[%s9426_s1 + $0x1e0] sm:$0xff]  ;;  %v6717_v40 = vld [vmem:[%s7525_s19 + $0x54] sm:$0xf0] }
  0x29   : > { %693 = vmatpush.bf16.msra.mxu0 %v6740_v22  ;;  %v551_v10 = vsel %vm541_vm0, %v546_v50, %v550_v8  ;;  %v6715_v26 = vld [vmem:[%s7525_s19 + $0x44] sm:$0xf0]  ;;  %v6772_v29 = vld [vmem:[%s9426_s1 + $0x120] sm:$0xff]  ;;  %v6771_v43 = vld [vmem:[%s9426_s1 + $0x118] sm:$0xff] }
  0x2a   : > { %742 = vmatpush.bf16.msra.mxu1 %v6748_v23  ;;  %v552_v21 = vrot.slane %v5198_v19, 1  ;;  %v554_v22 = vrot.slane %v5202_v20, 1  ;;  %v6714_v30 = vld [vmem:[%s7525_s19 + $0x44] sm:$0xf]  ;;  %v5206_v33 = vor.u32 %v6715_v26, %v5205_v25  ;;  %v6716_v44 = vld [vmem:[%s7525_s19 + $0x54] sm:$0xf] }
  0x2b   : > { %908 = vmatpush.bf16.msra.mxu2 %v6724_v24  ;;  %v6780_v32 = vld [vmem:[%s9426_s1 + $0x160] sm:$0xff] }
  0x2c   : > { %957 = vmatpush.bf16.msra.mxu3 %v6732_v31  ;;  %v553_v23 = vsel %vm541_vm0, %v548_v7, %v552_v21  ;;  %v555_v24 = vsel %vm541_vm0, %v550_v8, %v554_v22  ;;  %v5207_v31 = vld [vmem:[%s7525_s19 + $0x48] sm:$0xf0]  ;;  %v6720_v8 = vld [vmem:[%s7525_s19 + $0x74] sm:$0xf]  ;;  %v6776_v16 = vld [vmem:[%s9426_s1 + $0x140] sm:$0xff] }
  0x2d   : > { %694 = vmatpush.bf16.msra.mxu0 %v6739_v35  ;;  %v556_v35 = vrot.slane %v5206_v33, 1  ;;  %v6785_v7 = vld [vmem:[%s9426_s1 + $0x188] sm:$0xff]  ;;  %v6784_v17 = vld [vmem:[%s9426_s1 + $0x180] sm:$0xff] }
  0x2e   : > { %743 = vmatpush.bf16.msra.mxu1 %v6747_v36 }
  0x2f   : > { %909 = vmatpush.bf16.msra.mxu2 %v6723_v41  ;;  %v557_v37 = vsel %vm541_vm0, %v552_v21, %v556_v35  ;;  %v6787_v41 = vld [vmem:[%s9426_s1 + $0x198] sm:$0xff]  ;;  %v439_v21 = vld [vmem:[%s7525_s19 + $0x80] sm:$0x11] }
  0x30   : > { %958 = vmatpush.bf16.msra.mxu3 %v6731_v42  ;;  %v6795_v42 = vld [vmem:[%s9426_s1 + $0x1d8] sm:$0xff] }
  0x31   : > { %695 = vmatpush.bf16.msra.mxu0 %v6738_v45  ;;  %v5215_v45 = vld [vmem:[%s7525_s19 + $0x58] sm:$0xf0] }
  0x32   : > { %744 = vmatpush.bf16.msra.mxu1 %v6746_v46  ;;  %v6779_v46 = vld [vmem:[%s9426_s1 + $0x158] sm:$0xff]  ;;  %v5218_v48 = vor.u32 %v6716_v44, %v5215_v45 }
  0x33   : > { %910 = vmatpush.bf16.msra.mxu2 %v6722_v51 }
  0x34   : > { %959 = vmatpush.bf16.msra.mxu3 %v6730_v52  ;;  %696 = vmatmul.bf16.vlgmr.msra.gmra.mxu0 %v544_v56  ;;  %v562_v50 = vrot.slane %v5218_v48, 1  ;;  %v6794_v56 = vld [vmem:[%s9426_s1 + $0x1d0] sm:$0xff] }
  0x35   : > { %745 = vmatmul.bf16.vlgmr.msra.gmra.mxu1 %v547_v57  ;;  %1266 = vmatpush.bf16.msrb.mxu0 %v6775_v59  ;;  %v6770_v57 = vld [vmem:[%s9426_s1 + $0x110] sm:$0xff]  ;;  %v5223_v59 = vld [vmem:[%s7525_s19 + $0x68] sm:$0xf0] }
  0x36   : > { %911 = vmatmul.bf16.vlgmr.msra.gmra.mxu2 %v789_v55  ;;  %1315 = vmatpush.bf16.msrb.mxu1 %v6783_v60  ;;  %v6786_v55 = vld [vmem:[%s9426_s1 + $0x190] sm:$0xff] }
  0x37   : > { %1571 = vmatpush.bf16.msrb.mxu2 %v6791_v53  ;;  %960 = vmatmul.bf16.vlgmr.msra.gmra.mxu3 %v790_v58  ;;  %v5221_v53 = vld [vmem:[%s7525_s19 + $0x60] sm:$0xf]  ;;  %v6718_v58 = vld [vmem:[%s7525_s19 + $0x64] sm:$0xf]  ;;  %v6778_v60 = vld [vmem:[%s9426_s1 + $0x150] sm:$0xff] }
  0x38   : > { %1620 = vmatpush.bf16.msrb.mxu3 %v6799_v54  ;;  %v6719_v54 = vld [vmem:[%s7525_s19 + $0x64] sm:$0xf0]  ;;  %v5226_v62 = vor.u32 %v6718_v58, %v5223_v59 }
  0x39   : > { %1267 = vmatpush.bf16.msrb.mxu0 %v6774_v3  ;;  %v5222_v61 = vor.u32 %v6719_v54, %v5221_v53  ;;  %v5229_v3 = vld [vmem:[%s7525_s19 + $0x70] sm:$0xf] }
  0x3a   : > { %1316 = vmatpush.bf16.msrb.mxu1 %v6782_v4  ;;  %v6721_v4 = vld [vmem:[%s7525_s19 + $0x74] sm:$0xf0] }
  0x3b   : > { %1572 = vmatpush.bf16.msrb.mxu2 %v6790_v0  ;;  %v564_v63 = vrot.slane %v5222_v61, 1  ;;  %v566_v0 = vrot.slane %v5226_v62, 1  ;;  %v5230_v11 = vor.u32 %v6721_v4, %v5229_v3  ;;  %v5375_v3 = vld [vmem:[%s7525_s19 + $0x30] sm:$0xf0] }
  0x3c   : > { %1621 = vmatpush.bf16.msrb.mxu3 %v6798_v1 }
  0x3d   : > { %1268 = vmatpush.bf16.msrb.mxu0 %v6773_v15  ;;  %v567_v2 = vsel %vm541_vm0, %v562_v50, %v566_v0  ;;  %v6768_v15 = vld [vmem:[%s9426_s1 + $0x100] sm:$0xff] }
  0x3e   : > { %1317 = vmatpush.bf16.msrb.mxu1 %v6781_v18 }
  0x3f   : > { %1573 = vmatpush.bf16.msrb.mxu2 %v6789_v13  ;;  %v568_v13 = vrot.slane %v5230_v11, 1 }
  0x40   : > { %1622 = vmatpush.bf16.msrb.mxu3 %v6797_v14 }
  0x41   : > { %1269 = vmatpush.bf16.msrb.mxu0 %v6772_v29  ;;  %v569_v18 = vsel %vm541_vm0, %v564_v63, %v568_v13 }
  0x42   : > { %1318 = vmatpush.bf16.msrb.mxu1 %v6780_v32  ;;  %v1380_v32 = vld [vmem:[%s7525_s19 + $0x8] sm:$0x88] }
  0x43   : > { %1574 = vmatpush.bf16.msrb.mxu2 %v6788_v27 }
  0x44   : > { %701 = vmatmul.bf16.gmra.mxu0 %v549_v9  ;;  %1623 = vmatpush.bf16.msrb.mxu3 %v6796_v28  ;;  %v5231_v9 = vld [vmem:[%s7525_s19 + $0x78] sm:$0xf0] }
  0x45   : > { %750 = vmatmul.bf16.gmra.mxu1 %v551_v10  ;;  %1270 = vmatpush.bf16.msrb.mxu0 %v6771_v43  ;;  %v6793_v10 = vld [vmem:[%s9426_s1 + $0x1c8] sm:$0xff]  ;;  %v5234_v12 = vor.u32 %v6720_v8, %v5231_v9 }
  0x46   : > { %916 = vmatmul.bf16.gmra.mxu2 %v7557_v34  ;;  %v5210_v34 = vor.u32 %v6714_v30, %v5207_v31  ;;  %1319 = vmatpush.bf16.msrb.mxu1 %v6779_v46  ;;  %v1001_v30 = vld [vmem:[%s7525_s19 + $0x8] sm:$0xcc]  ;;  %v1002_v31 = vld [vmem:[%s7525_s19 + $0x10] sm:$0xff] }
  0x47   : > { %965 = vmatmul.bf16.gmra.mxu3 %v7565_v39  ;;  %v5213_v39 = vld [vmem:[%s7525_s19 + $0x50] sm:$0xf]  ;;  %1575 = vmatpush.bf16.msrb.mxu2 %v6787_v41  ;;  %v570_v14 = vrot.slane %v5234_v12, 1  ;;  %v1416_v41 = vunpack.c.l.b16 %v1380_v32 }
  0x48   : > { %v558_v36 = vrot.slane %v5210_v34, 1  ;;  %1624 = vmatpush.bf16.msrb.mxu3 %v6795_v42  ;;  %v5214_v47 = vor.u32 %v6717_v40, %v5213_v39  ;;  %v6754_v39 = vld [vmem:[%s7525_s19 + $0x1c] sm:$0xf]  ;;  %v5367_v40 = vld [vmem:[%s7525_s19 + $0x20] sm:$0xf0]  ;;  %v1417_v42 = vunpack.c.h.b16 %v1380_v32 }
  0x49   : > { %1271 = vmatpush.bf16.msrb.mxu0 %v6770_v57  ;;  %v5370_v46 = vor.u32 %v6754_v39, %v5367_v40 }
  0x4a   : > { %v559_v38 = vsel %vm541_vm0, %v554_v22, %v558_v36  ;;  %v560_v49 = vrot.slane %v5214_v47, 1  ;;  %v563_v52 = vsel %vm541_vm0, %v558_v36, %v562_v50  ;;  %1320 = vmatpush.bf16.msrb.mxu1 %v6778_v60  ;;  %v521_v22 = vunpack.c.l.b16 %v439_v21 }
  0x4b   : > { %1576 = vmatpush.bf16.msrb.mxu2 %v6786_v55  ;;  %v1068_v36 = vunpack.c.h.b16 %v1001_v30 }
  0x4c   : > { %v561_v51 = vsel %vm541_vm0, %v556_v35, %v560_v49  ;;  %1625 = vmatpush.bf16.msrb.mxu3 %v6794_v56  ;;  %v565_v1 = vsel %vm541_vm0, %v560_v49, %v564_v63  ;;  %v1069_v35 = vunpack.c.l.b16 %v1002_v31  ;;  %v1429_v56 = vrot.slane %v5370_v46, 3 }
  0x4f   : > { %1577 = vmatpush.bf16.msrb.mxu2 %v6785_v7 }
  0x50   : > { %1626 = vmatpush.bf16.msrb.mxu3 %v6793_v10 }
  0x53   : > { %1578 = vmatpush.bf16.msrb.mxu2 %v6784_v17 }
  0x54   : > { %706 = vmatmul.bf16.gmra.mxu0 %v553_v23  ;;  %v522_v23 = vunpack.c.h.b16 %v439_v21 }
  0x55   : > { %755 = vmatmul.bf16.gmra.mxu1 %v555_v24  ;;  %v539_v24 = vpack.c.b16 %v521_v22, %v521_v22 }
  0x56   : > { %921 = vmatmul.bf16.gmra.mxu2 %v5190_v5  ;;  %v6769_v5 = vld [vmem:[%s9426_s1 + $0x108] sm:$0xff]  ;;  %v540_v25 = vpack.c.b16 %v522_v23, %v522_v23 }
  0x57   : > { %970 = vmatmul.bf16.gmra.mxu3 %v5194_v6  ;;  %v6777_v6 = vld [vmem:[%s9426_s1 + $0x148] sm:$0xff]  ;;  %1272 = vmatpush.bf16.msrb.mxu0 %v6769_v5  ;;  %v572_v26 = vrot.slane %v539_v24, 1 }
  0x58   : > { %1321 = vmatpush.bf16.msrb.mxu1 %v6777_v6  ;;  %v574_v27 = vrot.slane %v540_v25, 1 }
  0x59   : > { %v573_v28 = vsel %vm541_vm0, %v568_v13, %v572_v26 }
  0x5a   : > { %v575_v29 = vsel %vm541_vm0, %v570_v14, %v574_v27 }
  0x5b   : > { %1273 = vmatpush.bf16.msrb.mxu0 %v6768_v15 }
  0x5c   : > { %1322 = vmatpush.bf16.msrb.mxu1 %v6776_v16 }
  0x64   : > { %711 = vmatmul.bf16.gmra.mxu0 %v557_v37  ;;  %v1070_v37 = vunpack.c.h.b16 %v1002_v31  ;;  %v5383_v31 = vld [vmem:[%s7525_s19 + $0x40] sm:$0xf0] }
  0x65   : > { %760 = vmatmul.bf16.gmra.mxu1 %v559_v38  ;;  %v6755_v38 = vld [vmem:[%s7525_s19 + $0x1c] sm:$0xf0] }
  0x66   : > { %926 = vmatmul.bf16.gmra.mxu2 %v5198_v19  ;;  %v571_v19 = vsel %vm541_vm0, %v566_v0, %v570_v14  ;;  %v1102_v45 = vpack.c.b16 %v1070_v37, %v1068_v36  ;;  %v5373_v0 = vld [vmem:[%s7525_s19 + $0x28] sm:$0xf] }
  0x67   : > { %975 = vmatmul.bf16.gmra.mxu3 %v5202_v20  ;;  %v6792_v20 = vld [vmem:[%s9426_s1 + $0x1c0] sm:$0xff] }
  0x68   : > { %1627 = vmatpush.bf16.msrb.mxu3 %v6792_v20 }
  0x74   : > { %716 = vmatmul.bf16.gmra.mxu0 %v561_v51  ;;  %v1123_v51 = vrot.slane %v1102_v45, 2 }
  0x75   : > { %765 = vmatmul.bf16.gmra.mxu1 %v563_v52  ;;  %v1124_v52 = vrot.slane %v5370_v46, 2 }
  0x76   : > { %931 = vmatmul.bf16.gmra.mxu2 %v5206_v33  ;;  %v5365_v33 = vld [vmem:[%s7525_s19 + $0x18] sm:$0xf] }
  0x77   : > { %980 = vmatmul.bf16.gmra.mxu3 %v5210_v34  ;;  %v1067_v34 = vunpack.c.l.b16 %v1001_v30  ;;  %v5366_v44 = vor.u32 %v6755_v38, %v5365_v33  ;;  %v1125_v60 = vsel %vm1119_vm1, %v1123_v51, %v1124_v52  ;;  %v6758_v30 = vld [vmem:[%s7525_s19 + $0x3c] sm:$0xf] }
  0x78   : > { %v5386_v38 = vor.u32 %v6758_v30, %v5383_v31 }
  0x79   : > { %v1101_v43 = vpack.c.b16 %v1069_v35, %v1067_v34  ;;  %v1121_v50 = vrot.slane %v5366_v44, 2  ;;  %v1426_v54 = vrot.slane %v5366_v44, 3 }
  0x7a   : > { %v1437_v44 = vrot.slane %v5386_v38, 3 }
  0x7b   : > { %v1120_v49 = vrot.slane %v1101_v43, 2 }
  0x7d   : > { %v1122_v59 = vsel %vm1119_vm1, %v1120_v49, %v1121_v50 }
  0x84   : > { %721 = vmatmul.bf16.gmra.mxu0 %v565_v1  ;;  %v6757_v1 = vld [vmem:[%s7525_s19 + $0x2c] sm:$0xf0] }
  0x85   : > { %770 = vmatmul.bf16.gmra.mxu1 %v567_v2  ;;  %v6756_v2 = vld [vmem:[%s7525_s19 + $0x2c] sm:$0xf]  ;;  %v5374_v9 = vor.u32 %v6757_v1, %v5373_v0 }
  0x86   : > { %936 = vmatmul.bf16.gmra.mxu2 %v5214_v47  ;;  %v1420_v47 = vpack.c.b16 %v1069_v35, %v1416_v41  ;;  %v5378_v10 = vor.u32 %v6756_v2, %v5375_v3 }
  0x87   : > { %985 = vmatmul.bf16.gmra.mxu3 %v5218_v48  ;;  %v1421_v48 = vpack.c.b16 %v1070_v37, %v1417_v42  ;;  %v1126_v13 = vrot.slane %v5374_v9, 2  ;;  %v1431_v15 = vrot.slane %v5374_v9, 3  ;;  %v1132_v42 = vrot.slane %v5386_v38, 2 }
  0x88   : > { %v1425_v53 = vrot.slane %v1420_v47, 3  ;;  %v1128_v14 = vrot.slane %v5378_v10, 2  ;;  %v1433_v16 = vrot.slane %v5378_v10, 3 }
  0x89   : > { %v1428_v55 = vrot.slane %v1421_v48, 3  ;;  %v1127_v22 = vsel %vm1119_vm1, %v1121_v50, %v1126_v13  ;;  %v1432_v25 = vsel %vm1424_vm2, %v1426_v54, %v1431_v15 }
  0x8a   : > { %v1129_v23 = vsel %vm1119_vm1, %v1124_v52, %v1128_v14  ;;  %v1434_v26 = vsel %vm1424_vm2, %v1429_v56, %v1433_v16  ;;  %v1133_v51 = vsel %vm1119_vm1, %v1128_v14, %v1132_v42 }
  0x8b   : > { %v1430_v63 = vsel %vm1424_vm2, %v1428_v55, %v1429_v56  ;;  %v5389_v56 = vld [vmem:[%s7525_s19 + $0x48] sm:$0xf] }
  0x94   : > { %726 = vmatmul.bf16.gmra.mxu0 %v569_v18 }
  0x95   : > { %775 = vmatmul.bf16.gmra.mxu1 %v571_v19 }
  0x96   : > { %941 = vmatmul.bf16.gmra.mxu2 %v5222_v61 }
  0x97   : > { %990 = vmatmul.bf16.gmra.mxu3 %v5226_v62  ;;  %v1427_v62 = vsel %vm1424_vm2, %v1425_v53, %v1426_v54  ;;  %v1438_v54 = vsel %vm1424_vm2, %v1433_v16, %v1437_v44 }
  0xa4   : > { %731 = vmatmul.bf16.gmra.mxu0 %v573_v28  ;;  %v5381_v28 = vld [vmem:[%s7525_s19 + $0x38] sm:$0xf] }
  0xa5   : > { %780 = vmatmul.bf16.gmra.mxu1 %v575_v29  ;;  %v6759_v29 = vld [vmem:[%s7525_s19 + $0x3c] sm:$0xf0] }
  0xa6   : > { %946 = vmatmul.bf16.gmra.mxu2 %v5230_v11  ;;  %v5382_v37 = vor.u32 %v6759_v29, %v5381_v28 }
  0xa7   : > { %995 = vmatmul.bf16.gmra.mxu3 %v5234_v12 }
  0xa8   : > { %v1130_v41 = vrot.slane %v5382_v37, 2  ;;  %v1435_v43 = vrot.slane %v5382_v37, 3 }
  0xaa   : > { %v1131_v50 = vsel %vm1119_vm1, %v1126_v13, %v1130_v41  ;;  %v1436_v53 = vsel %vm1424_vm2, %v1431_v15, %v1435_v43 }
  0xb1   : > { %v697_v57 = vpop.f32.mrf.mxu0 }
  0xb2   : > { %v746_v58 = vpop.f32.mrf.mxu1 }
  0xb3   : > { %v747_v61 = vadd.f32 %v746_v58, %v697_v57  ;;  %v6761_v57 = vld [vmem:[%s7525_s19 + $0x4c] sm:$0xf0]  ;;  %v6760_v58 = vld [vmem:[%s7525_s19 + $0x4c] sm:$0xf] }
  0xb4   : > { %1274 = vmatmul.bf16.vlgmr.msrb.gmra.mxu0 %v1122_v59  ;;  %v5391_v59 = vld [vmem:[%s7525_s19 + $0x50] sm:$0xf0]  ;;  %v5390_v1 = vor.u32 %v6761_v57, %v5389_v56  ;;  %v6813_v56 = vld [vmem:[%s9428_s3 + $0x38] sm:$0xff]  ;;  %v6765_v57 = vld [vmem:[%s7525_s19 + $0x6c] sm:$0xf0] }
  0xb5   : > { %1323 = vmatmul.bf16.vlgmr.msrb.gmra.mxu1 %v1125_v60  ;;  %v5394_v2 = vor.u32 %v6760_v58, %v5391_v59  ;;  %v6764_v58 = vld [vmem:[%s7525_s19 + $0x6c] sm:$0xf]  ;;  %v5407_v59 = vld [vmem:[%s7525_s19 + $0x70] sm:$0xf0] }
  0xb6   : > { %1579 = vmatmul.bf16.vlgmr.msrb.gmra.mxu2 %v1427_v62  ;;  %2011 = vmatpush.bf16.msra.mxu1 %v6813_v56  ;;  %v6833_v56 = vld [vmem:[%s9428_s3 + $0xa8] sm:$0xff] }
  0xb7   : > { %1628 = vmatmul.bf16.vlgmr.msrb.gmra.mxu3 %v1430_v63 }
  0xb9   : > { %v912_v4 = vpop.f32.mrf.mxu2  ;;  %v699_v7 = vpop.f32.mrf.mxu0 }
  0xba   : > { %v961_v5 = vpop.f32.mrf.mxu3  ;;  %v913_v6 = vadd.f32 %v912_v4, %v747_v61  ;;  %v748_v8 = vpop.f32.mrf.mxu1 }
  0xbb   : > { %v749_v11 = vadd.f32 %v748_v8, %v699_v7  ;;  %v1439_v7 = vrot.slane %v5390_v1, 3  ;;  %v1441_v8 = vrot.slane %v5394_v2, 3 }
  0xbc   : > { %v7742_v12 = vadd.f32 %v961_v5, %v913_v6  ;;  %v1134_v5 = vrot.slane %v5390_v1, 2  ;;  %v1136_v6 = vrot.slane %v5394_v2, 2  ;;  %v5410_v2 = vor.u32 %v6764_v58, %v5407_v59  ;;  %v6841_v58 = vld [vmem:[%s9428_s3 + $0xe8] sm:$0xff] }
  0xbd   : > { %v6819_v59 = vld [vmem:[%s9428_s3 + $0x68] sm:$0xff] }
  0xbe   : > { %v1135_v15 = vsel %vm1119_vm1, %v1130_v41, %v1134_v5  ;;  %v1137_v16 = vsel %vm1119_vm1, %v1132_v42, %v1136_v6 }
  0xc1   : > { %v914_v17 = vpop.f32.mrf.mxu2  ;;  %v702_v20 = vpop.f32.mrf.mxu0 }
  0xc2   : > { %v963_v18 = vpop.f32.mrf.mxu3  ;;  %v915_v19 = vadd.f32 %v914_v17, %v749_v11  ;;  %v751_v21 = vpop.f32.mrf.mxu1 }
  0xc3   : > { %v752_v24 = vadd.f32 %v751_v21, %v702_v20  ;;  %v5397_v21 = vld [vmem:[%s7525_s19 + $0x58] sm:$0xf] }
  0xc4   : > { %v7748_v27 = vadd.f32 %v963_v18, %v915_v19  ;;  %1279 = vmatmul.bf16.gmra.mxu0 %v1127_v22  ;;  %v1440_v18 = vsel %vm1424_vm2, %v1435_v43, %v1439_v7  ;;  %v1442_v19 = vsel %vm1424_vm2, %v1437_v44, %v1441_v8  ;;  %v6763_v22 = vld [vmem:[%s7525_s19 + $0x5c] sm:$0xf0] }
  0xc5   : > { %1328 = vmatmul.bf16.gmra.mxu1 %v1129_v23  ;;  %v6762_v23 = vld [vmem:[%s7525_s19 + $0x5c] sm:$0xf]  ;;  %v5398_v31 = vor.u32 %v6763_v22, %v5397_v21  ;;  %v6842_v21 = vld [vmem:[%s9428_s3 + $0xf0] sm:$0xff]  ;;  %v5413_v22 = vld [vmem:[%s7525_s19 + $0x78] sm:$0xf] }
  0xc6   : > { %1584 = vmatmul.bf16.gmra.mxu2 %v1432_v25 }
  0xc7   : > { %1633 = vmatmul.bf16.gmra.mxu3 %v1434_v26  ;;  %v1443_v37 = vrot.slane %v5398_v31, 3 }
  0xc9   : > { %v917_v32 = vpop.f32.mrf.mxu2  ;;  %v704_v35 = vpop.f32.mrf.mxu0 }
  0xca   : > { %v966_v33 = vpop.f32.mrf.mxu3  ;;  %v918_v34 = vadd.f32 %v917_v32, %v752_v24  ;;  %v753_v36 = vpop.f32.mrf.mxu1  ;;  %v5399_v24 = vld [vmem:[%s7525_s19 + $0x60] sm:$0xf0] }
  0xcb   : > { %v754_v39 = vadd.f32 %v753_v36, %v704_v35  ;;  %v5402_v32 = vor.u32 %v6762_v23, %v5399_v24  ;;  %v1138_v35 = vrot.slane %v5398_v31, 2  ;;  %v6820_v23 = vld [vmem:[%s9428_s3 + $0x70] sm:$0xff] }
  0xcc   : > { %v7754_v40 = vadd.f32 %v966_v33, %v918_v34  ;;  %v6812_v24 = vld [vmem:[%s9428_s3 + $0x30] sm:$0xff] }
  0xcd   : > { %v1140_v36 = vrot.slane %v5402_v32, 2  ;;  %v1445_v38 = vrot.slane %v5402_v32, 3  ;;  %2012 = vmatpush.bf16.msra.mxu1 %v6812_v24  ;;  %v6808_v24 = vld [vmem:[%s9428_s3 + $0x10] sm:$0xff] }
  0xd1   : > { %v919_v45 = vpop.f32.mrf.mxu2  ;;  %v707_v48 = vpop.f32.mrf.mxu0 }
  0xd2   : > { %v968_v46 = vpop.f32.mrf.mxu3  ;;  %v920_v47 = vadd.f32 %v919_v45, %v754_v39  ;;  %v756_v49 = vpop.f32.mrf.mxu1  ;;  %v1139_v45 = vsel %vm1119_vm1, %v1134_v5, %v1138_v35 }
  0xd3   : > { %v757_v52 = vadd.f32 %v756_v49, %v707_v48  ;;  %v1444_v48 = vsel %vm1424_vm2, %v1439_v7, %v1443_v37  ;;  %v1446_v49 = vsel %vm1424_vm2, %v1441_v8, %v1445_v38  ;;  %v1449_v8 = vrot.slane %v5410_v2, 3 }
  0xd4   : > { %v7760_v55 = vadd.f32 %v968_v46, %v920_v47  ;;  %1284 = vmatmul.bf16.gmra.mxu0 %v1131_v50  ;;  %v1141_v46 = vsel %vm1119_vm1, %v1136_v6, %v1140_v36  ;;  %v1144_v6 = vrot.slane %v5410_v2, 2  ;;  %v6810_v2 = vld [vmem:[%s9428_s3 + $0x20] sm:$0xff] }
  0xd5   : > { %1333 = vmatmul.bf16.gmra.mxu1 %v1133_v51  ;;  %v6835_v51 = vld [vmem:[%s9428_s3 + $0xb8] sm:$0xff] }
  0xd6   : > { %1589 = vmatmul.bf16.gmra.mxu2 %v1436_v53  ;;  %v5405_v53 = vld [vmem:[%s7525_s19 + $0x68] sm:$0xf] }
  0xd7   : > { %1638 = vmatmul.bf16.gmra.mxu3 %v1438_v54  ;;  %v6821_v54 = vld [vmem:[%s9428_s3 + $0x78] sm:$0xff]  ;;  %2194 = vmatpush.bf16.msra.mxu2 %v6835_v51  ;;  %v5406_v1 = vor.u32 %v6765_v57, %v5405_v53  ;;  %v1017_v53 = vld [vmem:[%s7525_s19 + $0x88] sm:$0x33] }
  0xd8   : > { %1909 = vmatpush.bf16.msra.mxu0 %v6821_v54  ;;  %v1381_v54 = vld [vmem:[%s7525_s19 + $0x88] sm:$0x77] }
  0xd9   : > { %v922_v60 = vpop.f32.mrf.mxu2  ;;  %v709_v63 = vpop.f32.mrf.mxu0  ;;  %v1142_v5 = vrot.slane %v5406_v1, 2  ;;  %v1447_v7 = vrot.slane %v5406_v1, 3  ;;  %v6811_v57 = vld [vmem:[%s9428_s3 + $0x28] sm:$0xff]  ;;  %v1419_v1 = vunpack.c.h.b16 %v1381_v54 }
  0xda   : > { %v971_v61 = vpop.f32.mrf.mxu3  ;;  %v923_v62 = vadd.f32 %v922_v60, %v757_v52  ;;  %v758_v0 = vpop.f32.mrf.mxu1  ;;  %v6843_v52 = vld [vmem:[%s9428_s3 + $0xf8] sm:$0xff]  ;;  %2013 = vmatpush.bf16.msra.mxu1 %v6811_v57 }
  0xdb   : > { %v759_v3 = vadd.f32 %v758_v0, %v709_v63  ;;  %2346 = vmatpush.bf16.msra.mxu3 %v6843_v52 }
  0xdc   : > { %v7766_v4 = vadd.f32 %v971_v61, %v923_v62  ;;  %1910 = vmatpush.bf16.msra.mxu0 %v6820_v23 }
  0xde   : > { %2014 = vmatpush.bf16.msra.mxu1 %v6810_v2 }
  0xdf   : > { %2347 = vmatpush.bf16.msra.mxu3 %v6842_v21 }
  0xe0   : > { %1911 = vmatpush.bf16.msra.mxu0 %v6819_v59  ;;  %v6817_v59 = vld [vmem:[%s9428_s3 + $0x58] sm:$0xff] }
  0xe1   : > { %v924_v9 = vpop.f32.mrf.mxu2  ;;  %v712_v13 = vpop.f32.mrf.mxu0 }
  0xe2   : > { %v973_v10 = vpop.f32.mrf.mxu3  ;;  %v925_v11 = vadd.f32 %v924_v9, %v759_v3  ;;  %v761_v14 = vpop.f32.mrf.mxu1 }
  0xe3   : > { %v762_v17 = vadd.f32 %v761_v14, %v712_v13  ;;  %v1143_v14 = vsel %vm1119_vm1, %v1138_v35, %v1142_v5  ;;  %2348 = vmatpush.bf16.msra.mxu3 %v6841_v58 }
  0xe4   : > { %v7772_v20 = vadd.f32 %v973_v10, %v925_v11  ;;  %1289 = vmatmul.bf16.gmra.mxu0 %v1135_v15  ;;  %v1145_v15 = vsel %vm1119_vm1, %v1140_v36, %v1144_v6 }
  0xe5   : > { %1338 = vmatmul.bf16.gmra.mxu1 %v1137_v16 }
  0xe6   : > { %1594 = vmatmul.bf16.gmra.mxu2 %v1440_v18  ;;  %v1450_v18 = vsel %vm1424_vm2, %v1445_v38, %v1449_v8 }
  0xe7   : > { %1643 = vmatmul.bf16.gmra.mxu3 %v1442_v19  ;;  %v6834_v19 = vld [vmem:[%s9428_s3 + $0xb0] sm:$0xff] }
  0xe8   : > { %2195 = vmatpush.bf16.msra.mxu2 %v6834_v19 }
  0xe9   : > { %v927_v25 = vpop.f32.mrf.mxu2  ;;  %v714_v29 = vpop.f32.mrf.mxu0 }
  0xea   : > { %v976_v26 = vpop.f32.mrf.mxu3  ;;  %v928_v28 = vadd.f32 %v927_v25, %v762_v17  ;;  %v763_v30 = vpop.f32.mrf.mxu1  ;;  %v1448_v17 = vsel %vm1424_vm2, %v1443_v37, %v1447_v7  ;;  %v6767_v25 = vld [vmem:[%s7525_s19 + $0x7c] sm:$0xf0] }
  0xeb   : > { %v764_v33 = vadd.f32 %v763_v30, %v714_v29  ;;  %v5414_v35 = vor.u32 %v6767_v25, %v5413_v22 }
  0xec   : > { %v7778_v34 = vadd.f32 %v976_v26, %v928_v28  ;;  %v6766_v26 = vld [vmem:[%s7525_s19 + $0x7c] sm:$0xf]  ;;  %v5415_v28 = vld [vmem:[%s7525_s19 + $0x80] sm:$0xf0]  ;;  %2196 = vmatpush.bf16.msra.mxu2 %v6833_v56  ;;  %s7317_s19 = scalar_lea.hbm %s7316_s21, 2 }
  0xed   : > { %v5418_v36 = vor.u32 %v6766_v26, %v5415_v28  ;;  %v1146_v38 = vrot.slane %v5414_v35, 2  ;;  %p7318_p11 = scmp.ne.s32.totalorder %s7316_s21, %s7317_s19  ;;  %p7323_p1 = scmp.lt.s32.totalorder %s7321_s22, %s7317_s19 }
  0xef   : > { %p7319_p12 = pnand %p7318_p11, %p7463_p5  ;;  %p7324_p2 = por %p7323_p1, %p7322_p0 }
  0xf1   : > { %v929_v39 = vpop.f32.mrf.mxu2  ;;  %v717_v43 = vpop.f32.mrf.mxu0  ;;  %p7320_p13 = pneg %p7319_p12 }
  0xf2   : > { %v978_v41 = vpop.f32.mrf.mxu3  ;;  %v930_v42 = vadd.f32 %v929_v39, %v764_v33  ;;  %v766_v44 = vpop.f32.mrf.mxu1  ;;  %v1148_v39 = vrot.slane %v5418_v36, 2 }
  0xf3   : > { %v767_v47 = vadd.f32 %v766_v44, %v717_v43  ;;  %p7325_p3 = pnand %p7324_p2, %p7320_p13 }
  0xf4   : > { %v7784_v50 = vadd.f32 %v978_v41, %v930_v42  ;;  %1294 = vmatmul.bf16.gmra.mxu0 %v1139_v45  ;;  %v1451_v41 = vrot.slane %v5414_v35, 3  ;;  %v1453_v42 = vrot.slane %v5418_v36, 3 }
  0xf5   : > { %1343 = vmatmul.bf16.gmra.mxu1 %v1141_v46 }
  0xf6   : > { %1599 = vmatmul.bf16.gmra.mxu2 %v1444_v48  ;;  %v1149_v48 = vsel %vm1119_vm1, %v1144_v6, %v1148_v39  ;;  %v1452_v51 = vsel %vm1424_vm2, %v1447_v7, %v1451_v41  ;;  %v1454_v52 = vsel %vm1424_vm2, %v1449_v8, %v1453_v42 }
  0xf7   : > { %1648 = vmatmul.bf16.gmra.mxu3 %v1446_v49 }
  0xf9   : > { %v932_v60 = vpop.f32.mrf.mxu2  ;;  %v7802_v63 = vpop.f32.mrf.mxu0 }
  0xfa   : > { %v981_v61 = vpop.f32.mrf.mxu3  ;;  %v933_v62 = vadd.f32 %v932_v60, %v767_v47  ;;  %v7804_v0 = vpop.f32.mrf.mxu1  ;;  %v1147_v47 = vsel %vm1119_vm1, %v1142_v5, %v1146_v38  ;;  %v1099_v60 = vunpack.c.l.b16 %v1017_v53 }
  0xfc   : > { %v7806_v3 = vadd.f32 %v981_v61, %v933_v62  ;;  %v1100_v61 = vunpack.c.h.b16 %v1017_v53  ;;  %v1418_v62 = vunpack.c.l.b16 %v1381_v54  ;;  %v6818_v53 = vld [vmem:[%s9428_s3 + $0x60] sm:$0xff] }
  0xfd   : > { %1912 = vmatpush.bf16.msra.mxu0 %v6818_v53 }
 0x101   : > { %v7808_v9 = vpop.f32.mrf.mxu2  ;;  %v722_v11 = vpop.f32.mrf.mxu0  ;;  %1913 = vmatpush.bf16.msra.mxu0 %v6817_v59  ;;  %v6829_v59 = vld [vmem:[%s9428_s3 + $0x88] sm:$0xff] }
 0x102   : > { %v7810_v10 = vpop.f32.mrf.mxu3  ;;  %v771_v13 = vpop.f32.mrf.mxu1 }
 0x103   : > { %v772_v16 = vadd.f32 %v771_v13, %v722_v11  ;;  %v1117_v13 = vpack.c.b16 %v1099_v60, %v1099_v60 }
 0x104   : > { %1299 = vmatmul.bf16.gmra.mxu0 %v1143_v14  ;;  %v1118_v14 = vpack.c.b16 %v1100_v61, %v1100_v61 }
 0x105   : > { %1348 = vmatmul.bf16.gmra.mxu1 %v1145_v15  ;;  %v1422_v15 = vpack.c.b16 %v1418_v62, %v1418_v62  ;;  %v1150_v19 = vrot.slane %v1117_v13, 2  ;;  %v6839_v13 = vld [vmem:[%s9428_s3 + $0xd8] sm:$0xff] }
 0x106   : > { %1604 = vmatmul.bf16.gmra.mxu2 %v1448_v17  ;;  %v1152_v21 = vrot.slane %v1118_v14, 2 }
 0x107   : > { %1653 = vmatmul.bf16.gmra.mxu3 %v1450_v18  ;;  %v6809_v18 = vld [vmem:[%s9428_s3 + $0x18] sm:$0xff]  ;;  %v1455_v22 = vrot.slane %v1422_v15, 3 }
 0x108   : > { %2015 = vmatpush.bf16.msra.mxu1 %v6809_v18 }
 0x109   : > { %v937_v29 = vpop.f32.mrf.mxu2  ;;  %v7832_v32 = vpop.f32.mrf.mxu0  ;;  %v1456_v36 = vsel %vm1424_vm2, %v1451_v41, %v1455_v22 }
 0x10a   : > { %v986_v30 = vpop.f32.mrf.mxu3  ;;  %v938_v31 = vadd.f32 %v937_v29, %v772_v16  ;;  %v7834_v33 = vpop.f32.mrf.mxu1  ;;  %v1423_v16 = vpack.c.b16 %v1419_v1, %v1419_v1 }
 0x10c   : > { %v7836_v37 = vadd.f32 %v986_v30, %v938_v31  ;;  %v1457_v23 = vrot.slane %v1423_v16, 3  ;;  %v1151_v30 = vsel %vm1119_vm1, %v1146_v38, %v1150_v19  ;;  %v1153_v31 = vsel %vm1119_vm1, %v1148_v39, %v1152_v21  ;;  %2016 = vmatpush.bf16.msra.mxu1 %v6808_v24  ;;  %v6806_v38 = vld [vmem:[%s9428_s3] sm:$0xff]  ;;  %v6815_v16 = vld [vmem:[%s9428_s3 + $0x48] sm:$0xff] }
 0x10d   : > { %v7927_v19 = vld [vmem:[%s9427_s2] ss:$0 sm:$0xff] }
 0x111   : > { %v7838_v43 = vpop.f32.mrf.mxu2  ;;  %v727_v45 = vpop.f32.mrf.mxu0 }
 0x112   : > { %v7840_v44 = vpop.f32.mrf.mxu3  ;;  %v776_v46 = vpop.f32.mrf.mxu1 }
 0x113   : > { %v777_v49 = vadd.f32 %v776_v46, %v727_v45  ;;  %v1458_v45 = vsel %vm1424_vm2, %v1453_v42, %v1457_v23  ;;  %v6807_v46 = vld [vmem:[%s9428_s3 + $0x8] sm:$0xff] }
 0x114   : > { %1304 = vmatmul.bf16.gmra.mxu0 %v1147_v47  ;;  %2017 = vmatpush.bf16.msra.mxu1 %v6807_v46 }
 0x115   : > { %1353 = vmatmul.bf16.gmra.mxu1 %v1149_v48 }
 0x116   : > { %1609 = vmatmul.bf16.gmra.mxu2 %v1452_v51  ;;  %v6832_v51 = vld [vmem:[%s9428_s3 + $0xa0] sm:$0xff] }
 0x117   : > { %1658 = vmatmul.bf16.gmra.mxu3 %v1454_v52  ;;  %v6840_v52 = vld [vmem:[%s9428_s3 + $0xe0] sm:$0xff]  ;;  %2197 = vmatpush.bf16.msra.mxu2 %v6832_v51  ;;  %v6830_v51 = vld [vmem:[%s9428_s3 + $0x90] sm:$0xff] }
 0x118   : > { %2018 = vmatpush.bf16.msra.mxu1 %v6806_v38  ;;  %2349 = vmatpush.bf16.msra.mxu3 %v6840_v52  ;;  %v6838_v52 = vld [vmem:[%s9428_s3 + $0xd0] sm:$0xff] }
 0x119   : > { %v942_v5 = vpop.f32.mrf.mxu2  ;;  %v7863_v8 = vpop.f32.mrf.mxu0 }
 0x11a   : > { %v991_v6 = vpop.f32.mrf.mxu3  ;;  %v943_v7 = vadd.f32 %v942_v5, %v777_v49  ;;  %v7865_v11 = vpop.f32.mrf.mxu1  ;;  %v6816_v5 = vld [vmem:[%s9428_s3 + $0x50] sm:$0xff] }
 0x11b   : > { %1914 = vmatpush.bf16.msra.mxu0 %v6816_v5 }
 0x11c   : > { %v7867_v17 = vadd.f32 %v991_v6, %v943_v7  ;;  %v6831_v7 = vld [vmem:[%s9428_s3 + $0x98] sm:$0xff]  ;;  %2350 = vmatpush.bf16.msra.mxu3 %v6839_v13 }
 0x11d   : > { %2198 = vmatpush.bf16.msra.mxu2 %v6831_v7 }
 0x11f   : > { %1915 = vmatpush.bf16.msra.mxu0 %v6815_v16 }
 0x120   : > { %2351 = vmatpush.bf16.msra.mxu3 %v6838_v52 }
 0x121   : > { %v7875_v25 = vpop.f32.mrf.mxu2  ;;  %v732_v28 = vpop.f32.mrf.mxu0  ;;  %2199 = vmatpush.bf16.msra.mxu2 %v6830_v51 }
 0x122   : > { %v7877_v26 = vpop.f32.mrf.mxu3  ;;  %v781_v29 = vpop.f32.mrf.mxu1 }
 0x123   : > { %v782_v35 = vadd.f32 %v781_v29, %v732_v28  ;;  %v6814_v29 = vld [vmem:[%s9428_s3 + $0x40] sm:$0xff] }
 0x124   : > { %1309 = vmatmul.bf16.gmra.mxu0 %v1151_v30 }
 0x125   : > { %1358 = vmatmul.bf16.gmra.mxu1 %v1153_v31  ;;  %1916 = vmatpush.bf16.msra.mxu0 %v6814_v29 }
 0x126   : > { %1614 = vmatmul.bf16.gmra.mxu2 %v1456_v36 }
 0x127   : > { %1663 = vmatmul.bf16.gmra.mxu3 %v1458_v45  ;;  %2200 = vmatpush.bf16.msra.mxu2 %v6829_v59 }
 0x129   : > { %v947_v39 = vpop.f32.mrf.mxu2  ;;  %v7889_v41 = vpop.f32.mrf.mxu0 }
 0x12a   : > { %v996_v47 = vpop.f32.mrf.mxu3  ;;  %v948_v48 = vadd.f32 %v947_v39, %v782_v35  ;;  %v7891_v42 = vpop.f32.mrf.mxu1 }
 0x12c   : > { %v7893_v49 = vadd.f32 %v996_v47, %v948_v48 }
 0x131   : > { %v7904_v54 = vpop.f32.mrf.mxu2  ;;  %v1275_v57 = vpop.f32.mrf.mxu0 }
 0x132   : > { %v7906_v56 = vpop.f32.mrf.mxu3  ;;  %v1324_v58 = vpop.f32.mrf.mxu1 }
 0x133   : > { %v1325_v62 = vadd.f32 %v1324_v58, %v1275_v57 }
 0x135   : > { %v1364_v14 = vadd.f32 %v1325_v62, %v7742_v12 }
 0x139   : > { %v1580_v60 = vpop.f32.mrf.mxu2  ;;  %v1277_v1 = vpop.f32.mrf.mxu0 }
 0x13a   : > { %v1629_v61 = vpop.f32.mrf.mxu3  ;;  %v1326_v2 = vpop.f32.mrf.mxu1 }
 0x13b   : > { %v1630_v6 = vadd.f32 %v1629_v61, %v1580_v60  ;;  %v1327_v15 = vadd.f32 %v1326_v2, %v1277_v1  ;;  %v6837_v60 = vld [vmem:[%s9428_s3 + $0xc8] sm:$0xff] }
 0x13c   : > { %2352 = vmatpush.bf16.msra.mxu3 %v6837_v60 }
 0x13d   : > { %v1669_v18 = vadd.f32 %v1630_v6, %v1364_v14  ;;  %v1365_v23 = vadd.f32 %v1327_v15, %v7748_v27  ;;  %v6836_v15 = vld [vmem:[%s9428_s3 + $0xc0] sm:$0xff] }
 0x13f   : > { %v1689_v30 = vadd.f32 %v7927_v19, %v1669_v18 }
 0x140   : > { %2353 = vmatpush.bf16.msra.mxu3 %v6836_v15 }
 0x141   : > { %v1582_v21 = vpop.f32.mrf.mxu2  ;;  %v1280_v12 = vpop.f32.mrf.mxu0  ;;  %v1705_v36 = vmax.f32 %v1689_v30, 0.0 }
 0x142   : > { %v1631_v22 = vpop.f32.mrf.mxu3  ;;  %v1329_v28 = vpop.f32.mrf.mxu1 }
 0x143   : > { %v1632_v24 = vadd.f32 %v1631_v22, %v1582_v21  ;;  %v1330_v47 = vadd.f32 %v1329_v28, %v1280_v12 }
 0x145   : > { %v1670_v31 = vadd.f32 %v1632_v24, %v1365_v23  ;;  %v1366_v57 = vadd.f32 %v1330_v47, %v7754_v40  ;;  %v6828_v40 = vld [vmem:[%s9428_s3 + $0x80] sm:$0xff] }
 0x146   : > { %2201 = vmatpush.bf16.msra.mxu2 %v6828_v40 }
 0x147   : > { %v1690_v35 = vadd.f32 %v7927_v19, %v1670_v31 }
 0x149   : > { %v1706_v45 = vmax.f32 %v1690_v35, 0.0  ;;  %v1585_v46 = vpop.f32.mrf.mxu2  ;;  %v1282_v27 = vpop.f32.mrf.mxu0 }
 0x14a   : > { %v1634_v38 = vpop.f32.mrf.mxu3  ;;  %v1331_v48 = vpop.f32.mrf.mxu1 }
 0x14b   : > { %v7092_v39 = vpack.c.bf16 %v1706_v45, %v1705_v36  ;;  %v1635_v53 = vadd.f32 %v1634_v38, %v1585_v46  ;;  %v1332_v58 = vadd.f32 %v1331_v48, %v1282_v27 }
 0x14d   : > { %7093 = vst [vmem:[#allocation2] sm:$0xff] %v7092_v39   ;;  %2019 = vmatmul.bf16.vlgmr.msra.gmra.mxu1 %v7092_v39  ;;  %v1671_v61 = vadd.f32 %v1635_v53, %v1366_v57  ;;  %v1367_v2 = vadd.f32 %v1332_v58, %v7760_v55 }
 0x14f   : > { %v1691_v13 = vadd.f32 %v7927_v19, %v1671_v61 }
 0x151   : > { %v1587_v62 = vpop.f32.mrf.mxu2  ;;  %v1285_v6 = vpop.f32.mrf.mxu0  ;;  %v1707_v18 = vmax.f32 %v1691_v13, 0.0 }
 0x152   : > { %v1636_v1 = vpop.f32.mrf.mxu3  ;;  %v1334_v7 = vpop.f32.mrf.mxu1 }
 0x153   : > { %v1637_v5 = vadd.f32 %v1636_v1, %v1587_v62  ;;  %v1335_v24 = vadd.f32 %v1334_v7, %v1285_v6 }
 0x154   : > { %v7234_v35 = vld [vmem:[#allocation2] sm:$0xf0]  ;;  %v7235_v36 = vld [vmem:[#allocation2] sm:$0xe] }
 0x155   : > { %v1672_v14 = vadd.f32 %v1637_v5, %v1367_v2  ;;  %v1368_v30 = vadd.f32 %v1335_v24, %v7766_v4  ;;  %v7236_v39 = vor.u32 %v7235_v36, %v7234_v35  ;;  %v2055_v13 = vld [vmem:[#allocation2 + $0x4] sm:$0xc] }
 0x157   : > { %v1692_v16 = vadd.f32 %v7927_v19, %v1672_v14  ;;  %v1839_v59 = vrot.slane %v7236_v39, 1 }
 0x159   : > { %v1708_v55 = vmax.f32 %v1692_v16, 0.0  ;;  %v1590_v21 = vpop.f32.mrf.mxu2  ;;  %v1287_v12 = vpop.f32.mrf.mxu0  ;;  %v2252_v16 = vld [vmem:[#allocation2 + $0x4] sm:$0x8] }
 0x15a   : > { %v1639_v22 = vpop.f32.mrf.mxu3  ;;  %v1336_v28 = vpop.f32.mrf.mxu1 }
 0x15b   : > { %v7097_v23 = vpack.c.bf16 %v1708_v55, %v1707_v18  ;;  %v1640_v29 = vadd.f32 %v1639_v22, %v1590_v21  ;;  %v1337_v31 = vadd.f32 %v1336_v28, %v1287_v12  ;;  %v2101_v21 = vunpack.c.l.b16 %v2055_v13 }
 0x15c   : > { %v2272_v22 = vunpack.c.l.b16 %v2252_v16 }
 0x15d   : > { %7213 = vst [vmem:[#allocation2 + $0x8] sm:$0xff] %v7097_v23   ;;  %v1673_v45 = vadd.f32 %v1640_v29, %v1368_v30  ;;  %v1369_v47 = vadd.f32 %v1337_v31, %v7772_v20 }
 0x15f   : > { %v1693_v53 = vadd.f32 %v7927_v19, %v1673_v45 }
 0x161   : > { %v1592_v46 = vpop.f32.mrf.mxu2  ;;  %v1290_v48 = vpop.f32.mrf.mxu0  ;;  %v1709_v61 = vmax.f32 %v1693_v53, 0.0 }
 0x162   : > { %v1641_v38 = vpop.f32.mrf.mxu3  ;;  %v1339_v51 = vpop.f32.mrf.mxu1 }
 0x163   : > { %v1642_v27 = vadd.f32 %v1641_v38, %v1592_v46  ;;  %v1340_v6 = vadd.f32 %v1339_v51, %v1290_v48 }
 0x164   : > { %v6800_v52 = vld [vmem:[#allocation2 + $0x8] sm:$0xff] }
 0x165   : > { %v1674_v57 = vadd.f32 %v1642_v27, %v1369_v47  ;;  %v1840_v58 = vrot.slane %v6800_v52, 1  ;;  %2024 = vmatmul.bf16.gmra.mxu1 %v6800_v52  ;;  %v2056_v20 = vld [vmem:[#allocation2 + $0x8] sm:$0xf]  ;;  %v1370_v18 = vadd.f32 %v1340_v6, %v7778_v34 }
 0x166   : > { %v2102_v15 = vunpack.c.l.b16 %v2056_v20 }
 0x167   : > { %v1694_v4 = vadd.f32 %v7927_v19, %v1674_v57  ;;  %v1841_v60 = vsel %vm541_vm0, %v1839_v59, %v1840_v58 }
 0x168   : > { %1917 = vmatmul.bf16.vlgmr.msra.gmra.mxu0 %v1841_v60  ;;  %v2116_v24 = vpack.c.b16 %v2102_v15, %v2101_v21  ;;  %v2274_v29 = vpack.c.b16 %v2102_v15, %v2272_v22 }
 0x169   : > { %v1710_v62 = vmax.f32 %v1694_v4, 0.0  ;;  %v1595_v1 = vpop.f32.mrf.mxu2  ;;  %v1292_v7 = vpop.f32.mrf.mxu0 }
 0x16a   : > { %v1644_v2 = vpop.f32.mrf.mxu3  ;;  %v1341_v40 = vpop.f32.mrf.mxu1  ;;  %v2124_v47 = vrot.slane %v2116_v24, 2  ;;  %v2276_v48 = vrot.slane %v2274_v29, 3 }
 0x16b   : > { %v7102_v5 = vpack.c.bf16 %v1710_v62, %v1709_v61  ;;  %v1645_v14 = vadd.f32 %v1644_v2, %v1595_v1  ;;  %v1342_v55 = vadd.f32 %v1341_v40, %v1292_v7  ;;  %v769_v62 = vadd.f32 %v7804_v0, %v7802_v63 }
 0x16d   : > { %7214 = vst [vmem:[#allocation2 + $0x10] sm:$0xff] %v7102_v5   ;;  %v1675_v23 = vadd.f32 %v1645_v14, %v1370_v18  ;;  %v1371_v30 = vadd.f32 %v1342_v55, %v7784_v50 }
 0x16f   : > { %v1695_v38 = vadd.f32 %v7927_v19, %v1675_v23 }
 0x171   : > { %v1597_v12 = vpop.f32.mrf.mxu2  ;;  %v1295_v35 = vpop.f32.mrf.mxu0  ;;  %v1711_v59 = vmax.f32 %v1695_v38, 0.0 }
 0x172   : > { %v1646_v28 = vpop.f32.mrf.mxu3  ;;  %v1344_v36 = vpop.f32.mrf.mxu1 }
 0x173   : > { %v1647_v31 = vadd.f32 %v1646_v28, %v1597_v12  ;;  %v1345_v2 = vadd.f32 %v1344_v36, %v1295_v35 }
 0x174   : > { %v6801_v45 = vld [vmem:[#allocation2 + $0x10] sm:$0xff] }
 0x175   : > { %v6822_v46 = vld [vmem:[#allocation2 + $0xc] sm:$0xff]  ;;  %v1676_v39 = vadd.f32 %v1647_v31, %v1371_v30  ;;  %v1842_v34 = vrot.slane %v6801_v45, 1  ;;  %2029 = vmatmul.bf16.gmra.mxu1 %v6801_v45  ;;  %v1372_v7 = vadd.f32 %v1345_v2, %v7806_v3 }
 0x176   : > { %v2125_v27 = vrot.slane %v6822_v46, 2  ;;  %v2277_v51 = vrot.slane %v6822_v46, 3  ;;  %v774_v46 = vadd.f32 %v7834_v33, %v7832_v32 }
 0x177   : > { %v1696_v52 = vadd.f32 %v7927_v19, %v1676_v39  ;;  %v1843_v53 = vsel %vm541_vm0, %v1840_v58, %v1842_v34  ;;  %v935_v58 = vadd.f32 %v7808_v9, %v769_v62 }
 0x178   : > { %v2126_v50 = vsel %vm1119_vm1, %v2124_v47, %v2125_v27  ;;  %v2278_v57 = vsel %vm1424_vm2, %v2276_v48, %v2277_v51  ;;  %1922 = vmatmul.bf16.gmra.mxu0 %v1843_v53 }
 0x179   : > { %v1712_v4 = vmax.f32 %v1696_v52, 0.0  ;;  %2202 = vmatmul.bf16.vlgmr.msra.gmra.mxu2 %v2126_v50  ;;  %v1600_v60 = vpop.f32.mrf.mxu2  ;;  %2354 = vmatmul.bf16.vlgmr.msra.gmra.mxu3 %v2278_v57  ;;  %v1297_v20 = vpop.f32.mrf.mxu0  ;;  %v984_v13 = vadd.f32 %v7810_v10, %v935_v58 }
 0x17a   : > { %v1649_v61 = vpop.f32.mrf.mxu3  ;;  %v1346_v5 = vpop.f32.mrf.mxu1 }
 0x17b   : > { %v7107_v1 = vpack.c.bf16 %v1712_v4, %v1711_v59  ;;  %v1650_v6 = vadd.f32 %v1649_v61, %v1600_v60  ;;  %v1347_v40 = vadd.f32 %v1346_v5, %v1297_v20 }
 0x17d   : > { %7215 = vst [vmem:[#allocation2 + $0x18] sm:$0xff] %v7107_v1   ;;  %v1677_v14 = vadd.f32 %v1650_v6, %v1372_v7  ;;  %v1373_v18 = vadd.f32 %v1347_v40, %v984_v13 }
 0x17f   : > { %v1697_v23 = vadd.f32 %v7927_v19, %v1677_v14 }
 0x181   : > { %v1602_v15 = vpop.f32.mrf.mxu2  ;;  %v1300_v21 = vpop.f32.mrf.mxu0  ;;  %v1713_v31 = vmax.f32 %v1697_v23, 0.0 }
 0x182   : > { %v1651_v16 = vpop.f32.mrf.mxu3  ;;  %v1349_v63 = vpop.f32.mrf.mxu1 }
 0x183   : > { %v1652_v55 = vadd.f32 %v1651_v16, %v1602_v15  ;;  %v1350_v39 = vadd.f32 %v1349_v63, %v1300_v21  ;;  %v779_v15 = vadd.f32 %v7865_v11, %v7863_v8 }
 0x184   : > { %v6802_v0 = vld [vmem:[#allocation2 + $0x18] sm:$0xff] }
 0x185   : > { %v6823_v22 = vld [vmem:[#allocation2 + $0x14] sm:$0xff]  ;;  %v1678_v24 = vadd.f32 %v1652_v55, %v1373_v18  ;;  %v1844_v9 = vrot.slane %v6802_v0, 1  ;;  %2034 = vmatmul.bf16.gmra.mxu1 %v6802_v0  ;;  %v945_v63 = vadd.f32 %v7875_v25, %v779_v15 }
 0x186   : > { %v2127_v12 = vrot.slane %v6823_v22, 2  ;;  %v2279_v28 = vrot.slane %v6823_v22, 3 }
 0x187   : > { %v1698_v3 = vadd.f32 %v7927_v19, %v1678_v24  ;;  %v1845_v10 = vsel %vm541_vm0, %v1842_v34, %v1844_v9  ;;  %v940_v34 = vadd.f32 %v7838_v43, %v774_v46  ;;  %v994_v24 = vadd.f32 %v7877_v26, %v945_v63 }
 0x188   : > { %v2128_v29 = vsel %vm1119_vm1, %v2125_v27, %v2127_v12  ;;  %v2280_v30 = vsel %vm1424_vm2, %v2277_v51, %v2279_v28  ;;  %1927 = vmatmul.bf16.gmra.mxu0 %v1845_v10  ;;  %v1374_v51 = vadd.f32 %v1350_v39, %v7836_v37 }
 0x189   : > { %v1714_v35 = vmax.f32 %v1698_v3, 0.0  ;;  %2207 = vmatmul.bf16.gmra.mxu2 %v2128_v29  ;;  %v1605_v36 = vpop.f32.mrf.mxu2  ;;  %2359 = vmatmul.bf16.gmra.mxu3 %v2280_v30  ;;  %v1302_v47 = vpop.f32.mrf.mxu0  ;;  %v989_v53 = vadd.f32 %v7840_v44, %v940_v34 }
 0x18a   : > { %v1654_v45 = vpop.f32.mrf.mxu3  ;;  %v1351_v48 = vpop.f32.mrf.mxu1 }
 0x18b   : > { %v7112_v38 = vpack.c.bf16 %v1714_v35, %v1713_v31  ;;  %v1655_v27 = vadd.f32 %v1654_v45, %v1605_v36  ;;  %v1352_v52 = vadd.f32 %v1351_v48, %v1302_v47 }
 0x18d   : > { %7216 = vst [vmem:[#allocation2 + $0x20] sm:$0xff] %v7112_v38   ;;  %v1679_v50 = vadd.f32 %v1655_v27, %v1374_v51  ;;  %v1375_v4 = vadd.f32 %v1352_v52, %v989_v53  ;;  %v784_v27 = vadd.f32 %v7891_v42, %v7889_v41 }
 0x18f   : > { %v1699_v1 = vadd.f32 %v7927_v19, %v1679_v50 }
 0x191   : > { %v1607_v57 = vpop.f32.mrf.mxu2  ;;  %v1305_v61 = vpop.f32.mrf.mxu0  ;;  %v1715_v7 = vmax.f32 %v1699_v1, 0.0 }
 0x192   : > { %v1656_v59 = vpop.f32.mrf.mxu3  ;;  %v1354_v32 = vpop.f32.mrf.mxu1 }
 0x193   : > { %v1657_v60 = vadd.f32 %v1656_v59, %v1607_v57  ;;  %v1355_v18 = vadd.f32 %v1354_v32, %v1305_v61  ;;  %v6863_v57 = vld [vmem:[%s9430_s5 + $0x78] sm:$0xff]  ;;  %v950_v59 = vadd.f32 %v7904_v54, %v784_v27  ;;  %v6848_v27 = vld [vmem:[%s9430_s5] sm:$0xff] }
 0x194   : > { %v6803_v33 = vld [vmem:[#allocation2 + $0x20] sm:$0xff]  ;;  %2600 = vmatpush.bf16.msrb.mxu0 %v6863_v57  ;;  %v6869_v57 = vld [vmem:[%s9430_s5 + $0xa8] sm:$0xff] }
 0x195   : > { %v6824_v62 = vld [vmem:[#allocation2 + $0x1c] sm:$0xff]  ;;  %v1680_v2 = vadd.f32 %v1657_v60, %v1375_v4  ;;  %v1846_v43 = vrot.slane %v6803_v33, 1  ;;  %2039 = vmatmul.bf16.gmra.mxu1 %v6803_v33  ;;  %v1376_v22 = vadd.f32 %v1355_v18, %v7867_v17  ;;  %v999_v32 = vadd.f32 %v7906_v56, %v950_v59 }
 0x196   : > { %v2129_v20 = vrot.slane %v6824_v62, 2  ;;  %v2281_v5 = vrot.slane %v6824_v62, 3 }
 0x197   : > { %v1700_v37 = vadd.f32 %v7927_v19, %v1680_v2  ;;  %v1847_v44 = vsel %vm541_vm0, %v1844_v9, %v1846_v43 }
 0x198   : > { %v2130_v58 = vsel %vm1119_vm1, %v2127_v12, %v2129_v20  ;;  %v2282_v6 = vsel %vm1424_vm2, %v2279_v28, %v2281_v5  ;;  %1932 = vmatmul.bf16.gmra.mxu0 %v1847_v44 }
 0x199   : > { %v1716_v40 = vmax.f32 %v1700_v37, 0.0  ;;  %2212 = vmatmul.bf16.gmra.mxu2 %v2130_v58  ;;  %v1610_v13 = vpop.f32.mrf.mxu2  ;;  %2364 = vmatmul.bf16.gmra.mxu3 %v2282_v6  ;;  %v1307_v55 = vpop.f32.mrf.mxu0 }
 0x19a   : > { %v1659_v14 = vpop.f32.mrf.mxu3  ;;  %v1356_v21 = vpop.f32.mrf.mxu1 }
 0x19b   : > { %v7117_v16 = vpack.c.bf16 %v1716_v40, %v1715_v7  ;;  %v1660_v0 = vadd.f32 %v1659_v14, %v1610_v13  ;;  %v1357_v23 = vadd.f32 %v1356_v21, %v1307_v55  ;;  %v6862_v14 = vld [vmem:[%s9430_s5 + $0x70] sm:$0xff] }
 0x19c   : > { %2601 = vmatpush.bf16.msrb.mxu0 %v6862_v14 }
 0x19d   : > { %7217 = vst [vmem:[#allocation2 + $0x28] sm:$0xff] %v7117_v16   ;;  %v1681_v9 = vadd.f32 %v1660_v0, %v1376_v22  ;;  %v1377_v3 = vadd.f32 %v1357_v23, %v994_v24 }
 0x19f   : > { %v1701_v31 = vadd.f32 %v7927_v19, %v1681_v9 }
 0x1a1   : > { %v1612_v12 = vpop.f32.mrf.mxu2  ;;  %v1310_v29 = vpop.f32.mrf.mxu0  ;;  %v1717_v39 = vmax.f32 %v1701_v31, 0.0 }
 0x1a2   : > { %v1661_v28 = vpop.f32.mrf.mxu3  ;;  %v1359_v8 = vpop.f32.mrf.mxu1 }
 0x1a3   : > { %v1662_v10 = vadd.f32 %v1661_v28, %v1612_v12  ;;  %v1360_v52 = vadd.f32 %v1359_v8, %v1310_v29  ;;  %v6861_v8 = vld [vmem:[%s9430_s5 + $0x68] sm:$0xff] }
 0x1a4   : > { %v6804_v11 = vld [vmem:[#allocation2 + $0x28] sm:$0xff]  ;;  %2602 = vmatpush.bf16.msrb.mxu0 %v6861_v8 }
 0x1a5   : > { %v6825_v30 = vld [vmem:[#allocation2 + $0x24] sm:$0xff]  ;;  %v1682_v35 = vadd.f32 %v1662_v10, %v1377_v3  ;;  %v1848_v25 = vrot.slane %v6804_v11, 1  ;;  %2044 = vmatmul.bf16.gmra.mxu1 %v6804_v11  ;;  %v1378_v60 = vadd.f32 %v1360_v52, %v7893_v49  ;;  %v6855_v3 = vld [vmem:[%s9430_s5 + $0x38] sm:$0xff]  ;;  %v6854_v11 = vld [vmem:[%s9430_s5 + $0x30] sm:$0xff] }
 0x1a6   : > { %v2131_v36 = vrot.slane %v6825_v30, 2  ;;  %v2283_v45 = vrot.slane %v6825_v30, 3  ;;  %2690 = vmatpush.bf16.msrb.mxu1 %v6855_v3  ;;  %v6870_v52 = vld [vmem:[%s9430_s5 + $0xb0] sm:$0xff] }
 0x1a7   : > { %v1702_v17 = vadd.f32 %v7927_v19, %v1682_v35  ;;  %v1849_v26 = vsel %vm541_vm0, %v1846_v43, %v1848_v25  ;;  %v6853_v35 = vld [vmem:[%s9430_s5 + $0x28] sm:$0xff] }
 0x1a8   : > { %v2132_v46 = vsel %vm1119_vm1, %v2129_v20, %v2131_v36  ;;  %v2284_v38 = vsel %vm1424_vm2, %v2281_v5, %v2283_v45  ;;  %1937 = vmatmul.bf16.gmra.mxu0 %v1849_v26 }
 0x1a9   : > { %v1718_v47 = vmax.f32 %v1702_v17, 0.0  ;;  %2217 = vmatmul.bf16.gmra.mxu2 %v2132_v46  ;;  %v1615_v48 = vpop.f32.mrf.mxu2  ;;  %2369 = vmatmul.bf16.gmra.mxu3 %v2284_v38  ;;  %v1312_v53 = vpop.f32.mrf.mxu0  ;;  %v6851_v17 = vld [vmem:[%s9430_s5 + $0x18] sm:$0xff]  ;;  %v6860_v46 = vld [vmem:[%s9430_s5 + $0x60] sm:$0xff]  ;;  %v6850_v38 = vld [vmem:[%s9430_s5 + $0x10] sm:$0xff] }
 0x1aa   : > { %v1664_v34 = vpop.f32.mrf.mxu3  ;;  %v1361_v50 = vpop.f32.mrf.mxu1  ;;  %2691 = vmatpush.bf16.msrb.mxu1 %v6854_v11  ;;  %2603 = vmatpush.bf16.msrb.mxu0 %v6860_v46  ;;  %v6873_v11 = vld [vmem:[%s9430_s5 + $0xc8] sm:$0xff] }
 0x1ab   : > { %v7122_v51 = vpack.c.bf16 %v1718_v47, %v1717_v39  ;;  %v1665_v4 = vadd.f32 %v1664_v34, %v1615_v48  ;;  %v1362_v61 = vadd.f32 %v1361_v50, %v1312_v53  ;;  %v6849_v47 = vld [vmem:[%s9430_s5 + $0x8] sm:$0xff]  ;;  %v6871_v34 = vld [vmem:[%s9430_s5 + $0xb8] sm:$0xff] }
 0x1ac   : > { %2812 = vmatpush.bf16.msrb.mxu2 %v6871_v34  ;;  %v6859_v50 = vld [vmem:[%s9430_s5 + $0x58] sm:$0xff] }
 0x1ad   : > { %7218 = vst [vmem:[#allocation2 + $0x30] sm:$0xff] %v7122_v51   ;;  %v1683_v33 = vadd.f32 %v1665_v4, %v1378_v60  ;;  %v1379_v62 = vadd.f32 %v1362_v61, %v999_v32  ;;  %v6868_v4 = vld [vmem:[%s9430_s5 + $0xa0] sm:$0xff]  ;;  %v6867_v60 = vld [vmem:[%s9430_s5 + $0x98] sm:$0xff] }
 0x1ae   : > { %2692 = vmatpush.bf16.msrb.mxu1 %v6853_v35  ;;  %2604 = vmatpush.bf16.msrb.mxu0 %v6859_v50  ;;  %v6879_v61 = vld [vmem:[%s9430_s5 + $0xf8] sm:$0xff] }
 0x1af   : > { %v1703_v20 = vadd.f32 %v7927_v19, %v1683_v33  ;;  %2975 = vmatpush.bf16.msrb.mxu3 %v6879_v61 }
 0x1b0   : > { %2813 = vmatpush.bf16.msrb.mxu2 %v6870_v52 }
 0x1b1   : > { %v1617_v41 = vpop.f32.mrf.mxu2  ;;  %v1719_v7 = vmax.f32 %v1703_v20, 0.0  ;;  %v6878_v20 = vld [vmem:[%s9430_s5 + $0xf0] sm:$0xff] }
 0x1b2   : > { %v1666_v42 = vpop.f32.mrf.mxu3 }
 0x1b3   : > { %v1667_v1 = vadd.f32 %v1666_v42, %v1617_v41  ;;  %2976 = vmatpush.bf16.msrb.mxu3 %v6878_v20 }
 0x1b4   : > { %v6805_v2 = vld [vmem:[#allocation2 + $0x30] sm:$0xff]  ;;  %2814 = vmatpush.bf16.msrb.mxu2 %v6869_v57 }
 0x1b5   : > { %v6826_v43 = vld [vmem:[#allocation2 + $0x2c] sm:$0xff]  ;;  %v1684_v5 = vadd.f32 %v1667_v1, %v1379_v62  ;;  %v1850_v37 = vrot.slane %v6805_v2, 1  ;;  %2049 = vmatmul.bf16.gmra.mxu1 %v6805_v2 }
 0x1b6   : > { %v2133_v54 = vrot.slane %v6826_v43, 2  ;;  %v2285_v44 = vrot.slane %v6826_v43, 3  ;;  %v6858_v2 = vld [vmem:[%s9430_s5 + $0x50] sm:$0xff] }
 0x1b7   : > { %v1704_v58 = vadd.f32 %v7927_v19, %v1684_v5  ;;  %v1851_v49 = vsel %vm541_vm0, %v1848_v25, %v1850_v37  ;;  %v6866_v43 = vld [vmem:[%s9430_s5 + $0x90] sm:$0xff]  ;;  %2605 = vmatpush.bf16.msrb.mxu0 %v6858_v2  ;;  %v8083_v5 = vld [vmem:[%s9429_s4] ss:$0 sm:$0xff] }
 0x1b8   : > { %v2134_v56 = vsel %vm1119_vm1, %v2131_v36, %v2133_v54  ;;  %v2286_v6 = vsel %vm1424_vm2, %v2283_v45, %v2285_v44  ;;  %1942 = vmatmul.bf16.gmra.mxu0 %v1851_v49  ;;  %v6852_v45 = vld [vmem:[%s9430_s5 + $0x20] sm:$0xff]  ;;  %2815 = vmatpush.bf16.msrb.mxu2 %v6868_v4  ;;  %v6877_v49 = vld [vmem:[%s9430_s5 + $0xe8] sm:$0xff] }
 0x1b9   : > { %v1720_v40 = vmax.f32 %v1704_v58, 0.0  ;;  %2222 = vmatmul.bf16.gmra.mxu2 %v2134_v56  ;;  %2374 = vmatmul.bf16.gmra.mxu3 %v2286_v6  ;;  %v6865_v58 = vld [vmem:[%s9430_s5 + $0x88] sm:$0xff] }
 0x1ba   : > { %2693 = vmatpush.bf16.msrb.mxu1 %v6852_v45  ;;  %2977 = vmatpush.bf16.msrb.mxu3 %v6877_v49  ;;  %v6872_v45 = vld [vmem:[%s9430_s5 + $0xc0] sm:$0xff]  ;;  %v6895_v49 = vld [vmem:[%s9430_s5 + $0x178] sm:$0xff] }
 0x1bb   : > { %v7127_v13 = vpack.c.bf16 %v1720_v40, %v1719_v7 }
 0x1bc   : > { %2816 = vmatpush.bf16.msrb.mxu2 %v6867_v60 }
 0x1bd   : > { %7219 = vst [vmem:[#allocation2 + $0x38] sm:$0xff] %v7127_v13  }
 0x1be   : > { %2694 = vmatpush.bf16.msrb.mxu1 %v6851_v17 }
 0x1c0   : > { %2817 = vmatpush.bf16.msrb.mxu2 %v6866_v43 }
 0x1c2   : > { %2695 = vmatpush.bf16.msrb.mxu1 %v6850_v38 }
 0x1c4   : > { %v6827_v15 = vld [vmem:[#allocation2 + $0x34] sm:$0xff]  ;;  %v2069_v23 = vld [vmem:[#allocation2 + $0x3c] sm:$0x3]  ;;  %2818 = vmatpush.bf16.msrb.mxu2 %v6865_v58 }
 0x1c5   : > { %v1784_v16 = vld [vmem:[#allocation2 + $0x38] sm:$0x1]  ;;  %v2135_v18 = vrot.slane %v6827_v15, 2  ;;  %v2287_v55 = vrot.slane %v6827_v15, 3  ;;  %v2253_v24 = vld [vmem:[#allocation2 + $0x3c] sm:$0x7]  ;;  %v2115_v12 = vunpack.c.l.b16 %v2069_v23 }
 0x1c6   : > { %v1830_v19 = vunpack.c.l.b16 %v1784_v16  ;;  %v2273_v28 = vunpack.c.l.b16 %v2253_v24  ;;  %2696 = vmatpush.bf16.msrb.mxu1 %v6849_v47  ;;  %v6856_v15 = vld [vmem:[%s9430_s5 + $0x40] sm:$0xff] }
 0x1c7   : > { %v2136_v63 = vsel %vm1119_vm1, %v2133_v54, %v2135_v18  ;;  %v2288_v0 = vsel %vm1424_vm2, %v2285_v44, %v2287_v55  ;;  %v2123_v10 = vpack.c.b16 %v2115_v12, %v2115_v12  ;;  %v6857_v44 = vld [vmem:[%s9430_s5 + $0x48] sm:$0xff]  ;;  %v6864_v16 = vld [vmem:[%s9430_s5 + $0x80] sm:$0xff] }
 0x1c8   : > { %v1838_v21 = vpack.c.b16 %v1830_v19, %v1830_v19  ;;  %v2275_v29 = vpack.c.b16 %v2273_v28, %v2273_v28  ;;  %2606 = vmatpush.bf16.msrb.mxu0 %v6857_v44  ;;  %v6876_v19 = vld [vmem:[%s9430_s5 + $0xe0] sm:$0xff]  ;;  %2819 = vmatpush.bf16.msrb.mxu2 %v6864_v16  ;;  %v6874_v28 = vld [vmem:[%s9430_s5 + $0xd0] sm:$0xff] }
 0x1c9   : > { %2227 = vmatmul.bf16.gmra.mxu2 %v2136_v63  ;;  %2379 = vmatmul.bf16.gmra.mxu3 %v2288_v0  ;;  %v2137_v30 = vrot.slane %v2123_v10, 2  ;;  %v6875_v0 = vld [vmem:[%s9430_s5 + $0xd8] sm:$0xff] }
 0x1ca   : > { %v1852_v22 = vrot.slane %v1838_v21, 1  ;;  %v2289_v31 = vrot.slane %v2275_v29, 3  ;;  %v2020_v26 = vpop.f32.mrf.mxu1  ;;  %2697 = vmatpush.bf16.msrb.mxu1 %v6848_v27  ;;  %2978 = vmatpush.bf16.msrb.mxu3 %v6876_v19 }
 0x1cb   : > { %v2138_v25 = vsel %vm1119_vm1, %v2135_v18, %v2137_v30 }
 0x1cc   : > { %v1853_v9 = vsel %vm541_vm0, %v1850_v37, %v1852_v22  ;;  %v2290_v36 = vsel %vm1424_vm2, %v2287_v55, %v2289_v31  ;;  %2607 = vmatpush.bf16.msrb.mxu0 %v6856_v15  ;;  %v6894_v15 = vld [vmem:[%s9430_s5 + $0x170] sm:$0xff] }
 0x1cd   : > { %1947 = vmatmul.bf16.gmra.mxu0 %v1853_v9 }
 0x1ce   : > { %2979 = vmatpush.bf16.msrb.mxu3 %v6875_v0  ;;  %3228 = vmatpush.bf16.msra.mxu1 %v6895_v49  ;;  %v6907_v49 = vld [vmem:[%s9430_s5 + $0x1b0] sm:$0xff] }
 0x1d2   : > { %v2022_v48 = vpop.f32.mrf.mxu1  ;;  %2980 = vmatpush.bf16.msrb.mxu3 %v6874_v28  ;;  %3229 = vmatpush.bf16.msra.mxu1 %v6894_v15  ;;  %v6888_v15 = vld [vmem:[%s9430_s5 + $0x140] sm:$0xff] }
 0x1d6   : > { %2981 = vmatpush.bf16.msrb.mxu3 %v6873_v11 }
 0x1d9   : > { %2232 = vmatmul.bf16.gmra.mxu2 %v2138_v25  ;;  %2384 = vmatmul.bf16.gmra.mxu3 %v2290_v36 }
 0x1da   : > { %2982 = vmatpush.bf16.msrb.mxu3 %v6872_v45 }
 0x1e2   : > { %v2025_v53 = vpop.f32.mrf.mxu1 }
 0x1e5   : > { %v1918_v39 = vpop.f32.mrf.mxu0 }
 0x1e6   : > { %v2021_v33 = vadd.f32 %v2020_v26, %v1918_v39 }
 0x1ea   : > { %v2027_v41 = vpop.f32.mrf.mxu1 }
 0x1ed   : > { %v1920_v51 = vpop.f32.mrf.mxu0 }
 0x1ee   : > { %v2023_v37 = vadd.f32 %v2022_v48, %v1920_v51 }
 0x1f2   : > { %v2030_v40 = vpop.f32.mrf.mxu1 }
 0x1f5   : > { %v1923_v59 = vpop.f32.mrf.mxu0 }
 0x1f6   : > { %v2026_v23 = vadd.f32 %v2025_v53, %v1923_v59 }
 0x1fa   : > { %v2032_v3 = vpop.f32.mrf.mxu1 }
 0x1fc   : > { %v2203_v32 = vpop.f32.mrf.mxu2  ;;  %v2355_v42 = vpop.f32.mrf.mxu3 }
 0x1fd   : > { %v1925_v62 = vpop.f32.mrf.mxu0  ;;  %v2238_v1 = vadd.f32 %v2203_v32, %v2021_v33 }
 0x1fe   : > { %v2028_v29 = vadd.f32 %v2027_v41, %v1925_v62 }
 0x1ff   : > { %v2390_v54 = vadd.f32 %v2355_v42, %v2238_v1 }
 0x201   : > { %v2408_v13 = vadd.f32 %v8083_v5, %v2390_v54 }
 0x202   : > { %v2035_v26 = vpop.f32.mrf.mxu1 }
 0x203   : > { %v2422_v21 = vmax.f32 %v2408_v13, 0.0 }
 0x204   : > { %v2205_v56 = vpop.f32.mrf.mxu2  ;;  %v2357_v7 = vpop.f32.mrf.mxu3 }
 0x205   : > { %v2239_v6 = vadd.f32 %v2205_v56, %v2023_v37  ;;  %v1928_v18 = vpop.f32.mrf.mxu0 }
 0x206   : > { %v2031_v48 = vadd.f32 %v2030_v40, %v1928_v18 }
 0x207   : > { %v2391_v14 = vadd.f32 %v2357_v7, %v2239_v6 }
 0x209   : > { %v2409_v55 = vadd.f32 %v8083_v5, %v2391_v14 }
 0x20a   : > { %v2037_v41 = vpop.f32.mrf.mxu1 }
 0x20b   : > { %v2423_v63 = vmax.f32 %v2409_v55, 0.0 }
 0x20c   : > { %v2208_v22 = vpop.f32.mrf.mxu2  ;;  %v2360_v9 = vpop.f32.mrf.mxu3 }
 0x20d   : > { %v7136_v24 = vpack.c.bf16 %v2423_v63, %v2422_v21  ;;  %v2240_v12 = vadd.f32 %v2208_v22, %v2026_v23  ;;  %v1930_v10 = vpop.f32.mrf.mxu0  ;;  %v6887_v23 = vld [vmem:[%s9430_s5 + $0x138] sm:$0xff] }
 0x20e   : > { %v2033_v4 = vadd.f32 %v2032_v3, %v1930_v10  ;;  %3107 = vmatpush.bf16.msra.mxu0 %v6887_v23 }
 0x20f   : > { %7137 = vst [vmem:[#allocation3] sm:$0xff] %v7136_v24   ;;  %2698 = vmatmul.bf16.vlgmr.msrb.gmra.mxu1 %v7136_v24  ;;  %v2392_v8 = vadd.f32 %v2360_v9, %v2240_v12  ;;  %v7171_v59 = vunpack.c.h.b16 %v7136_v24  ;;  %v6893_v9 = vld [vmem:[%s9430_s5 + $0x168] sm:$0xff] }
 0x210   : > { %3230 = vmatpush.bf16.msra.mxu1 %v6893_v9 }
 0x211   : > { %v2410_v25 = vadd.f32 %v8083_v5, %v2392_v8  ;;  %v6886_v8 = vld [vmem:[%s9430_s5 + $0x130] sm:$0xff] }
 0x212   : > { %v2040_v63 = vpop.f32.mrf.mxu1  ;;  %3108 = vmatpush.bf16.msra.mxu0 %v6886_v8 }
 0x213   : > { %v2424_v46 = vmax.f32 %v2410_v25, 0.0 }
 0x214   : > { %v2210_v30 = vpop.f32.mrf.mxu2  ;;  %v2362_v35 = vpop.f32.mrf.mxu3 }
 0x215   : > { %v2241_v31 = vadd.f32 %v2210_v30, %v2028_v29  ;;  %v1933_v39 = vpop.f32.mrf.mxu0 }
 0x216   : > { %v2490_v27 = vld [vmem:[#allocation3] sm:$0xe]  ;;  %v2036_v16 = vadd.f32 %v2035_v26, %v1933_v39  ;;  %v2856_v55 = vld [vmem:[#allocation3 + $0x4] sm:$0xc] }
 0x217   : > { %v2393_v36 = vadd.f32 %v2362_v35, %v2241_v31  ;;  %v2724_v51 = vld [vmem:[#allocation3] sm:$0xc]  ;;  %v2519_v50 = vunpack.c.l.b16 %v2490_v27  ;;  %v3019_v21 = vld [vmem:[#allocation3 + $0x4] sm:$0x8]  ;;  %v2894_v12 = vunpack.c.l.b16 %v2856_v55  ;;  %v6891_v27 = vld [vmem:[%s9430_s5 + $0x158] sm:$0xff] }
 0x218   : > { %v2744_v57 = vunpack.c.l.b16 %v2724_v51  ;;  %v3039_v28 = vunpack.c.l.b16 %v3019_v21  ;;  %v6892_v31 = vld [vmem:[%s9430_s5 + $0x160] sm:$0xff] }
 0x219   : > { %v2411_v17 = vadd.f32 %v8083_v5, %v2393_v36  ;;  %v2530_v61 = vpack.c.b16 %v7171_v59, %v2519_v50  ;;  %3231 = vmatpush.bf16.msra.mxu1 %v6892_v31 }
 0x21a   : > { %v2746_v32 = vpack.c.b16 %v7171_v59, %v2744_v57 }
 0x21b   : > { %v2425_v38 = vmax.f32 %v2411_v17, 0.0  ;;  %v2536_v37 = vrot.slane %v2530_v61, 1 }
 0x21c   : > { %v2213_v47 = vpop.f32.mrf.mxu2  ;;  %v2365_v52 = vpop.f32.mrf.mxu3  ;;  %v2748_v54 = vrot.slane %v2746_v32, 2 }
 0x21d   : > { %v8119_v34 = vpack.c.bf16 %v2425_v38, %v2424_v46  ;;  %v2242_v53 = vadd.f32 %v2213_v47, %v2031_v48  ;;  %v1935_v1 = vpop.f32.mrf.mxu0  ;;  %3232 = vmatpush.bf16.msra.mxu1 %v6891_v27 }
 0x21e   : > { %v2038_v3 = vadd.f32 %v2037_v41, %v1935_v1  ;;  %v6890_v41 = vld [vmem:[%s9430_s5 + $0x150] sm:$0xff] }
 0x21f   : > { %7220 = vst [vmem:[#allocation3 + $0x8] sm:$0xff] %v8119_v34   ;;  %v2394_v60 = vadd.f32 %v2365_v52, %v2242_v53  ;;  %v7174_v22 = vunpack.c.l.b16 %v8119_v34  ;;  %v2042_v52 = vpop.f32.mrf.mxu1 }
 0x221   : > { %v2412_v43 = vadd.f32 %v8083_v5, %v2394_v60  ;;  %v2905_v29 = vpack.c.b16 %v7174_v22, %v2894_v12  ;;  %v3041_v11 = vpack.c.b16 %v7174_v22, %v3039_v28  ;;  %3233 = vmatpush.bf16.msra.mxu1 %v6890_v41  ;;  %v6881_v41 = vld [vmem:[%s9430_s5 + $0x108] sm:$0xff] }
 0x223   : > { %v2426_v40 = vmax.f32 %v2412_v43, 0.0  ;;  %v2911_v46 = vrot.slane %v2905_v29, 2  ;;  %v3043_v38 = vrot.slane %v3041_v11, 3 }
 0x224   : > { %v2215_v33 = vpop.f32.mrf.mxu2  ;;  %v2367_v62 = vpop.f32.mrf.mxu3 }
 0x225   : > { %v2243_v42 = vadd.f32 %v2215_v33, %v2033_v4  ;;  %v1938_v24 = vpop.f32.mrf.mxu0 }
 0x226   : > { %v8122_v2 = vld [vmem:[#allocation3 + $0x8] sm:$0xff] }
 0x227   : > { %v2395_v20 = vadd.f32 %v2367_v62, %v2243_v42  ;;  %v2537_v44 = vrot.slane %v8122_v2, 1  ;;  %2703 = vmatmul.bf16.gmra.mxu1 %v8122_v2  ;;  %v2749_v58 = vrot.slane %v8122_v2, 2  ;;  %v2041_v42 = vadd.f32 %v2040_v63, %v1938_v24  ;;  %v6908_v2 = vld [vmem:[%s9430_s5 + $0x1b8] sm:$0xff] }
 0x228   : > { %3376 = vmatpush.bf16.msra.mxu2 %v6908_v2  ;;  %v6902_v2 = vld [vmem:[%s9430_s5 + $0x188] sm:$0xff] }
 0x229   : > { %v2413_v56 = vadd.f32 %v8083_v5, %v2395_v20  ;;  %v2538_v6 = vsel %vm541_vm0, %v2536_v37, %v2537_v44  ;;  %v2750_v7 = vsel %vm1119_vm1, %v2748_v54, %v2749_v58  ;;  %v6885_v37 = vld [vmem:[%s9430_s5 + $0x128] sm:$0xff] }
 0x22a   : > { %2608 = vmatmul.bf16.vlgmr.msrb.gmra.mxu0 %v2538_v6  ;;  %2820 = vmatmul.bf16.vlgmr.msrb.gmra.mxu2 %v2750_v7  ;;  %v6889_v54 = vld [vmem:[%s9430_s5 + $0x148] sm:$0xff] }
 0x22b   : > { %v2427_v13 = vmax.f32 %v2413_v56, 0.0  ;;  %3109 = vmatpush.bf16.msra.mxu0 %v6885_v37  ;;  %3234 = vmatpush.bf16.msra.mxu1 %v6889_v54  ;;  %v2045_v56 = vpop.f32.mrf.mxu1 }
 0x22c   : > { %v2218_v14 = vpop.f32.mrf.mxu2  ;;  %v2370_v18 = vpop.f32.mrf.mxu3  ;;  %3377 = vmatpush.bf16.msra.mxu2 %v6907_v49 }
 0x22d   : > { %v8137_v19 = vpack.c.bf16 %v2427_v13, %v2426_v40  ;;  %v2244_v0 = vadd.f32 %v2218_v14, %v2036_v16  ;;  %v1940_v50 = vpop.f32.mrf.mxu0 }
 0x22e   : > { %v2043_v6 = vadd.f32 %v2042_v52, %v1940_v50 }
 0x22f   : > { %7221 = vst [vmem:[#allocation3 + $0x10] sm:$0xff] %v8137_v19   ;;  %v2396_v10 = vadd.f32 %v2370_v18, %v2244_v0  ;;  %3235 = vmatpush.bf16.msra.mxu1 %v6888_v15  ;;  %v6906_v0 = vld [vmem:[%s9430_s5 + $0x1a8] sm:$0xff]  ;;  %v6880_v15 = vld [vmem:[%s9430_s5 + $0x100] sm:$0xff] }
 0x230   : > { %3378 = vmatpush.bf16.msra.mxu2 %v6906_v0 }
 0x231   : > { %v2414_v17 = vadd.f32 %v8083_v5, %v2396_v10 }
 0x233   : > { %v2428_v61 = vmax.f32 %v2414_v17, 0.0  ;;  %v2047_v27 = vpop.f32.mrf.mxu1 }
 0x234   : > { %v2220_v30 = vpop.f32.mrf.mxu2  ;;  %v2372_v25 = vpop.f32.mrf.mxu3 }
 0x235   : > { %v2245_v35 = vadd.f32 %v2220_v30, %v2038_v3  ;;  %v1943_v13 = vpop.f32.mrf.mxu0 }
 0x236   : > { %v8153_v36 = vld [vmem:[#allocation3 + $0x10] sm:$0xff] }
 0x237   : > { %v8155_v45 = vld [vmem:[#allocation3 + $0xc] sm:$0xff]   ;;  %v2397_v26 = vadd.f32 %v2372_v25, %v2245_v35  ;;  %2708 = vmatmul.bf16.gmra.mxu1 %v8153_v36  ;;  %v2539_v39 = vrot.slane %v8153_v36, 1  ;;  %v2751_v47 = vrot.slane %v8153_v36, 2  ;;  %v6884_v35 = vld [vmem:[%s9430_s5 + $0x120] sm:$0xff] }
 0x238   : > { %v2912_v48 = vrot.slane %v8155_v45, 2  ;;  %v3044_v51 = vrot.slane %v8155_v45, 3  ;;  %v8189_v43 = vld [vmem:[#allocation3 + $0x10] sm:$0xf]  ;;  %v6905_v25 = vld [vmem:[%s9430_s5 + $0x1a0] sm:$0xff]  ;;  %3110 = vmatpush.bf16.msra.mxu0 %v6884_v35  ;;  %v6883_v45 = vld [vmem:[%s9430_s5 + $0x118] sm:$0xff] }
 0x239   : > { %v2415_v53 = vadd.f32 %v8083_v5, %v2397_v26  ;;  %v2540_v57 = vsel %vm541_vm0, %v2537_v44, %v2539_v39  ;;  %v2752_v59 = vsel %vm1119_vm1, %v2749_v58, %v2751_v47  ;;  %v3583_v44 = vld [vmem:[#allocation3 + $0xc] sm:$0xc]  ;;  %v3459_v58 = vunpack.c.l.b16 %v8189_v43  ;;  %3379 = vmatpush.bf16.msra.mxu2 %v6905_v25 }
 0x23a   : > { %v2913_v4 = vsel %vm1119_vm1, %v2911_v46, %v2912_v48  ;;  %v8179_v60 = vsel %vm1424_vm2, %v3043_v38, %v3044_v51  ;;  %2613 = vmatmul.bf16.gmra.mxu0 %v2540_v57  ;;  %2825 = vmatmul.bf16.gmra.mxu2 %v2752_v59  ;;  %v3603_v40 = vunpack.c.l.b16 %v3583_v44  ;;  %v6882_v57 = vld [vmem:[%s9430_s5 + $0x110] sm:$0xff] }
 0x23b   : > { %v2429_v32 = vmax.f32 %v2415_v53, 0.0  ;;  %2983 = vmatmul.bf16.vlgmr.msrb.gmra.mxu3 %v2913_v4  ;;  %v6920_v53 = vld [vmem:[%s9430_s5 + $0x1f8] sm:$0xff]  ;;  %v6919_v59 = vld [vmem:[%s9430_s5 + $0x1f0] sm:$0xff] }
 0x23c   : > { %v2223_v33 = vpop.f32.mrf.mxu2  ;;  %v2375_v1 = vpop.f32.mrf.mxu3  ;;  %v3605_v55 = vpack.c.b16 %v3459_v58, %v3603_v40  ;;  %3111 = vmatpush.bf16.msra.mxu0 %v6883_v45  ;;  %3539 = vmatpush.bf16.msra.mxu3 %v6920_v53  ;;  %v6903_v4 = vld [vmem:[%s9430_s5 + $0x190] sm:$0xff] }
 0x23d   : > { %v8184_v62 = vpack.c.bf16 %v2429_v32, %v2428_v61  ;;  %v2246_v20 = vadd.f32 %v2223_v33, %v2041_v42  ;;  %v1945_v52 = vpop.f32.mrf.mxu0 }
 0x23e   : > { %v3607_v29 = vrot.slane %v3605_v55, 2  ;;  %v2048_v61 = vadd.f32 %v2047_v27, %v1945_v52  ;;  %v6917_v55 = vld [vmem:[%s9430_s5 + $0x1e0] sm:$0xff]  ;;  %v6914_v27 = vld [vmem:[%s9430_s5 + $0x1c8] sm:$0xff] }
 0x23f   : > { %7222 = vst [vmem:[#allocation3 + $0x18] sm:$0xff] %v8184_v62   ;;  %v2398_v7 = vadd.f32 %v2375_v1, %v2246_v20  ;;  %v6918_v20 = vld [vmem:[%s9430_s5 + $0x1e8] sm:$0xff] }
 0x240   : > { %3112 = vmatpush.bf16.msra.mxu0 %v6882_v57  ;;  %3540 = vmatpush.bf16.msra.mxu3 %v6919_v59 }
 0x241   : > { %v2416_v22 = vadd.f32 %v8083_v5, %v2398_v7  ;;  %v2050_v7 = vpop.f32.mrf.mxu1 }
 0x243   : > { %v2430_v17 = vmax.f32 %v2416_v22, 0.0 }
 0x244   : > { %v2225_v14 = vpop.f32.mrf.mxu2  ;;  %v2377_v18 = vpop.f32.mrf.mxu3  ;;  %3113 = vmatpush.bf16.msra.mxu0 %v6881_v41  ;;  %3541 = vmatpush.bf16.msra.mxu3 %v6918_v20 }
 0x245   : > { %v2247_v16 = vadd.f32 %v2225_v14, %v2043_v6 }
 0x246   : > { %v8207_v21 = vld [vmem:[#allocation3 + $0x18] sm:$0xff] }
 0x247   : > { %v8209_v63 = vld [vmem:[#allocation3 + $0x14] sm:$0xff]   ;;  %v2399_v23 = vadd.f32 %v2377_v18, %v2247_v16  ;;  %2713 = vmatmul.bf16.gmra.mxu1 %v8207_v21  ;;  %v2541_v9 = vrot.slane %v8207_v21, 1  ;;  %v2753_v12 = vrot.slane %v8207_v21, 2  ;;  %v6901_v18 = vld [vmem:[%s9430_s5 + $0x180] sm:$0xff] }
 0x248   : > { %v8215_v24 = vld [vmem:[#allocation3 + $0x14] sm:$0xff]  ;;  %v2914_v28 = vrot.slane %v8209_v63, 2  ;;  %v3046_v3 = vrot.slane %v8209_v63, 3  ;;  %3114 = vmatpush.bf16.msra.mxu0 %v6880_v15  ;;  %3542 = vmatpush.bf16.msra.mxu3 %v6917_v55 }
 0x249   : > { %v2417_v10 = vadd.f32 %v8083_v5, %v2399_v23  ;;  %v3608_v8 = vrot.slane %v8215_v24, 2  ;;  %v2542_v11 = vsel %vm541_vm0, %v2539_v39, %v2541_v9  ;;  %v2754_v30 = vsel %vm1119_vm1, %v2751_v47, %v2753_v12  ;;  %v6916_v63 = vld [vmem:[%s9430_s5 + $0x1d8] sm:$0xff] }
 0x24a   : > { %v2915_v31 = vsel %vm1119_vm1, %v2912_v48, %v2914_v28  ;;  %2618 = vmatmul.bf16.gmra.mxu0 %v2542_v11  ;;  %2830 = vmatmul.bf16.gmra.mxu2 %v2754_v30  ;;  %v8250_v36 = vsel %vm1424_vm2, %v3044_v51, %v3046_v3  ;;  %v2046_v39 = vadd.f32 %v2045_v56, %v1943_v13  ;;  %v6904_v51 = vld [vmem:[%s9430_s5 + $0x198] sm:$0xff]  ;;  %v1948_v37 = vpop.f32.mrf.mxu0 }
 0x24b   : > { %v2431_v26 = vmax.f32 %v2417_v10, 0.0  ;;  %v8255_v46 = vsel %vm1119_vm1, %v3607_v29, %v3608_v8  ;;  %2988 = vmatmul.bf16.gmra.mxu3 %v2915_v31  ;;  %3380 = vmatpush.bf16.msra.mxu2 %v6904_v51 }
 0x24c   : > { %v2228_v38 = vpop.f32.mrf.mxu2  ;;  %v2380_v48 = vpop.f32.mrf.mxu3  ;;  %3543 = vmatpush.bf16.msra.mxu3 %v6916_v63  ;;  %v6897_v63 = vld [vmem:[#allocation3 + $0x14] sm:$0xff] }
 0x24d   : > { %v8257_v47 = vpack.c.bf16 %v2431_v26, %v2430_v17  ;;  %v2248_v50 = vadd.f32 %v2228_v38, %v2046_v39  ;;  %v2052_v17 = vpop.f32.mrf.mxu1 }
 0x24f   : > { %7223 = vst [vmem:[#allocation3 + $0x20] sm:$0xff] %v8257_v47   ;;  %v2400_v32 = vadd.f32 %v2380_v48, %v2248_v50  ;;  %3381 = vmatpush.bf16.msra.mxu2 %v6903_v4  ;;  %v7187_v50 = vunpack.c.h.b16 %v8257_v47 }
 0x251   : > { %v2418_v49 = vadd.f32 %v8083_v5, %v2400_v32 }
 0x253   : > { %3382 = vmatpush.bf16.msra.mxu2 %v6902_v2  ;;  %v2432_v11 = vmax.f32 %v2418_v49, 0.0  ;;  %v6913_v2 = vld [vmem:[%s9430_s5 + $0x1c0] sm:$0xff] }
 0x254   : > { %v2230_v33 = vpop.f32.mrf.mxu2  ;;  %v2382_v1 = vpop.f32.mrf.mxu3 }
 0x255   : > { %v2249_v42 = vadd.f32 %v2230_v33, %v2048_v61 }
 0x256   : > { %v8287_v54 = vld [vmem:[#allocation3 + $0x20] sm:$0xff] }
 0x257   : > { %v8289_v44 = vld [vmem:[#allocation3 + $0x1c] sm:$0xff]   ;;  %v2401_v56 = vadd.f32 %v2382_v1, %v2249_v42  ;;  %2718 = vmatmul.bf16.gmra.mxu1 %v8287_v54  ;;  %v2543_v40 = vrot.slane %v8287_v54, 1  ;;  %v2755_v13 = vrot.slane %v8287_v54, 2  ;;  %3383 = vmatpush.bf16.msra.mxu2 %v6901_v18 }
 0x258   : > { %v8292_v6 = vld [vmem:[#allocation3 + $0x1c] sm:$0xff]  ;;  %v2916_v14 = vrot.slane %v8289_v44, 2  ;;  %v3048_v0 = vrot.slane %v8289_v44, 3 }
 0x259   : > { %v2419_v16 = vadd.f32 %v8083_v5, %v2401_v56  ;;  %v3610_v22 = vrot.slane %v8292_v6, 2  ;;  %v2544_v23 = vsel %vm541_vm0, %v2541_v9, %v2543_v40  ;;  %v2756_v10 = vsel %vm1119_vm1, %v2753_v12, %v2755_v13 }
 0x25a   : > { %v2917_v29 = vsel %vm1119_vm1, %v2914_v28, %v2916_v14  ;;  %2623 = vmatmul.bf16.gmra.mxu0 %v2544_v23  ;;  %2835 = vmatmul.bf16.gmra.mxu2 %v2756_v10  ;;  %v8330_v9 = vsel %vm1424_vm2, %v3046_v3, %v3048_v0  ;;  %v2051_v12 = vadd.f32 %v2050_v7, %v1948_v37  ;;  %v1950_v3 = vpop.f32.mrf.mxu0  ;;  %v3478_v43 = vrot.slane %v8292_v6, 1 }
 0x25b   : > { %v2433_v30 = vmax.f32 %v2419_v16, 0.0  ;;  %v8337_v21 = vsel %vm1119_vm1, %v3608_v8, %v3610_v22  ;;  %2993 = vmatmul.bf16.gmra.mxu3 %v2917_v29  ;;  %v6915_v8 = vld [vmem:[%s9430_s5 + $0x1d0] sm:$0xff]  ;;  %v2053_v38 = vadd.f32 %v2052_v17, %v1950_v3  ;;  %v6924_v17 = vld [vmem:[%s9430_s5 + $0x218] sm:$0xff] }
 0x25c   : > { %v2233_v28 = vpop.f32.mrf.mxu2  ;;  %v2385_v35 = vpop.f32.mrf.mxu3  ;;  %3544 = vmatpush.bf16.msra.mxu3 %v6915_v8 }
 0x25d   : > { %v7161_v31 = vpack.c.bf16 %v2433_v30, %v2432_v11  ;;  %v2250_v25 = vadd.f32 %v2233_v28, %v2051_v12  ;;  %v6896_v12 = vld [vmem:[#allocation3 + $0xc] sm:$0xff] }
 0x25f   : > { %7224 = vst [vmem:[#allocation3 + $0x28] sm:$0xff] %v7161_v31   ;;  %v2402_v26 = vadd.f32 %v2385_v35, %v2250_v25  ;;  %v6926_v25 = vld [vmem:[%s9430_s5 + $0x228] sm:$0xff] }
 0x260   : > { %3545 = vmatpush.bf16.msra.mxu3 %v6914_v27 }
 0x261   : > { %v2420_v52 = vadd.f32 %v8083_v5, %v2402_v26  ;;  %v6923_v26 = vld [vmem:[%s9430_s5 + $0x210] sm:$0xff] }
 0x263   : > { %v2434_v20 = vmax.f32 %v2420_v52, 0.0 }
 0x264   : > { %v2235_v39 = vpop.f32.mrf.mxu2  ;;  %v2387_v45 = vpop.f32.mrf.mxu3  ;;  %3546 = vmatpush.bf16.msra.mxu3 %v6913_v2 }
 0x265   : > { %v2251_v48 = vadd.f32 %v2235_v39, %v2053_v38 }
 0x266   : > { %v2491_v51 = vld [vmem:[#allocation3 + $0x28] sm:$0x1]  ;;  %v2866_v54 = vld [vmem:[#allocation3 + $0x2c] sm:$0x3] }
 0x267   : > { %v2725_v53 = vld [vmem:[#allocation3 + $0x28] sm:$0x3]  ;;  %v2403_v59 = vadd.f32 %v2387_v45, %v2251_v48  ;;  %v2529_v4 = vunpack.c.l.b16 %v2491_v51  ;;  %3236 = vmatmul.bf16.vlgmr.msra.gmra.mxu1 %v8119_v34  ;;  %v6921_v48 = vld [vmem:[%s9430_s5 + $0x200] sm:$0xff]  ;;  %v3020_v51 = vld [vmem:[#allocation3 + $0x2c] sm:$0x7] }
 0x268   : > { %v8350_v57 = vld [vmem:[#allocation3 + $0x28] sm:$0xff]   ;;  %v2745_v61 = vunpack.c.l.b16 %v2725_v53 }
 0x269   : > { %v2903_v32 = vunpack.c.l.b16 %v8350_v57  ;;  %v2421_v33 = vadd.f32 %v8083_v5, %v2403_v59  ;;  %v2535_v41 = vpack.c.b16 %v2529_v4, %v2529_v4  ;;  %v8360_v37 = vld [vmem:[#allocation3 + $0x24] sm:$0xff]  ;;  %v3040_v59 = vunpack.c.l.b16 %v3020_v51  ;;  %v6177_v51 = vld [vmem:[%s9432_s7 + $0x1e0] sm:$0xf] }
 0x26a   : > { %v2747_v42 = vpack.c.b16 %v2745_v61, %v2745_v61  ;;  %v3612_v10 = vrot.slane %v8360_v37, 2  ;;  %v3480_v39 = vrot.slane %v8360_v37, 1  ;;  %v6899_v27 = vld [vmem:[#allocation3 + $0x24] sm:$0xff] }
 0x26b   : > { %v8355_v1 = vpack.c.b16 %v2903_v32, %v7187_v50  ;;  %v2435_v49 = vmax.f32 %v2421_v33, 0.0  ;;  %v2545_v56 = vrot.slane %v2535_v41, 1  ;;  %v3042_v4 = vpack.c.b16 %v3040_v59, %v3040_v59  ;;  %v6992_v59 = vld [vmem:[%s9432_s7 + $0x1f4] sm:$0xf0] }
 0x26c   : > { %v2757_v7 = vrot.slane %v2747_v42, 2  ;;  %v3481_v52 = vsel %vm541_vm0, %v3478_v43, %v3480_v39 }
 0x26d   : > { %v2918_v15 = vrot.slane %v8355_v1, 2  ;;  %v3050_v34 = vrot.slane %v8355_v1, 3  ;;  %v7166_v5 = vpack.c.bf16 %v2435_v49, %v2434_v20  ;;  %v2546_v16 = vsel %vm541_vm0, %v2543_v40, %v2545_v56  ;;  %v6928_v40 = vld [vmem:[%s9430_s5 + $0x238] sm:$0xff] }
 0x26e   : > { %v2758_v18 = vsel %vm1119_vm1, %v2755_v13, %v2757_v7  ;;  %2628 = vmatmul.bf16.gmra.mxu0 %v2546_v16  ;;  %v8385_v13 = vsel %vm1119_vm1, %v3610_v22, %v3612_v10  ;;  %v6927_v22 = vld [vmem:[%s9430_s5 + $0x230] sm:$0xff]  ;;  %v3052_v41 = vrot.slane %v3042_v4, 3 }
 0x26f   : > { %v2919_v55 = vsel %vm1119_vm1, %v2916_v14, %v2918_v15  ;;  %2840 = vmatmul.bf16.gmra.mxu2 %v2758_v18  ;;  %v3051_v23 = vsel %vm1424_vm2, %v3048_v0, %v3050_v34  ;;  %7225 = vst [vmem:[#allocation3 + $0x30] sm:$0xff] %v7166_v5   ;;  %3671 = vmatpush.bf16.msrb.mxu0 %v6928_v40  ;;  %v2904_v14 = vunpack.c.l.b16 %v2866_v54 }
 0x270   : > { %2998 = vmatmul.bf16.gmra.mxu3 %v2919_v55  ;;  %v3053_v20 = vsel %vm1424_vm2, %v3050_v34, %v3052_v41  ;;  %v6161_v41 = vld [vmem:[%s9432_s7 + $0x1c0] sm:$0xf] }
 0x271   : > { %v2910_v29 = vpack.c.b16 %v2904_v14, %v2904_v14 }
 0x273   : > { %v2920_v11 = vrot.slane %v2910_v29, 2  ;;  %3672 = vmatpush.bf16.msrb.mxu0 %v6927_v22 }
 0x275   : > { %v2921_v28 = vsel %vm1119_vm1, %v2918_v15, %v2920_v11 }
 0x276   : > { %v8387_v44 = vld [vmem:[#allocation3 + $0x2c] sm:$0xff]  ;;  %v3430_v7 = vld [vmem:[#allocation3 + $0x34] sm:$0x1] }
 0x277   : > { %3241 = vmatmul.bf16.gmra.mxu1 %v8137_v19  ;;  %v3614_v0 = vrot.slane %v8387_v44, 2  ;;  %v3420_v19 = vld [vmem:[#allocation3 + $0xc] sm:$0xe]  ;;  %3673 = vmatpush.bf16.msrb.mxu0 %v6926_v25  ;;  %v3482_v42 = vrot.slane %v8387_v44, 1  ;;  %v3468_v16 = vunpack.c.l.b16 %v3430_v7  ;;  %v6179_v44 = vld [vmem:[%s9432_s7 + $0x1f0] sm:$0xf0] }
 0x278   : > { %v3458_v31 = vunpack.c.l.b16 %v3420_v19  ;;  %v6900_v2 = vld [vmem:[#allocation3 + $0x2c] sm:$0xff] }
 0x279   : > { %v8394_v30 = vsel %vm1119_vm1, %v3612_v10, %v3614_v0  ;;  %v3483_v37 = vsel %vm541_vm0, %v3480_v39, %v3482_v42 }
 0x27a   : > { %v3469_v35 = vpack.c.b16 %v3459_v58, %v3458_v31  ;;  %v6898_v58 = vld [vmem:[#allocation3 + $0x1c] sm:$0xff] }
 0x27c   : > { %v3475_v3 = vrot.slane %v3469_v35, 1 }
 0x27e   : > { %3115 = vmatmul.bf16.vlgmr.msra.gmra.mxu0 %v8179_v60  ;;  %v3476_v60 = vrot.slane %v8215_v24, 1 }
 0x27f   : > { %3384 = vmatmul.bf16.vlgmr.msra.gmra.mxu2 %v6896_v12 }
 0x280   : > { %3003 = vmatmul.bf16.gmra.mxu3 %v2921_v28  ;;  %v3477_v8 = vsel %vm541_vm0, %v3475_v3, %v3476_v60 }
 0x287   : > { %3246 = vmatmul.bf16.gmra.mxu1 %v8184_v62  ;;  %v6925_v62 = vld [vmem:[%s9430_s5 + $0x220] sm:$0xff] }
 0x288   : > { %3674 = vmatpush.bf16.msrb.mxu0 %v6925_v62 }
 0x28c   : > { %v2699_v24 = vpop.f32.mrf.mxu1  ;;  %3675 = vmatpush.bf16.msrb.mxu0 %v6924_v17 }
 0x28e   : > { %3120 = vmatmul.bf16.gmra.mxu0 %v8250_v36  ;;  %v3479_v36 = vsel %vm541_vm0, %v3476_v60, %v3478_v43 }
 0x28f   : > { %3389 = vmatmul.bf16.gmra.mxu2 %v6897_v63 }
 0x290   : > { %3547 = vmatmul.bf16.vlgmr.msra.gmra.mxu3 %v3477_v8  ;;  %3676 = vmatpush.bf16.msrb.mxu0 %v6923_v26 }
 0x297   : > { %3251 = vmatmul.bf16.gmra.mxu1 %v8257_v47  ;;  %v8423_v47 = vpop.f32.mrf.mxu1 }
 0x29e   : > { %3125 = vmatmul.bf16.gmra.mxu0 %v8330_v9  ;;  %v6922_v9 = vld [vmem:[%s9430_s5 + $0x208] sm:$0xff] }
 0x29f   : > { %3394 = vmatmul.bf16.gmra.mxu2 %v6898_v58  ;;  %3677 = vmatpush.bf16.msrb.mxu0 %v6922_v9 }
 0x2a0   : > { %3552 = vmatmul.bf16.gmra.mxu3 %v3479_v36 }
 0x2a3   : > { %3678 = vmatpush.bf16.msrb.mxu0 %v6921_v48 }
 0x2a4   : > { %v2704_v53 = vpop.f32.mrf.mxu1 }
 0x2a5   : > { %v6989_v53 = vld [vmem:[%s9432_s7 + $0x1e4] sm:$0xf] }
 0x2a6   : > { %v6182_v4 = vor.u32 %v6989_v53, %v6179_v44  ;;  %v6972_v53 = vld [vmem:[%s9432_s7 + $0x154] sm:$0xf0] }
 0x2a7   : > { %v2609_v6 = vpop.f32.mrf.mxu0  ;;  %3256 = vmatmul.bf16.gmra.mxu1 %v8350_v57 }
 0x2a8   : > { %v2700_v38 = vadd.f32 %v2699_v24, %v2609_v6  ;;  %4003 = vmatpush.bf16.msrb.mxu2 %v6182_v4  ;;  %v6081_v4 = vld [vmem:[%s9432_s7 + $0x120] sm:$0xf] }
 0x2ac   : > { %v2706_v33 = vpop.f32.mrf.mxu1 }
 0x2ad   : > { %v2821_v45 = vpop.f32.mrf.mxu2 }
 0x2ae   : > { %3130 = vmatmul.bf16.gmra.mxu0 %v3051_v23  ;;  %v2846_v50 = vadd.f32 %v2821_v45, %v2700_v38  ;;  %v3474_v23 = vpack.c.b16 %v3468_v16, %v3468_v16  ;;  %v6983_v16 = vld [vmem:[%s9432_s7 + $0x1ac] sm:$0xf0] }
 0x2af   : > { %3399 = vmatmul.bf16.gmra.mxu2 %v6899_v27  ;;  %v8434_v57 = vpop.f32.mrf.mxu0 }
 0x2b0   : > { %3557 = vmatmul.bf16.gmra.mxu3 %v3481_v52  ;;  %v3484_v1 = vrot.slane %v3474_v23, 1  ;;  %v6147_v23 = vld [vmem:[%s9432_s7 + $0x1b0] sm:$0xf0] }
 0x2b2   : > { %v3485_v34 = vsel %vm541_vm0, %v3482_v42, %v3484_v1  ;;  %v6987_v42 = vld [vmem:[%s9432_s7 + $0x1cc] sm:$0xf0]  ;;  %v6984_v1 = vld [vmem:[%s9432_s7 + $0x1b4] sm:$0xf0] }
 0x2b4   : > { %v2709_v18 = vpop.f32.mrf.mxu1 }
 0x2b5   : > { %v8436_v61 = vpop.f32.mrf.mxu2  ;;  %v6981_v18 = vld [vmem:[%s9432_s7 + $0x1a4] sm:$0xf] }
 0x2b7   : > { %v2614_v32 = vpop.f32.mrf.mxu0 }
 0x2bc   : > { %v2711_v40 = vpop.f32.mrf.mxu1 }
 0x2bd   : > { %v2826_v49 = vpop.f32.mrf.mxu2  ;;  %v6150_v40 = vor.u32 %v6981_v18, %v6147_v23  ;;  %v6065_v18 = vld [vmem:[%s9432_s7 + $0x100] sm:$0xf]  ;;  %v6961_v23 = vld [vmem:[%s9432_s7 + $0x104] sm:$0xf] }
 0x2be   : > { %3135 = vmatmul.bf16.gmra.mxu0 %v3053_v20  ;;  %v2984_v56 = vpop.f32.mrf.mxu3  ;;  %v6162_v20 = vor.u32 %v6987_v42, %v6161_v41  ;;  %v6169_v49 = vld [vmem:[%s9432_s7 + $0x1c8] sm:$0xf]  ;;  %v6965_v41 = vld [vmem:[%s9432_s7 + $0x124] sm:$0xf]  ;;  %v6083_v42 = vld [vmem:[%s9432_s7 + $0x130] sm:$0xf0] }
 0x2bf   : > { %3404 = vmatmul.bf16.gmra.mxu2 %v6900_v2  ;;  %v3009_v15 = vadd.f32 %v2984_v56, %v2846_v50  ;;  %v2616_v5 = vpop.f32.mrf.mxu0  ;;  %v6985_v2 = vld [vmem:[%s9432_s7 + $0x1c4] sm:$0xf]  ;;  %v6988_v56 = vld [vmem:[%s9432_s7 + $0x1d4] sm:$0xf0] }
 0x2c0   : > { %3562 = vmatmul.bf16.gmra.mxu3 %v3483_v37  ;;  %v6163_v37 = vld [vmem:[%s9432_s7 + $0x1d0] sm:$0xf0]  ;;  %v6145_v5 = vld [vmem:[%s9432_s7 + $0x1a0] sm:$0xf] }
 0x2c1   : > { %v6166_v7 = vor.u32 %v6985_v2, %v6163_v37  ;;  %v6089_v37 = vld [vmem:[%s9432_s7 + $0x128] sm:$0xf] }
 0x2c3   : > { %4004 = vmatpush.bf16.msrb.mxu2 %v6166_v7 }
 0x2c4   : > { %v2714_v28 = vpop.f32.mrf.mxu1 }
 0x2c5   : > { %v2828_v55 = vpop.f32.mrf.mxu2 }
 0x2c6   : > { %v8443_v10 = vpop.f32.mrf.mxu3  ;;  %v6146_v55 = vor.u32 %v6983_v16, %v6145_v5  ;;  %v6387_v5 = vld [vmem:[%s9432_s7 + $0x290] sm:$0xf0] }
 0x2c7   : > { %v2619_v54 = vpop.f32.mrf.mxu0  ;;  %4005 = vmatpush.bf16.msrb.mxu2 %v6150_v40  ;;  %v6073_v40 = vld [vmem:[%s9432_s7 + $0x108] sm:$0xf] }
 0x2c8   : > { %v6153_v54 = vld [vmem:[%s9432_s7 + $0x1a8] sm:$0xf] }
 0x2cc   : > { %v2716_v25 = vpop.f32.mrf.mxu1 }
 0x2cd   : > { %v2831_v14 = vpop.f32.mrf.mxu2 }
 0x2ce   : > { %3679 = vmatmul.bf16.vlgmr.msrb.gmra.mxu0 %v8255_v46  ;;  %v2989_v29 = vpop.f32.mrf.mxu3 }
 0x2cf   : > { %v2621_v11 = vpop.f32.mrf.mxu0  ;;  %v6129_v29 = vld [vmem:[%s9432_s7 + $0x180] sm:$0xf] }
 0x2d0   : > { %3567 = vmatmul.bf16.gmra.mxu3 %v3485_v34  ;;  %v6154_v34 = vor.u32 %v6984_v1, %v6153_v54  ;;  %v6979_v11 = vld [vmem:[%s9432_s7 + $0x18c] sm:$0xf0]  ;;  %v6067_v1 = vld [vmem:[%s9432_s7 + $0x110] sm:$0xf0] }
 0x2d1   : > { %v6130_v28 = vor.u32 %v6979_v11, %v6129_v29  ;;  %v6990_v11 = vld [vmem:[%s9432_s7 + $0x1ec] sm:$0xf] }
 0x2d4   : > { %v2719_v8 = vpop.f32.mrf.mxu1 }
 0x2d5   : > { %v2833_v12 = vpop.f32.mrf.mxu2 }
 0x2d6   : > { %v2991_v22 = vpop.f32.mrf.mxu3  ;;  %v6977_v12 = vld [vmem:[%s9432_s7 + $0x184] sm:$0xf] }
 0x2d7   : > { %v2624_v19 = vpop.f32.mrf.mxu0  ;;  %v6131_v22 = vld [vmem:[%s9432_s7 + $0x190] sm:$0xf0] }
 0x2d8   : > { %v6137_v19 = vld [vmem:[%s9432_s7 + $0x188] sm:$0xf] }
 0x2dc   : > { %v2721_v24 = vpop.f32.mrf.mxu1 }
 0x2dd   : > { %v2836_v31 = vpop.f32.mrf.mxu2 }
 0x2de   : > { %3684 = vmatmul.bf16.gmra.mxu0 %v8337_v21  ;;  %v2994_v35 = vpop.f32.mrf.mxu3  ;;  %v3584_v21 = vld [vmem:[#allocation3 + $0x34] sm:$0x3]  ;;  %v6980_v31 = vld [vmem:[%s9432_s7 + $0x194] sm:$0xf0] }
 0x2df   : > { %v2626_v60 = vpop.f32.mrf.mxu0  ;;  %v3604_v9 = vunpack.c.l.b16 %v3584_v21  ;;  %v6134_v35 = vor.u32 %v6977_v12, %v6131_v22  ;;  %v6138_v25 = vor.u32 %v6980_v31, %v6137_v19  ;;  %v6187_v12 = vld [vmem:[%s9432_s7 + $0x1f8] sm:$0xf0]  ;;  %v6959_v31 = vld [vmem:[%s9432_s7 + $0xec] sm:$0xf0] }
 0x2e0   : > { %v7021_v60 = vld [vmem:[%s9432_s7 + $0x2e4] sm:$0xf]  ;;  %v6190_v19 = vor.u32 %v6990_v11, %v6187_v12  ;;  %v6974_v12 = vld [vmem:[%s9432_s7 + $0x16c] sm:$0xf] }
 0x2e1   : > { %v3606_v48 = vpack.c.b16 %v3604_v9, %v3604_v9  ;;  %4006 = vmatpush.bf16.msrb.mxu2 %v6134_v35  ;;  %v7017_v9 = vld [vmem:[%s9432_s7 + $0x2c4] sm:$0xf] }
 0x2e2   : > { %v6957_v35 = vld [vmem:[%s9432_s7 + $0xe4] sm:$0xf] }
 0x2e3   : > { %v3616_v27 = vrot.slane %v3606_v48, 2 }
 0x2e4   : > { %v8634_v22 = vpop.f32.mrf.mxu1 }
 0x2e5   : > { %v2838_v63 = vpop.f32.mrf.mxu2  ;;  %v3617_v45 = vsel %vm1119_vm1, %v3614_v0, %v3616_v27  ;;  %v6185_v0 = vld [vmem:[%s9432_s7 + $0x1e8] sm:$0xf]  ;;  %v6097_v27 = vld [vmem:[%s9432_s7 + $0x140] sm:$0xf] }
 0x2e6   : > { %v2996_v3 = vpop.f32.mrf.mxu3  ;;  %v6186_v32 = vor.u32 %v6992_v59, %v6185_v0  ;;  %v6435_v63 = vld [vmem:[%s9432_s7 + $0x2f0] sm:$0xf0]  ;;  %v7013_v0 = vld [vmem:[%s9432_s7 + $0x2a4] sm:$0xf] }
 0x2e7   : > { %v6113_v3 = vld [vmem:[%s9432_s7 + $0x160] sm:$0xf]  ;;  %v6438_v8 = vor.u32 %v7021_v60, %v6435_v63  ;;  %v6403_v59 = vld [vmem:[%s9432_s7 + $0x2b0] sm:$0xf0] }
 0x2e8   : > { %4016 = vmatpush.bf16.msrb.mxu3 %v6186_v32  ;;  %v6406_v32 = vor.u32 %v7013_v0, %v6403_v59  ;;  %v6949_v0 = vld [vmem:[%s9432_s7 + $0xa4] sm:$0xf]  ;;  %v6275_v59 = vld [vmem:[%s9432_s7 + $0xb0] sm:$0xf0] }
 0x2e9   : > { %4465 = vmatpush.bf16.msra.mxu0 %v6438_v8 }
 0x2eb   : > { %v2629_v62 = vpop.f32.mrf.mxu0 }
 0x2ec   : > { %v6975_v62 = vld [vmem:[%s9432_s7 + $0x16c] sm:$0xf0] }
 0x2ee   : > { %3689 = vmatmul.bf16.gmra.mxu0 %v8385_v13 }
 0x2f2   : > { %v2841_v46 = vpop.f32.mrf.mxu2 }
 0x2f3   : > { %v2999_v43 = vpop.f32.mrf.mxu3  ;;  %v2631_v58 = vpop.f32.mrf.mxu0  ;;  %v6973_v46 = vld [vmem:[%s9432_s7 + $0x164] sm:$0xf] }
 0x2f4   : > { %v6115_v43 = vld [vmem:[%s9432_s7 + $0x170] sm:$0xf0]  ;;  %v6114_v58 = vor.u32 %v6975_v62, %v6113_v3  ;;  %v7005_v62 = vld [vmem:[%s9432_s7 + $0x264] sm:$0xf] }
 0x2f5   : > { %v6118_v24 = vor.u32 %v6973_v46, %v6115_v43  ;;  %v6371_v46 = vld [vmem:[%s9432_s7 + $0x270] sm:$0xf0]  ;;  %v6986_v43 = vld [vmem:[%s9432_s7 + $0x1cc] sm:$0xf] }
 0x2f7   : > { %4007 = vmatpush.bf16.msrb.mxu2 %v6118_v24  ;;  %v6171_v24 = vld [vmem:[%s9432_s7 + $0x1d8] sm:$0xf0] }
 0x2fa   : > { %v2843_v36 = vpop.f32.mrf.mxu2 }
 0x2fb   : > { %v3001_v17 = vpop.f32.mrf.mxu3  ;;  %v3116_v26 = vpop.f32.mrf.mxu0  ;;  %v6121_v36 = vld [vmem:[%s9432_s7 + $0x168] sm:$0xf] }
 0x2fc   : > { %v8449_v6 = vadd.f32 %v3116_v26, %v3009_v15  ;;  %v6170_v15 = vor.u32 %v6988_v56, %v6169_v49  ;;  %v6976_v17 = vld [vmem:[%s9432_s7 + $0x174] sm:$0xf0] }
 0x2fd   : > { %v6122_v26 = vor.u32 %v6976_v17, %v6121_v36  ;;  %v6968_v49 = vld [vmem:[%s9432_s7 + $0x134] sm:$0xf0]  ;;  %v6289_v36 = vld [vmem:[%s9432_s7 + $0xc0] sm:$0xf]  ;;  %v6955_v17 = vld [vmem:[%s9432_s7 + $0xcc] sm:$0xf0] }
 0x2fe   : > { %3694 = vmatmul.bf16.gmra.mxu0 %v8394_v30  ;;  %v6991_v30 = vld [vmem:[%s9432_s7 + $0x1ec] sm:$0xf0]  ;;  %4017 = vmatpush.bf16.msrb.mxu3 %v6170_v15  ;;  %v6090_v56 = vor.u32 %v6968_v49, %v6089_v37  ;;  %v7009_v15 = vld [vmem:[%s9432_s7 + $0x284] sm:$0xf]  ;;  %v6978_v37 = vld [vmem:[%s9432_s7 + $0x18c] sm:$0xf] }
 0x2ff   : > { %v6178_v50 = vor.u32 %v6991_v30, %v6177_v51  ;;  %v6099_v51 = vld [vmem:[%s9432_s7 + $0x150] sm:$0xf0]  ;;  %v6105_v30 = vld [vmem:[%s9432_s7 + $0x148] sm:$0xf]  ;;  %v6390_v16 = vor.u32 %v7009_v15, %v6387_v5  ;;  %v6139_v49 = vld [vmem:[%s9432_s7 + $0x198] sm:$0xf0] }
 0x300   : > { %v6106_v44 = vor.u32 %v6972_v53, %v6105_v30  ;;  %v6155_v30 = vld [vmem:[%s9432_s7 + $0x1b8] sm:$0xf0]  ;;  %v6273_v53 = vld [vmem:[%s9432_s7 + $0xa0] sm:$0xf]  ;;  %v6142_v15 = vor.u32 %v6978_v37, %v6139_v49  ;;  %v6947_v5 = vld [vmem:[%s9432_s7 + $0x8c] sm:$0xf0] }
 0x301   : > { %3990 = vmatpush.bf16.msrb.mxu1 %v6178_v50  ;;  %v7041_v49 = vld [vmem:[%s9432_s7 + $0x384] sm:$0xf] }
 0x302   : > { %4018 = vmatpush.bf16.msrb.mxu3 %v6154_v34  ;;  %v6964_v34 = vld [vmem:[%s9432_s7 + $0x114] sm:$0xf0]  ;;  %v8645_v60 = vpop.f32.mrf.mxu2 }
 0x303   : > { %v3004_v38 = vpop.f32.mrf.mxu3  ;;  %v8452_v39 = vpop.f32.mrf.mxu0  ;;  %v6074_v29 = vor.u32 %v6964_v34, %v6073_v40  ;;  %v7053_v40 = vld [vmem:[%s9432_s7 + $0x3e4] sm:$0xf] }
 0x304   : > { %v6419_v38 = vld [vmem:[%s9432_s7 + $0x2d0] sm:$0xf0] }
 0x305   : > { %3991 = vmatpush.bf16.msrb.mxu1 %v6162_v20  ;;  %v6422_v48 = vor.u32 %v7017_v9, %v6419_v38  ;;  %v6086_v20 = vor.u32 %v6965_v41, %v6083_v42  ;;  %v6290_v9 = vor.u32 %v6955_v17, %v6289_v36  ;;  %v6953_v38 = vld [vmem:[%s9432_s7 + $0xc4] sm:$0xf]  ;;  %v6339_v41 = vld [vmem:[%s9432_s7 + $0x230] sm:$0xf0]  ;;  %v6107_v36 = vld [vmem:[%s9432_s7 + $0x158] sm:$0xf0] }
 0x306   : > { %4019 = vmatpush.bf16.msrb.mxu3 %v6138_v25  ;;  %v6307_v25 = vld [vmem:[%s9432_s7 + $0xf0] sm:$0xf0]  ;;  %v6225_v17 = vld [vmem:[%s9432_s7 + $0x40] sm:$0xf] }
 0x307   : > { %4466 = vmatpush.bf16.msra.mxu0 %v6422_v48  ;;  %v6310_v8 = vor.u32 %v6957_v35, %v6307_v25  ;;  %v6291_v48 = vld [vmem:[%s9432_s7 + $0xd0] sm:$0xf0]  ;;  %v6943_v35 = vld [vmem:[%s9432_s7 + $0x6c] sm:$0xf0]  ;;  %v6941_v25 = vld [vmem:[%s9432_s7 + $0x64] sm:$0xf] }
 0x309   : > { %3992 = vmatpush.bf16.msrb.mxu1 %v6146_v55  ;;  %v6963_v55 = vld [vmem:[%s9432_s7 + $0x10c] sm:$0xf0] }
 0x30a   : > { %4020 = vmatpush.bf16.msrb.mxu3 %v6122_v26  ;;  %v6066_v54 = vor.u32 %v6963_v55, %v6065_v18  ;;  %v6259_v18 = vld [vmem:[%s9432_s7 + $0x90] sm:$0xf0] }
 0x30b   : > { %v3006_v52 = vpop.f32.mrf.mxu3  ;;  %v3121_v13 = vpop.f32.mrf.mxu0  ;;  %4467 = vmatpush.bf16.msra.mxu0 %v6406_v32  ;;  %v6278_v32 = vor.u32 %v6949_v0, %v6275_v59  ;;  %v6209_v0 = vld [vmem:[%s9432_s7 + $0x20] sm:$0xf] }
 0x30c   : > { %v6971_v52 = vld [vmem:[%s9432_s7 + $0x14c] sm:$0xf0]  ;;  %v6969_v13 = vld [vmem:[%s9432_s7 + $0x144] sm:$0xf] }
 0x30d   : > { %3993 = vmatpush.bf16.msrb.mxu1 %v6130_v28  ;;  %v6102_v50 = vor.u32 %v6969_v13, %v6099_v51  ;;  %v6305_v28 = vld [vmem:[%s9432_s7 + $0xe0] sm:$0xf]  ;;  %v6355_v13 = vld [vmem:[%s9432_s7 + $0x250] sm:$0xf0]  ;;  %v6982_v51 = vld [vmem:[%s9432_s7 + $0x1ac] sm:$0xf] }
 0x30e   : > { %3699 = vmatmul.bf16.gmra.mxu0 %v3617_v45  ;;  %v6098_v45 = vor.u32 %v6971_v52, %v6097_v27  ;;  %4021 = vmatpush.bf16.msrb.mxu3 %v6106_v44  ;;  %v6306_v3 = vor.u32 %v6959_v31, %v6305_v28  ;;  %v7001_v27 = vld [vmem:[%s9432_s7 + $0x244] sm:$0xf]  ;;  %v6294_v52 = vor.u32 %v6953_v38, %v6291_v48  ;;  %v6951_v44 = vld [vmem:[%s9432_s7 + $0xac] sm:$0xf0]  ;;  %v6123_v28 = vld [vmem:[%s9432_s7 + $0x178] sm:$0xf0] }
 0x30f   : > { %4008 = vmatpush.bf16.msrb.mxu2 %v6102_v50  ;;  %4468 = vmatpush.bf16.msra.mxu0 %v6390_v16  ;;  %v6158_v50 = vor.u32 %v6982_v51, %v6155_v30  ;;  %v6945_v16 = vld [vmem:[%s9432_s7 + $0x84] sm:$0xf]  ;;  %v6126_v31 = vor.u32 %v6974_v12, %v6123_v28  ;;  %v7299_v28 = vld [vmem:[%s9431_s6] ss:$0 sm:$0xff] }
 0x310   : > { %v6937_v48 = vld [vmem:[%s9432_s7 + $0x44] sm:$0xf] }
 0x311   : > { %3994 = vmatpush.bf16.msrb.mxu1 %v6114_v58  ;;  %v6374_v58 = vor.u32 %v7005_v62, %v6371_v46  ;;  %v7049_v62 = vld [vmem:[%s9432_s7 + $0x3c4] sm:$0xf]  ;;  %v6547_v46 = vld [vmem:[%s9432_s7 + $0x3d0] sm:$0xf0] }
 0x312   : > { %4022 = vmatpush.bf16.msrb.mxu3 %v6090_v56  ;;  %v6257_v56 = vld [vmem:[%s9432_s7 + $0x80] sm:$0xf] }
 0x313   : > { %v3123_v33 = vpop.f32.mrf.mxu0  ;;  %4009 = vmatpush.bf16.msrb.mxu2 %v6086_v20  ;;  %v8665_v26 = vpop.f32.mrf.mxu3  ;;  %4469 = vmatpush.bf16.msra.mxu0 %v6374_v58  ;;  %v6258_v55 = vor.u32 %v6947_v5, %v6257_v56  ;;  %v6515_v56 = vld [vmem:[%s9432_s7 + $0x390] sm:$0xf0] }
 0x314   : > { %v6967_v33 = vld [vmem:[%s9432_s7 + $0x12c] sm:$0xf0]  ;;  %v8703_v20 = vpop.f32.mrf.mxu1  ;;  %v6518_v5 = vor.u32 %v7041_v49, %v6515_v56  ;;  %v6297_v49 = vld [vmem:[%s9432_s7 + $0xc8] sm:$0xf]  ;;  %v6956_v56 = vld [vmem:[%s9432_s7 + $0xd4] sm:$0xf0] }
 0x315   : > { %3995 = vmatpush.bf16.msrb.mxu1 %v6098_v45  ;;  %v6082_v2 = vor.u32 %v6967_v33, %v6081_v4  ;;  %v6358_v45 = vor.u32 %v7001_v27, %v6355_v13  ;;  %v6274_v4 = vor.u32 %v6951_v44, %v6273_v53  ;;  %v6997_v33 = vld [vmem:[%s9432_s7 + $0x224] sm:$0xf]  ;;  %v6227_v27 = vld [vmem:[%s9432_s7 + $0x50] sm:$0xf0]  ;;  %v6966_v44 = vld [vmem:[%s9432_s7 + $0x12c] sm:$0xf] }
 0x316   : > { %4023 = vmatpush.bf16.msrb.mxu3 %v6074_v29  ;;  %v6563_v29 = vld [vmem:[%s9432_s7 + $0x3f0] sm:$0xf0]  ;;  %v6230_v13 = vor.u32 %v6937_v48, %v6227_v27  ;;  %v7025_v27 = vld [vmem:[%s9432_s7 + $0x304] sm:$0xf] }
 0x317   : > { %4470 = vmatpush.bf16.msra.mxu0 %v6358_v45  ;;  %v6566_v11 = vor.u32 %v7053_v40, %v6563_v29 }
 0x319   : > { %3996 = vmatpush.bf16.msrb.mxu1 %v6082_v2  ;;  %v6342_v2 = vor.u32 %v6997_v33, %v6339_v41  ;;  %v6211_v33 = vld [vmem:[%s9432_s7 + $0x30] sm:$0xf0]  ;;  %v3262_v41 = vadd.f32 %v8634_v22, %v8449_v6  ;;  %v6962_v6 = vld [vmem:[%s9432_s7 + $0x10c] sm:$0xf]  ;;  %v6193_v22 = vld [vmem:[%s9432_s7] sm:$0xf] }
 0x31a   : > { %4215 = vmatpush.bf16.msra.mxu3 %v6310_v8 }
 0x31b   : > { %v3126_v14 = vpop.f32.mrf.mxu0  ;;  %4471 = vmatpush.bf16.msra.mxu0 %v6342_v2  ;;  %v8734_v34 = vpop.f32.mrf.mxu3 }
 0x31c   : > { %v6070_v14 = vor.u32 %v6961_v23, %v6067_v1  ;;  %v6262_v23 = vor.u32 %v6945_v16, %v6259_v18  ;;  %v6323_v1 = vld [vmem:[%s9432_s7 + $0x210] sm:$0xf0]  ;;  %v3242_v51 = vpop.f32.mrf.mxu1  ;;  %v3410_v16 = vadd.f32 %v8645_v60, %v3262_v41  ;;  %v6931_v60 = vld [vmem:[%s9432_s7 + $0xc] sm:$0xf0] }
 0x31d   : > { %3997 = vmatpush.bf16.msrb.mxu1 %v6066_v54  ;;  %v6993_v54 = vld [vmem:[%s9432_s7 + $0x204] sm:$0xf]  ;;  %v6194_v40 = vor.u32 %v6931_v60, %v6193_v22  ;;  %v6417_v22 = vld [vmem:[%s9432_s7 + $0x2c0] sm:$0xf] }
 0x31e   : > { %4010 = vmatpush.bf16.msrb.mxu2 %v6070_v14  ;;  %4216 = vmatpush.bf16.msra.mxu3 %v6294_v52  ;;  %v6326_v14 = vor.u32 %v6993_v54, %v6323_v1  ;;  %v3573_v1 = vadd.f32 %v8665_v26, %v3410_v16  ;;  %v6499_v26 = vld [vmem:[%s9432_s7 + $0x370] sm:$0xf0] }
 0x320   : > { %4472 = vmatpush.bf16.msra.mxu0 %v6326_v14 }
 0x321   : > { %4029 = vmatpush.bf16.msra.mxu1 %v6190_v19  ;;  %v6241_v19 = vld [vmem:[%s9432_s7 + $0x60] sm:$0xf] }
 0x322   : > { %4202 = vmatpush.bf16.msra.mxu2 %v6306_v3  ;;  %4217 = vmatpush.bf16.msra.mxu3 %v6278_v32  ;;  %v6242_v3 = vor.u32 %v6943_v35, %v6241_v19  ;;  %v6933_v32 = vld [vmem:[%s9432_s7 + $0x24] sm:$0xf] }
 0x323   : > { %v3128_v21 = vpop.f32.mrf.mxu0  ;;  %v3553_v59 = vpop.f32.mrf.mxu3  ;;  %v6214_v37 = vor.u32 %v6933_v32, %v6211_v33  ;;  %v7037_v19 = vld [vmem:[%s9432_s7 + $0x364] sm:$0xf]  ;;  %v7023_v32 = vld [vmem:[%s9432_s7 + $0x2ec] sm:$0xf0] }
 0x324   : > { %v6174_v21 = vor.u32 %v6986_v43, %v6171_v24  ;;  %v6970_v43 = vld [vmem:[%s9432_s7 + $0x14c] sm:$0xf]  ;;  %4719 = vmatpush.bf16.msrb.mxu0 %v6566_v11  ;;  %v6550_v24 = vor.u32 %v7049_v62, %v6547_v46  ;;  %v3244_v29 = vpop.f32.mrf.mxu1 }
 0x325   : > { %v6110_v38 = vor.u32 %v6970_v43, %v6107_v36  ;;  %v6283_v29 = vld [vmem:[%s9432_s7 + $0xb8] sm:$0xf0] }
 0x326   : > { %4030 = vmatpush.bf16.msra.mxu1 %v6174_v21  ;;  %4203 = vmatpush.bf16.msra.mxu2 %v6290_v9  ;;  %v6939_v21 = vld [vmem:[%s9432_s7 + $0x4c] sm:$0xf0]  ;;  %v2702_v9 = vadd.f32 %v8423_v47, %v8434_v57  ;;  %v7045_v47 = vld [vmem:[%s9432_s7 + $0x3a4] sm:$0xf]  ;;  %v6531_v57 = vld [vmem:[%s9432_s7 + $0x3b0] sm:$0xf0] }
 0x327   : > { %4218 = vmatpush.bf16.msra.mxu3 %v6262_v23  ;;  %v6226_v52 = vor.u32 %v6939_v21, %v6225_v17  ;;  %v6534_v53 = vor.u32 %v7045_v47, %v6531_v57  ;;  %v6195_v23 = vld [vmem:[%s9432_s7 + $0x10] sm:$0xf0]  ;;  %v6313_v57 = vld [vmem:[%s9432_s7 + $0xe8] sm:$0xf] }
 0x328   : > { %v2847_v45 = vadd.f32 %v8436_v61, %v2702_v9  ;;  %4720 = vmatpush.bf16.msrb.mxu0 %v6550_v24  ;;  %v6091_v61 = vld [vmem:[%s9432_s7 + $0x138] sm:$0xf0] }
 0x32a   : > { %4031 = vmatpush.bf16.msra.mxu1 %v6158_v50  ;;  %4204 = vmatpush.bf16.msra.mxu2 %v6274_v4  ;;  %v3010_v50 = vadd.f32 %v8443_v10, %v2847_v45  ;;  %v6094_v4 = vor.u32 %v6966_v44, %v6091_v61  ;;  %v6935_v10 = vld [vmem:[%s9432_s7 + $0x2c] sm:$0xf0]  ;;  %v6960_v44 = vld [vmem:[%s9432_s7 + $0xf4] sm:$0xf0]  ;;  %v6958_v61 = vld [vmem:[%s9432_s7 + $0xec] sm:$0xf] }
 0x32b   : > { %v3131_v7 = vpop.f32.mrf.mxu0  ;;  %v6210_v2 = vor.u32 %v6935_v10, %v6209_v0  ;;  %v3555_v35 = vpop.f32.mrf.mxu3  ;;  %v6315_v0 = vld [vmem:[%s9432_s7 + $0xf8] sm:$0xf0]  ;;  %v6433_v10 = vld [vmem:[%s9432_s7 + $0x2e0] sm:$0xf] }
 0x32c   : > { %v8714_v7 = vpop.f32.mrf.mxu2  ;;  %4721 = vmatpush.bf16.msrb.mxu0 %v6534_v53  ;;  %v3247_v21 = vpop.f32.mrf.mxu1  ;;  %v6434_v16 = vor.u32 %v7023_v32, %v6433_v10 }
 0x32d   : > { %v6944_v21 = vld [vmem:[%s9432_s7 + $0x74] sm:$0xf0] }
 0x32e   : > { %4032 = vmatpush.bf16.msra.mxu1 %v6142_v15  ;;  %4205 = vmatpush.bf16.msra.mxu2 %v6258_v55  ;;  %v6929_v55 = vld [vmem:[%s9432_s7 + $0x4] sm:$0xf] }
 0x32f   : > { %v6198_v14 = vor.u32 %v6929_v55, %v6195_v23  ;;  %v6298_v55 = vor.u32 %v6956_v56, %v6297_v49  ;;  %v6281_v23 = vld [vmem:[%s9432_s7 + $0xa8] sm:$0xf]  ;;  %v6934_v49 = vld [vmem:[%s9432_s7 + $0x2c] sm:$0xf]  ;;  %v6219_v56 = vld [vmem:[%s9432_s7 + $0x38] sm:$0xf0] }
 0x330   : > { %4722 = vmatpush.bf16.msrb.mxu0 %v6518_v5 }
 0x332   : > { %4033 = vmatpush.bf16.msra.mxu1 %v6126_v31  ;;  %4206 = vmatpush.bf16.msra.mxu2 %v6242_v3  ;;  %v6502_v31 = vor.u32 %v7037_v19, %v6499_v26  ;;  %v6483_v3 = vld [vmem:[%s9432_s7 + $0x350] sm:$0xf0] }
 0x333   : > { %v3133_v63 = vpop.f32.mrf.mxu0  ;;  %v3558_v45 = vpop.f32.mrf.mxu3 }
 0x334   : > { %v6243_v63 = vld [vmem:[%s9432_s7 + $0x70] sm:$0xf0]  ;;  %v3390_v30 = vpop.f32.mrf.mxu2  ;;  %4723 = vmatpush.bf16.msrb.mxu0 %v6502_v31  ;;  %v3249_v53 = vpop.f32.mrf.mxu1  ;;  %v6948_v31 = vld [vmem:[%s9432_s7 + $0x94] sm:$0xf0]  ;;  %v6233_v45 = vld [vmem:[%s9432_s7 + $0x48] sm:$0xf] }
 0x335   : > { %v6246_v8 = vor.u32 %v6941_v25, %v6243_v63  ;;  %v7033_v63 = vld [vmem:[%s9432_s7 + $0x344] sm:$0xf]  ;;  %v6938_v53 = vld [vmem:[%s9432_s7 + $0x4c] sm:$0xf] }
 0x336   : > { %4034 = vmatpush.bf16.msra.mxu1 %v6110_v38  ;;  %4207 = vmatpush.bf16.msra.mxu2 %v6226_v52  ;;  %v6486_v46 = vor.u32 %v7033_v63, %v6483_v3  ;;  %v6451_v52 = vld [vmem:[%s9432_s7 + $0x310] sm:$0xf0]  ;;  %v6267_v63 = vld [vmem:[%s9432_s7 + $0x98] sm:$0xf0] }
 0x337   : > { %4219 = vmatpush.bf16.msra.mxu3 %v6246_v8 }
 0x338   : > { %4724 = vmatpush.bf16.msrb.mxu0 %v6486_v46  ;;  %v7011_v46 = vld [vmem:[%s9432_s7 + $0x28c] sm:$0xf0] }
 0x33a   : > { %4035 = vmatpush.bf16.msra.mxu1 %v6094_v4  ;;  %4208 = vmatpush.bf16.msra.mxu2 %v6210_v2  ;;  %v6314_v2 = vor.u32 %v6960_v44, %v6313_v57 }
 0x33b   : > { %v3136_v42 = vpop.f32.mrf.mxu0  ;;  %4220 = vmatpush.bf16.msra.mxu3 %v6230_v13  ;;  %v6454_v13 = vor.u32 %v7025_v27, %v6451_v52  ;;  %v7007_v27 = vld [vmem:[%s9432_s7 + $0x26c] sm:$0xf0] }
 0x33c   : > { %v3142_v42 = vadd.f32 %v8452_v39, %v3010_v50  ;;  %v6075_v39 = vld [vmem:[%s9432_s7 + $0x118] sm:$0xf0] }
 0x33d   : > { %v6078_v18 = vor.u32 %v6962_v6, %v6075_v39  ;;  %v6299_v6 = vld [vmem:[%s9432_s7 + $0xd8] sm:$0xf0] }
 0x33e   : > { %v3263_v54 = vadd.f32 %v8703_v20, %v3142_v42  ;;  %v3392_v20 = vpop.f32.mrf.mxu2  ;;  %4209 = vmatpush.bf16.msra.mxu2 %v6194_v40  ;;  %v3560_v42 = vpop.f32.mrf.mxu3  ;;  %v6952_v40 = vld [vmem:[%s9432_s7 + $0xb4] sm:$0xf0] }
 0x33f   : > { %4221 = vmatpush.bf16.msra.mxu3 %v6214_v37  ;;  %4036 = vmatpush.bf16.msra.mxu1 %v6078_v18  ;;  %v6318_v37 = vor.u32 %v6958_v61, %v6315_v0  ;;  %v7019_v18 = vld [vmem:[%s9432_s7 + $0x2cc] sm:$0xf0]  ;;  %v6282_v26 = vor.u32 %v6952_v40, %v6281_v23  ;;  %v6265_v20 = vld [vmem:[%s9432_s7 + $0x88] sm:$0xf]  ;;  %v6353_v0 = vld [vmem:[%s9432_s7 + $0x240] sm:$0xf] }
 0x340   : > { %v3411_v11 = vadd.f32 %v8714_v7, %v3263_v54  ;;  %v6203_v23 = vld [vmem:[%s9432_s7 + $0x18] sm:$0xf0]  ;;  %v6441_v40 = vld [vmem:[%s9432_s7 + $0x2e8] sm:$0xf] }
 0x342   : > { %v3574_v7 = vadd.f32 %v8734_v34, %v3411_v11  ;;  %v6467_v34 = vld [vmem:[%s9432_s7 + $0x330] sm:$0xf0]  ;;  %v6401_v11 = vld [vmem:[%s9432_s7 + $0x2a0] sm:$0xf] }
 0x343   : > { %v3138_v58 = vpop.f32.mrf.mxu0  ;;  %4222 = vmatpush.bf16.msra.mxu3 %v6198_v14  ;;  %v6950_v14 = vld [vmem:[%s9432_s7 + $0xac] sm:$0xf] }
 0x344   : > { %v7029_v58 = vld [vmem:[%s9432_s7 + $0x324] sm:$0xf] }
 0x345   : > { %v6470_v24 = vor.u32 %v7029_v58, %v6467_v34  ;;  %v6266_v58 = vor.u32 %v6948_v31, %v6265_v20  ;;  %v6561_v31 = vld [vmem:[%s9432_s7 + $0x3e0] sm:$0xf] }
 0x346   : > { %v3395_v38 = vpop.f32.mrf.mxu2 }
 0x347   : > { %4725 = vmatpush.bf16.msrb.mxu0 %v6470_v24  ;;  %v6251_v38 = vld [vmem:[%s9432_s7 + $0x78] sm:$0xf0] }
 0x34b   : > { %v3680_v15 = vpop.f32.mrf.mxu0  ;;  %4726 = vmatpush.bf16.msrb.mxu0 %v6454_v13 }
 0x34c   : > { %v3705_v12 = vadd.f32 %v3680_v15, %v3573_v1  ;;  %v6954_v15 = vld [vmem:[%s9432_s7 + $0xcc] sm:$0xf]  ;;  %v6418_v1 = vor.u32 %v7019_v18, %v6417_v22  ;;  %v6222_v22 = vor.u32 %v6934_v49, %v6219_v56  ;;  %v6379_v56 = vld [vmem:[%s9432_s7 + $0x278] sm:$0xf0] }
 0x34d   : > { %v6302_v54 = vor.u32 %v6954_v15, %v6299_v6  ;;  %v6337_v15 = vld [vmem:[%s9432_s7 + $0x220] sm:$0xf]  ;;  %v6201_v6 = vld [vmem:[%s9432_s7 + $0x8] sm:$0xf]  ;;  %v7006_v49 = vld [vmem:[%s9432_s7 + $0x26c] sm:$0xf] }
 0x34e   : > { %v3719_v8 = vadd.f32 %v7299_v28, %v3705_v12  ;;  %v3397_v4 = vpop.f32.mrf.mxu2  ;;  %v7015_v12 = vld [vmem:[%s9432_s7 + $0x2ac] sm:$0xf0] }
 0x34f   : > { %v6402_v35 = vor.u32 %v7015_v12, %v6401_v11  ;;  %v7022_v11 = vld [vmem:[%s9432_s7 + $0x2ec] sm:$0xf]  ;;  %v6443_v12 = vld [vmem:[%s9432_s7 + $0x2f8] sm:$0xf0] }
 0x350   : > { %v3729_v36 = vmax.f32 %v3719_v8, 0.0  ;;  %v3563_v8 = vpop.f32.mrf.mxu3 }
 0x351   : > { %v6425_v8 = vld [vmem:[%s9432_s7 + $0x2c8] sm:$0xf] }
 0x353   : > { %v3682_v25 = vpop.f32.mrf.mxu0 }
 0x354   : > { %v3706_v62 = vadd.f32 %v3682_v25, %v3574_v7  ;;  %v6286_v7 = vor.u32 %v6950_v14, %v6283_v29  ;;  %v6946_v25 = vld [vmem:[%s9432_s7 + $0x8c] sm:$0xf]  ;;  %v7024_v29 = vld [vmem:[%s9432_s7 + $0x2f4] sm:$0xf0] }
 0x355   : > { %v6270_v34 = vor.u32 %v6946_v25, %v6267_v63  ;;  %v6442_v63 = vor.u32 %v7024_v29, %v6441_v40  ;;  %v7035_v40 = vld [vmem:[%s9432_s7 + $0x34c] sm:$0xf0] }
 0x356   : > { %v3720_v43 = vadd.f32 %v7299_v28, %v3706_v62  ;;  %v3252_v28 = vpop.f32.mrf.mxu1  ;;  %v3400_v19 = vpop.f32.mrf.mxu2  ;;  %v6385_v62 = vld [vmem:[%s9432_s7 + $0x280] sm:$0xf] }
 0x358   : > { %v3730_v17 = vmax.f32 %v3720_v43, 0.0  ;;  %v3565_v4 = vpop.f32.mrf.mxu3 }
 0x359   : > { %v6513_v4 = vld [vmem:[%s9432_s7 + $0x380] sm:$0xf] }
 0x35a   : > { %v7191_v9 = vpack.c.bf16 %v3730_v17, %v3729_v36  ;;  %v6386_v36 = vor.u32 %v7011_v46, %v6385_v62  ;;  %v6249_v17 = vld [vmem:[%s9432_s7 + $0x68] sm:$0xf]  ;;  %v7020_v46 = vld [vmem:[%s9432_s7 + $0x2d4] sm:$0xf0] }
 0x35b   : > { %v3685_v48 = vpop.f32.mrf.mxu0  ;;  %v6250_v52 = vor.u32 %v6944_v21, %v6249_v17  ;;  %v6409_v21 = vld [vmem:[%s9432_s7 + $0x2a8] sm:$0xf] }
 0x35c   : > { %7192 = vst [vmem:[#allocation4] sm:$0xff] %v7191_v9   ;;  %v6942_v9 = vld [vmem:[%s9432_s7 + $0x6c] sm:$0xf]  ;;  %v6369_v48 = vld [vmem:[%s9432_s7 + $0x260] sm:$0xf] }
 0x35d   : > { %v6254_v57 = vor.u32 %v6942_v9, %v6251_v38  ;;  %v7016_v38 = vld [vmem:[%s9432_s7 + $0x2b4] sm:$0xf0] }
 0x35e   : > { %v3402_v44 = vpop.f32.mrf.mxu2 }
 0x35f   : > { %v7012_v44 = vld [vmem:[%s9432_s7 + $0x294] sm:$0xf0] }
 0x360   : > { %v3568_v25 = vpop.f32.mrf.mxu3 }
 0x361   : > { %v6329_v25 = vld [vmem:[%s9432_s7 + $0x208] sm:$0xf] }
 0x363   : > { %v3687_v51 = vpop.f32.mrf.mxu0  ;;  %v3792_v47 = vld [vmem:[#allocation4] sm:$0x2]  ;;  %v4254_v30 = vld [vmem:[#allocation4 + $0x4] sm:$0x4]  ;;  %v4508_v3 = vld [vmem:[#allocation4 + $0x4] sm:$0x8] }
 0x364   : > { %v3826_v50 = vunpack.c.l.b16 %v3792_v47  ;;  %v4288_v59 = vunpack.c.l.b16 %v4254_v30  ;;  %v4542_v24 = vunpack.c.l.b16 %v4508_v3  ;;  %v6940_v51 = vld [vmem:[%s9432_s7 + $0x54] sm:$0xf0]  ;;  %v3254_v47 = vpop.f32.mrf.mxu1  ;;  %v6370_v30 = vor.u32 %v7007_v27, %v6369_v48  ;;  %v7014_v48 = vld [vmem:[%s9432_s7 + $0x2ac] sm:$0xf]  ;;  %v6411_v27 = vld [vmem:[%s9432_s7 + $0x2b8] sm:$0xf0] }
 0x365   : > { %v8978_v61 = vld [vmem:[#allocation4] sm:$0x1]  ;;  %v6446_v3 = vor.u32 %v7022_v11, %v6443_v12  ;;  %v6345_v11 = vld [vmem:[%s9432_s7 + $0x228] sm:$0xf] }
 0x366   : > { %v3827_v33 = vpack.c.b16 %v3826_v50, %v3826_v50  ;;  %v4289_v41 = vpack.c.b16 %v4288_v59, %v4288_v59  ;;  %v4543_v13 = vpack.c.b16 %v4542_v24, %v4542_v24  ;;  %v6235_v50 = vld [vmem:[%s9432_s7 + $0x58] sm:$0xf0]  ;;  %v7003_v59 = vld [vmem:[%s9432_s7 + $0x24c] sm:$0xf0]  ;;  %v3405_v28 = vpop.f32.mrf.mxu2 }
 0x367   : > { %v6238_v42 = vor.u32 %v6938_v53, %v6235_v50  ;;  %v7051_v24 = vld [vmem:[%s9432_s7 + $0x3cc] sm:$0xf0]  ;;  %v6393_v53 = vld [vmem:[%s9432_s7 + $0x288] sm:$0xf]  ;;  %v7000_v28 = vld [vmem:[%s9432_s7 + $0x234] sm:$0xf0] }
 0x368   : > { %v8895_v5 = vrot.slane %v3827_v33, 1  ;;  %v8900_v39 = vrot.slane %v4289_v41, 2  ;;  %v8989_v10 = vrot.slane %v4543_v13, 3  ;;  %v6234_v33 = vor.u32 %v6940_v51, %v6233_v45  ;;  %v6217_v41 = vld [vmem:[%s9432_s7 + $0x28] sm:$0xf] }
 0x369   : > { %v6529_v13 = vld [vmem:[%s9432_s7 + $0x3a0] sm:$0xf]  ;;  %v7047_v45 = vld [vmem:[%s9432_s7 + $0x3ac] sm:$0xf0] }
 0x36a   : > { %3998 = vmatmul.bf16.vlgmr.msrb.gmra.mxu1 %v8895_v5  ;;  %4011 = vmatmul.bf16.vlgmr.msrb.gmra.mxu2 %v8895_v5  ;;  %v6530_v50 = vor.u32 %v7047_v45, %v6529_v13  ;;  %v7050_v13 = vld [vmem:[%s9432_s7 + $0x3cc] sm:$0xf]  ;;  %v6555_v45 = vld [vmem:[%s9432_s7 + $0x3d8] sm:$0xf0] }
 0x36b   : > { %4024 = vmatmul.bf16.vlgmr.msrb.gmra.mxu3 %v8895_v5  ;;  %4228 = vmatpush.bf16.msrb.mxu1 %v6314_v2  ;;  %v3690_v60 = vpop.f32.mrf.mxu0  ;;  %v6354_v2 = vor.u32 %v7003_v59, %v6353_v0  ;;  %v6395_v0 = vld [vmem:[%s9432_s7 + $0x298] sm:$0xf0]  ;;  %v3570_v59 = vpop.f32.mrf.mxu3 }
 0x36c   : > { %4241 = vmatpush.bf16.msrb.mxu2 %v6318_v37  ;;  %4452 = vmatpush.bf16.msrb.mxu3 %v6434_v16  ;;  %v6936_v37 = vld [vmem:[%s9432_s7 + $0x34] sm:$0xf0]  ;;  %v3257_v14 = vpop.f32.mrf.mxu1  ;;  %v7042_v59 = vld [vmem:[%s9432_s7 + $0x38c] sm:$0xf] }
 0x36d   : > { %4473 = vmatmul.bf16.vlgmr.msra.gmra.mxu0 %v8900_v39  ;;  %v6218_v16 = vor.u32 %v6936_v37, %v6217_v41  ;;  %v6932_v60 = vld [vmem:[%s9432_s7 + $0x14] sm:$0xf0] }
 0x36e   : > { %v3407_v47 = vpop.f32.mrf.mxu2  ;;  %v7008_v37 = vld [vmem:[%s9432_s7 + $0x274] sm:$0xf0] }
 0x36f   : > { %4229 = vmatpush.bf16.msrb.mxu1 %v6298_v55  ;;  %v6930_v55 = vld [vmem:[%s9432_s7 + $0xc] sm:$0xf]  ;;  %v6558_v47 = vor.u32 %v7050_v13, %v6555_v45  ;;  %v9321_v13 = vld [vmem:[%s9433_s8] sm:$0xf] }
 0x370   : > { %4242 = vmatpush.bf16.msrb.mxu2 %v6302_v54  ;;  %4453 = vmatpush.bf16.msrb.mxu3 %v6418_v1  ;;  %v6321_v54 = vld [vmem:[%s9432_s7 + $0x200] sm:$0xf]  ;;  %v6995_v1 = vld [vmem:[%s9432_s7 + $0x20c] sm:$0xf0]  ;;  %v6206_v20 = vor.u32 %v6930_v55, %v6203_v23  ;;  %v7004_v55 = vld [vmem:[%s9432_s7 + $0x254] sm:$0xf0] }
 0x371   : > { %v7002_v23 = vld [vmem:[%s9432_s7 + $0x24c] sm:$0xf] }
 0x373   : > { %4230 = vmatpush.bf16.msrb.mxu1 %v6282_v26  ;;  %v3692_v43 = vpop.f32.mrf.mxu0  ;;  %v6202_v26 = vor.u32 %v6932_v60, %v6201_v6 }
 0x374   : > { %4243 = vmatpush.bf16.msrb.mxu2 %v6286_v7  ;;  %4454 = vmatpush.bf16.msrb.mxu3 %v6402_v35  ;;  %v7055_v7 = vld [vmem:[%s9432_s7 + $0x3ec] sm:$0xf0]  ;;  %v6322_v35 = vor.u32 %v6995_v1, %v6321_v54  ;;  %v7018_v43 = vld [vmem:[%s9432_s7 + $0x2cc] sm:$0xf]  ;;  %v3259_v51 = vpop.f32.mrf.mxu1  ;;  %v6363_v54 = vld [vmem:[%s9432_s7 + $0x258] sm:$0xf0] }
 0x375   : > { %v6562_v62 = vor.u32 %v7055_v7, %v6561_v31  ;;  %v6481_v1 = vld [vmem:[%s9432_s7 + $0x340] sm:$0xf]  ;;  %v6366_v29 = vor.u32 %v7002_v23, %v6363_v54  ;;  %v7031_v31 = vld [vmem:[%s9432_s7 + $0x32c] sm:$0xf0]  ;;  %v6346_v7 = vor.u32 %v7000_v28, %v6345_v11  ;;  %v7030_v23 = vld [vmem:[%s9432_s7 + $0x32c] sm:$0xf] }
 0x376   : > { %v6482_v12 = vor.u32 %v7035_v40, %v6481_v1  ;;  %v6475_v54 = vld [vmem:[%s9432_s7 + $0x338] sm:$0xf0]  ;;  %v7026_v11 = vld [vmem:[%s9432_s7 + $0x30c] sm:$0xf] }
 0x377   : > { %4231 = vmatpush.bf16.msrb.mxu1 %v6266_v58  ;;  %v6427_v58 = vld [vmem:[%s9432_s7 + $0x2d8] sm:$0xf0]  ;;  %v6478_v40 = vor.u32 %v7030_v23, %v6475_v54  ;;  %v7085_v23 = vld [vmem:[%s9434_s9 + $0xe0] sm:$0xff]  ;;  %v7075_v54 = vld [vmem:[%s9434_s9 + $0x90] sm:$0xff] }
 0x378   : > { %4244 = vmatpush.bf16.msrb.mxu2 %v6270_v34  ;;  %4455 = vmatpush.bf16.msrb.mxu3 %v6386_v36  ;;  %v6545_v34 = vld [vmem:[%s9432_s7 + $0x3c0] sm:$0xf]  ;;  %v6426_v36 = vor.u32 %v7020_v46, %v6425_v8  ;;  %v6430_v17 = vor.u32 %v7018_v43, %v6427_v58  ;;  %v6994_v8 = vld [vmem:[%s9432_s7 + $0x20c] sm:$0xf]  ;;  %v7027_v43 = vld [vmem:[%s9432_s7 + $0x30c] sm:$0xf0] }
 0x379   : > { %v6546_v9 = vor.u32 %v7051_v24, %v6545_v34  ;;  %v6449_v46 = vld [vmem:[%s9432_s7 + $0x300] sm:$0xf]  ;;  %v6569_v58 = vld [vmem:[%s9432_s7 + $0x3e8] sm:$0xf]  ;;  %v7056_v34 = vld [vmem:[%s9432_s7 + $0x3f4] sm:$0xf0] }
 0x37a   : > { %4037 = vmatmul.bf16.vlgmr.msra.gmra.mxu1 %v8895_v5  ;;  %4210 = vmatmul.bf16.vlgmr.msra.gmra.mxu2 %v8978_v61  ;;  %v6999_v5 = vld [vmem:[%s9432_s7 + $0x22c] sm:$0xf0]  ;;  %v7054_v24 = vld [vmem:[%s9432_s7 + $0x3ec] sm:$0xf] }
 0x37b   : > { %4223 = vmatmul.bf16.vlgmr.msra.gmra.mxu3 %v8978_v61  ;;  %4232 = vmatpush.bf16.msrb.mxu1 %v6250_v52  ;;  %v3695_v32 = vpop.f32.mrf.mxu0  ;;  %v6338_v18 = vor.u32 %v6999_v5, %v6337_v15  ;;  %v6497_v5 = vld [vmem:[%s9432_s7 + $0x360] sm:$0xf] }
 0x37c   : > { %4245 = vmatpush.bf16.msrb.mxu2 %v6254_v57  ;;  %4456 = vmatpush.bf16.msrb.mxu3 %v6370_v30  ;;  %v6410_v57 = vor.u32 %v7016_v38, %v6409_v21  ;;  %v6414_v30 = vor.u32 %v7014_v48, %v6411_v27  ;;  %v7043_v32 = vld [vmem:[%s9432_s7 + $0x38c] sm:$0xf0]  ;;  %v6570_v38 = vor.u32 %v7056_v34, %v6569_v58  ;;  %v6553_v27 = vld [vmem:[%s9432_s7 + $0x3c8] sm:$0xf]  ;;  %v7064_v58 = vld [vmem:[%s9434_s9 + $0x38] sm:$0xff] }
 0x37d   : > { %4727 = vmatmul.bf16.vlgmr.msrb.gmra.mxu0 %v8989_v10 }
 0x37f   : > { %4233 = vmatpush.bf16.msrb.mxu1 %v6234_v33  ;;  %v6394_v33 = vor.u32 %v7012_v44, %v6393_v53  ;;  %v7046_v53 = vld [vmem:[%s9432_s7 + $0x3ac] sm:$0xf] }
 0x380   : > { %4246 = vmatpush.bf16.msrb.mxu2 %v6238_v42  ;;  %4457 = vmatpush.bf16.msrb.mxu3 %v6354_v2  ;;  %v6377_v42 = vld [vmem:[%s9432_s7 + $0x268] sm:$0xf]  ;;  %v6514_v2 = vor.u32 %v7043_v32, %v6513_v4  ;;  %v6523_v4 = vld [vmem:[%s9432_s7 + $0x398] sm:$0xf0] }
 0x381   : > { %v6378_v6 = vor.u32 %v7008_v37, %v6377_v42  ;;  %v7040_v42 = vld [vmem:[%s9432_s7 + $0x374] sm:$0xf0]  ;;  %v6507_v37 = vld [vmem:[%s9432_s7 + $0x378] sm:$0xf0] }
 0x383   : > { %4234 = vmatpush.bf16.msrb.mxu1 %v6218_v16  ;;  %v3697_v19 = vpop.f32.mrf.mxu0  ;;  %v7039_v16 = vld [vmem:[%s9432_s7 + $0x36c] sm:$0xf0] }
 0x384   : > { %4247 = vmatpush.bf16.msrb.mxu2 %v6222_v22  ;;  %4458 = vmatpush.bf16.msrb.mxu3 %v6338_v18  ;;  %v6382_v22 = vor.u32 %v7006_v49, %v6379_v56  ;;  %v6361_v18 = vld [vmem:[%s9432_s7 + $0x248] sm:$0xf]  ;;  %v6498_v60 = vor.u32 %v7039_v16, %v6497_v5  ;;  %v6998_v19 = vld [vmem:[%s9432_s7 + $0x22c] sm:$0xf]  ;;  %v7036_v5 = vld [vmem:[%s9432_s7 + $0x354] sm:$0xf0] }
 0x385   : > { %v6362_v14 = vor.u32 %v7004_v55, %v6361_v18  ;;  %v7034_v16 = vld [vmem:[%s9432_s7 + $0x34c] sm:$0xf]  ;;  %v7032_v55 = vld [vmem:[%s9432_s7 + $0x334] sm:$0xf0] }
 0x387   : > { %4235 = vmatpush.bf16.msrb.mxu1 %v6202_v26  ;;  %v6347_v26 = vld [vmem:[%s9432_s7 + $0x238] sm:$0xf0] }
 0x388   : > { %4248 = vmatpush.bf16.msrb.mxu2 %v6206_v20  ;;  %4459 = vmatpush.bf16.msrb.mxu3 %v6322_v35  ;;  %v6465_v20 = vld [vmem:[%s9432_s7 + $0x320] sm:$0xf]  ;;  %v6350_v35 = vor.u32 %v6998_v19, %v6347_v26  ;;  %v7072_v26 = vld [vmem:[%s9434_s9 + $0x78] sm:$0xff] }
 0x389   : > { %5057 = vmatpush.bf16.msra.mxu0 %v7072_v26  ;;  %v4764_v26 = vperm.slane %v9321_v13, 0 }
 0x38a   : > { %4236 = vmatmul.bf16.vlgmr.msrb.gmra.mxu1 %v8978_v61 }
 0x38b   : > { %4478 = vmatpush.bf16.msra.mxu1 %v6442_v63  ;;  %4249 = vmatmul.bf16.vlgmr.msrb.gmra.mxu2 %v8978_v61  ;;  %v3700_v52 = vpop.f32.mrf.mxu0  ;;  %v7010_v61 = vld [vmem:[%s9432_s7 + $0x28c] sm:$0xf]  ;;  %v6996_v63 = vld [vmem:[%s9432_s7 + $0x214] sm:$0xf0] }
 0x38c   : > { %4491 = vmatpush.bf16.msra.mxu2 %v6446_v3  ;;  %4706 = vmatpush.bf16.msra.mxu3 %v6562_v62  ;;  %v6398_v41 = vor.u32 %v7010_v61, %v6395_v0  ;;  %v6466_v3 = vor.u32 %v7031_v31, %v6465_v20  ;;  %v6331_v62 = vld [vmem:[%s9432_s7 + $0x218] sm:$0xf0]  ;;  %v7052_v52 = vld [vmem:[%s9432_s7 + $0x3d4] sm:$0xf0]  ;;  %v6521_v0 = vld [vmem:[%s9432_s7 + $0x388] sm:$0xf] }
 0x38d   : > { %4460 = vmatmul.bf16.vlgmr.msrb.gmra.mxu3 %v8900_v39  ;;  %v6334_v21 = vor.u32 %v6994_v8, %v6331_v62  ;;  %v6554_v51 = vor.u32 %v7052_v52, %v6553_v27  ;;  %v7071_v20 = vld [vmem:[%s9434_s9 + $0x70] sm:$0xff]  ;;  %v7070_v31 = vld [vmem:[%s9434_s9 + $0x68] sm:$0xff] }
 0x38e   : > { %5058 = vmatpush.bf16.msra.mxu0 %v7071_v20 }
 0x38f   : > { %4479 = vmatpush.bf16.msra.mxu1 %v6426_v36  ;;  %v6571_v36 = vld [vmem:[%s9432_s7 + $0x3f8] sm:$0xf0] }
 0x390   : > { %4492 = vmatpush.bf16.msra.mxu2 %v6430_v17  ;;  %4707 = vmatpush.bf16.msra.mxu3 %v6546_v9  ;;  %v6330_v17 = vor.u32 %v6996_v63, %v6329_v25  ;;  %v6450_v9 = vor.u32 %v7027_v43, %v6449_v46  ;;  %v6574_v48 = vor.u32 %v7054_v24, %v6571_v36  ;;  %v7066_v63 = vld [vmem:[%s9434_s9 + $0x48] sm:$0xff] }
 0x392   : > { %5059 = vmatpush.bf16.msra.mxu0 %v7070_v31  ;;  %v7082_v31 = vld [vmem:[%s9434_s9 + $0xc8] sm:$0xff] }
 0x393   : > { %4480 = vmatpush.bf16.msra.mxu1 %v6410_v57  ;;  %v3702_v15 = vpop.f32.mrf.mxu0  ;;  %v6537_v57 = vld [vmem:[%s9432_s7 + $0x3a8] sm:$0xf] }
 0x394   : > { %4493 = vmatpush.bf16.msra.mxu2 %v6414_v30  ;;  %4708 = vmatpush.bf16.msra.mxu3 %v6530_v50  ;;  %v7048_v30 = vld [vmem:[%s9432_s7 + $0x3b4] sm:$0xf0]  ;;  %v6539_v50 = vld [vmem:[%s9432_s7 + $0x3b8] sm:$0xf0]  ;;  %v6489_v15 = vld [vmem:[%s9432_s7 + $0x348] sm:$0xf] }
 0x395   : > { %v6538_v44 = vor.u32 %v7048_v30, %v6537_v57  ;;  %v6542_v61 = vor.u32 %v7046_v53, %v6539_v50  ;;  %v4765_v57 = vperm.slane %v9321_v13, 1 }
 0x397   : > { %4481 = vmatpush.bf16.msra.mxu1 %v6394_v33  ;;  %v6526_v33 = vor.u32 %v7042_v59, %v6523_v4  ;;  %v7059_v4 = vld [vmem:[%s9434_s9 + $0x10] sm:$0xff] }
 0x398   : > { %4494 = vmatpush.bf16.msra.mxu2 %v6398_v41  ;;  %4709 = vmatpush.bf16.msra.mxu3 %v6514_v2  ;;  %v6505_v41 = vld [vmem:[%s9432_s7 + $0x368] sm:$0xf]  ;;  %v7038_v2 = vld [vmem:[%s9432_s7 + $0x36c] sm:$0xf] }
 0x399   : > { %v6506_v49 = vor.u32 %v7040_v42, %v6505_v41  ;;  %v6510_v56 = vor.u32 %v7038_v2, %v6507_v37  ;;  %v7080_v42 = vld [vmem:[%s9434_s9 + $0xb8] sm:$0xff]  ;;  %v7058_v37 = vld [vmem:[%s9434_s9 + $0x8] sm:$0xff] }
 0x39b   : > { %4482 = vmatpush.bf16.msra.mxu1 %v6378_v6  ;;  %v6491_v6 = vld [vmem:[%s9432_s7 + $0x358] sm:$0xf0] }
 0x39c   : > { %4495 = vmatpush.bf16.msra.mxu2 %v6382_v22  ;;  %4710 = vmatpush.bf16.msra.mxu3 %v6498_v60  ;;  %v6490_v22 = vor.u32 %v7036_v5, %v6489_v15  ;;  %v6494_v18 = vor.u32 %v7034_v16, %v6491_v6  ;;  %v6473_v60 = vld [vmem:[%s9432_s7 + $0x328] sm:$0xf]  ;;  %v7088_v15 = vld [vmem:[%s9434_s9 + $0xf8] sm:$0xff]  ;;  %v7087_v16 = vld [vmem:[%s9434_s9 + $0xf0] sm:$0xff] }
 0x39d   : > { %v6474_v1 = vor.u32 %v7032_v55, %v6473_v60  ;;  %v7078_v5 = vld [vmem:[%s9434_s9 + $0xa8] sm:$0xff]  ;;  %v7076_v55 = vld [vmem:[%s9434_s9 + $0x98] sm:$0xff] }
 0x39e   : > { %v7086_v60 = vld [vmem:[%s9434_s9 + $0xe8] sm:$0xff] }
 0x39f   : > { %4483 = vmatpush.bf16.msra.mxu1 %v6362_v14  ;;  %v6457_v14 = vld [vmem:[%s9432_s7 + $0x308] sm:$0xf] }
 0x3a0   : > { %4496 = vmatpush.bf16.msra.mxu2 %v6366_v29  ;;  %4711 = vmatpush.bf16.msra.mxu3 %v6482_v12  ;;  %v7028_v29 = vld [vmem:[%s9432_s7 + $0x314] sm:$0xf0]  ;;  %v6459_v12 = vld [vmem:[%s9432_s7 + $0x318] sm:$0xf0] }
 0x3a1   : > { %v6458_v28 = vor.u32 %v7028_v29, %v6457_v14  ;;  %v6462_v19 = vor.u32 %v7026_v11, %v6459_v12  ;;  %v7074_v14 = vld [vmem:[%s9434_s9 + $0x88] sm:$0xff]  ;;  %v7083_v29 = vld [vmem:[%s9434_s9 + $0xd0] sm:$0xff]  ;;  %v7073_v12 = vld [vmem:[%s9434_s9 + $0x80] sm:$0xff] }
 0x3a3   : > { %4484 = vmatpush.bf16.msra.mxu1 %v6346_v7  ;;  %v7069_v7 = vld [vmem:[%s9434_s9 + $0x60] sm:$0xff] }
 0x3a4   : > { %4497 = vmatpush.bf16.msra.mxu2 %v6350_v35  ;;  %4712 = vmatpush.bf16.msra.mxu3 %v6466_v3  ;;  %v7067_v35 = vld [vmem:[%s9434_s9 + $0x50] sm:$0xff]  ;;  %v7065_v3 = vld [vmem:[%s9434_s9 + $0x40] sm:$0xff] }
 0x3a5   : > { %5060 = vmatpush.bf16.msra.mxu0 %v7069_v7 }
 0x3a7   : > { %4485 = vmatpush.bf16.msra.mxu1 %v6330_v17  ;;  %v7063_v17 = vld [vmem:[%s9434_s9 + $0x30] sm:$0xff] }
 0x3a8   : > { %4498 = vmatpush.bf16.msra.mxu2 %v6334_v21  ;;  %4713 = vmatpush.bf16.msra.mxu3 %v6450_v9  ;;  %v7062_v9 = vld [vmem:[%s9434_s9 + $0x28] sm:$0xff] }
 0x3aa   : > { %4486 = vmatmul.bf16.vlgmr.msra.gmra.mxu1 %v8900_v39 }
 0x3ab   : > { %4732 = vmatpush.bf16.msrb.mxu1 %v6570_v38  ;;  %4499 = vmatmul.bf16.vlgmr.msra.gmra.mxu2 %v8900_v39  ;;  %v7044_v39 = vld [vmem:[%s9432_s7 + $0x394] sm:$0xf0] }
 0x3ac   : > { %4745 = vmatpush.bf16.msrb.mxu2 %v6574_v48  ;;  %4714 = vmatmul.bf16.vlgmr.msra.gmra.mxu3 %v8989_v10  ;;  %v6522_v32 = vor.u32 %v7044_v39, %v6521_v0  ;;  %v7061_v48 = vld [vmem:[%s9434_s9 + $0x20] sm:$0xff]  ;;  %v7060_v0 = vld [vmem:[%s9434_s9 + $0x18] sm:$0xff] }
 0x3ad   : > { %5044 = vmatpush.bf16.msrb.mxu3 %v7064_v58 }
 0x3af   : > { %4733 = vmatpush.bf16.msrb.mxu1 %v6554_v51 }
 0x3b0   : > { %4746 = vmatpush.bf16.msrb.mxu2 %v6558_v47 }
 0x3b1   : > { %5045 = vmatpush.bf16.msrb.mxu3 %v7063_v17 }
 0x3b3   : > { %4734 = vmatpush.bf16.msrb.mxu1 %v6538_v44 }
 0x3b4   : > { %4747 = vmatpush.bf16.msrb.mxu2 %v6542_v61 }
 0x3b5   : > { %5046 = vmatpush.bf16.msrb.mxu3 %v7062_v9 }
 0x3b7   : > { %4735 = vmatpush.bf16.msrb.mxu1 %v6522_v32 }
 0x3b8   : > { %4748 = vmatpush.bf16.msrb.mxu2 %v6526_v33 }
 0x3b9   : > { %5047 = vmatpush.bf16.msrb.mxu3 %v7061_v48 }
 0x3bb   : > { %4736 = vmatpush.bf16.msrb.mxu1 %v6506_v49  ;;  %v7079_v49 = vld [vmem:[%s9434_s9 + $0xb0] sm:$0xff] }
 0x3bc   : > { %4749 = vmatpush.bf16.msrb.mxu2 %v6510_v56  ;;  %v7057_v56 = vld [vmem:[%s9434_s9] sm:$0xff] }
 0x3bd   : > { %5048 = vmatpush.bf16.msrb.mxu3 %v7060_v0 }
 0x3bf   : > { %4737 = vmatpush.bf16.msrb.mxu1 %v6490_v22 }
 0x3c0   : > { %4750 = vmatpush.bf16.msrb.mxu2 %v6494_v18  ;;  %v7077_v18 = vld [vmem:[%s9434_s9 + $0xa0] sm:$0xff] }
 0x3c1   : > { %5049 = vmatpush.bf16.msrb.mxu3 %v7059_v4 }
 0x3c3   : > { %4738 = vmatpush.bf16.msrb.mxu1 %v6474_v1  ;;  %v7084_v1 = vld [vmem:[%s9434_s9 + $0xd8] sm:$0xff] }
 0x3c4   : > { %4751 = vmatpush.bf16.msrb.mxu2 %v6478_v40 }
 0x3c5   : > { %5050 = vmatpush.bf16.msrb.mxu3 %v7058_v37 }
 0x3c7   : > { %4739 = vmatpush.bf16.msrb.mxu1 %v6458_v28 }
 0x3c8   : > { %4752 = vmatpush.bf16.msrb.mxu2 %v6462_v19 }
 0x3c9   : > { %5051 = vmatpush.bf16.msrb.mxu3 %v7057_v56 }
 0x3ca   : > { %4740 = vmatmul.bf16.vlgmr.msrb.gmra.mxu1 %v8989_v10 }
 0x3cb   : > { %4753 = vmatmul.bf16.vlgmr.msrb.gmra.mxu2 %v8989_v10  ;;  %v7068_v10 = vld [vmem:[%s9434_s9 + $0x58] sm:$0xff]  ;;  %5070 = vmatpush.bf16.msra.mxu1 %v7080_v42 }
 0x3cc   : > { %5061 = vmatpush.bf16.msra.mxu0 %v7068_v10  ;;  %5083 = vmatpush.bf16.msra.mxu2 %v7088_v15 }
 0x3cf   : > { %5071 = vmatpush.bf16.msra.mxu1 %v7079_v49 }
 0x3d0   : > { %5062 = vmatpush.bf16.msra.mxu0 %v7067_v35  ;;  %5084 = vmatpush.bf16.msra.mxu2 %v7087_v16 }
 0x3d3   : > { %5072 = vmatpush.bf16.msra.mxu1 %v7078_v5 }
 0x3d4   : > { %5063 = vmatpush.bf16.msra.mxu0 %v7066_v63  ;;  %5085 = vmatpush.bf16.msra.mxu2 %v7086_v60 }
 0x3d7   : > { %5073 = vmatpush.bf16.msra.mxu1 %v7077_v18 }
 0x3d8   : > { %5064 = vmatpush.bf16.msra.mxu0 %v7065_v3  ;;  %5086 = vmatpush.bf16.msra.mxu2 %v7085_v23 }
 0x3db   : > { %5074 = vmatpush.bf16.msra.mxu1 %v7076_v55 }
 0x3dc   : > { %5087 = vmatpush.bf16.msra.mxu2 %v7084_v1 }
 0x3df   : > { %5075 = vmatpush.bf16.msra.mxu1 %v7075_v54 }
 0x3e0   : > { %5088 = vmatpush.bf16.msra.mxu2 %v7083_v29 }
 0x3e3   : > { %5076 = vmatpush.bf16.msra.mxu1 %v7074_v14 }
 0x3e4   : > { %5089 = vmatpush.bf16.msra.mxu2 %v7082_v31 }
 0x3e7   : > { %v9294_v25 = vpop.f32.mrf.mxu1  ;;  %5077 = vmatpush.bf16.msra.mxu1 %v7073_v12 }
 0x3ea   : > { %v4474_v8 = vpop.f32.mrf.mxu0 }
 0x3ed   : > { %v4012_v62 = vpop.f32.mrf.mxu2 }
 0x3ee   : > { %v9302_v46 = vpop.f32.mrf.mxu3 }
 0x3ef   : > { %v4001_v43 = vpop.f32.mrf.mxu1 }
 0x3f2   : > { %v4476_v34 = vpop.f32.mrf.mxu0 }
 0x3f3   : > { %v4766_v34 = vperm.slane %v9321_v13, 2 }
 0x3f5   : > { %v4014_v24 = vpop.f32.mrf.mxu2 }
 0x3f6   : > { %v4027_v36 = vpop.f32.mrf.mxu3 }
 0x3f7   : > { %v9310_v21 = vpop.f32.mrf.mxu1 }
 0x3fa   : > { %v4728_v38 = vpop.f32.mrf.mxu0 }
 0x3fd   : > { %v4211_v27 = vpop.f32.mrf.mxu2 }
 0x3fe   : > { %v4224_v52 = vpop.f32.mrf.mxu3  ;;  %v4212_v11 = vadd.f32 %v4211_v27, %v9294_v25  ;;  %v7081_v25 = vld [vmem:[%s9434_s9 + $0xc0] sm:$0xff]  ;;  %v4767_v27 = vperm.slane %v9321_v13, 3 }
 0x3ff   : > { %v4225_v45 = vadd.f32 %v4224_v52, %v4012_v62  ;;  %v4040_v51 = vpop.f32.mrf.mxu1  ;;  %5090 = vmatpush.bf16.msra.mxu2 %v7081_v25  ;;  %v7300_v13 = vld [vmem:[%s9435_s10] ss:$0 sm:$0xff] }
 0x401   : > { %v4505_v47 = vadd.f32 %v4474_v8, %v4225_v45 }
 0x402   : > { %v4730_v30 = vpop.f32.mrf.mxu0 }
 0x403   : > { %v4759_v53 = vadd.f32 %v4728_v38, %v4505_v47 }
 0x405   : > { %v4773_v50 = vadd.f32 %v4765_v57, %v4759_v53  ;;  %v4213_v44 = vpop.f32.mrf.mxu2 }
 0x406   : > { %v4226_v61 = vpop.f32.mrf.mxu3 }
 0x407   : > { %v4777_v39 = vmax.f32 %v4773_v50, 0.0  ;;  %v4237_v59 = vpop.f32.mrf.mxu1 }
 0x408   : > { %v4238_v43 = vadd.f32 %v4237_v59, %v9302_v46 }
 0x409   : > { %v4781_v32 = vpack.c.bf16 %v4777_v39, %v4777_v39 }
 0x40b   : > { %5065 = vmatmul.bf16.vlgmr.msra.gmra.mxu0 %v4781_v32 }
 0x40e   : > { %v4250_v33 = vpop.f32.mrf.mxu2 }
 0x40f   : > { %v4239_v2 = vpop.f32.mrf.mxu1  ;;  %v4251_v9 = vadd.f32 %v4250_v33, %v9310_v21 }
 0x410   : > { %v4461_v41 = vpop.f32.mrf.mxu3 }
 0x411   : > { %v4504_v28 = vadd.f32 %v4461_v41, %v4212_v11 }
 0x416   : > { %v4252_v6 = vpop.f32.mrf.mxu2 }
 0x418   : > { %v4463_v22 = vpop.f32.mrf.mxu3 }
 0x427   : > { %v4487_v40 = vpop.f32.mrf.mxu1 }
 0x428   : > { %v4506_v58 = vadd.f32 %v4487_v40, %v4238_v43 }
 0x42e   : > { %v4500_v19 = vpop.f32.mrf.mxu2 }
 0x42f   : > { %v4715_v20 = vpop.f32.mrf.mxu3  ;;  %v4489_v10 = vpop.f32.mrf.mxu1  ;;  %v4507_v48 = vadd.f32 %v4500_v19, %v4251_v9 }
 0x430   : > { %v4758_v7 = vadd.f32 %v4715_v20, %v4504_v28 }
 0x432   : > { %v4772_v35 = vadd.f32 %v4764_v26, %v4758_v7 }
 0x434   : > { %v4776_v63 = vmax.f32 %v4772_v35, 0.0 }
 0x436   : > { %v4780_v3 = vpack.c.bf16 %v4776_v63, %v4776_v63  ;;  %v4502_v8 = vpop.f32.mrf.mxu2 }
 0x437   : > { %v4717_v62 = vpop.f32.mrf.mxu3 }
 0x438   : > { %5052 = vmatmul.bf16.vlgmr.msrb.gmra.mxu3 %v4780_v3 }
 0x447   : > { %v4741_v24 = vpop.f32.mrf.mxu1 }
 0x448   : > { %v4760_v36 = vadd.f32 %v4741_v24, %v4506_v58 }
 0x44a   : > { %v4774_v17 = vadd.f32 %v4766_v34, %v4760_v36 }
 0x44c   : > { %v4778_v38 = vmax.f32 %v4774_v17, 0.0 }
 0x44e   : > { %v4782_v52 = vpack.c.bf16 %v4778_v38, %v4778_v38  ;;  %v4754_v45 = vpop.f32.mrf.mxu2 }
 0x44f   : > { %v4761_v51 = vadd.f32 %v4754_v45, %v4507_v48  ;;  %v4743_v47 = vpop.f32.mrf.mxu1 }
 0x450   : > { %5078 = vmatmul.bf16.vlgmr.msra.gmra.mxu1 %v4782_v52 }
 0x451   : > { %v4775_v46 = vadd.f32 %v4767_v27, %v4761_v51 }
 0x453   : > { %v4779_v57 = vmax.f32 %v4775_v46, 0.0 }
 0x455   : > { %v4783_v30 = vpack.c.bf16 %v4779_v57, %v4779_v57 }
 0x456   : > { %v4756_v53 = vpop.f32.mrf.mxu2 }
 0x457   : > { %5091 = vmatmul.bf16.vlgmr.msra.gmra.mxu2 %v4783_v30 }
 0x488   : > { %v5066_v50 = vpop.f32.mrf.mxu0 }
 0x490   : > { %v5068_v44 = vpop.f32.mrf.mxu0 }
 0x4bb   : > { %v5053_v61 = vpop.f32.mrf.mxu3 }
 0x4bc   : > { %v5054_v39 = vadd.f32 %v7300_v13, %v5053_v61 }
 0x4be   : > { %v5067_v4 = vadd.f32 %v5066_v50, %v5054_v39 }
 0x4c3   : > { %v5055_v21 = vpop.f32.mrf.mxu3 }
 0x4cd   : > { %v5079_v0 = vpop.f32.mrf.mxu1 }
 0x4ce   : > { %v5080_v32 = vadd.f32 %v5079_v0, %v5067_v4 }
 0x4d5   : > { %v5081_v59 = vpop.f32.mrf.mxu1 }
 0x4da   : > { %v5092_v33 = vpop.f32.mrf.mxu2 }
 0x4db   : > { %v5093_v41 = vadd.f32 %v5092_v33, %v5080_v32 }
 0x4dd   : > { %5096 = vst [vmem:[%s382_s14] sm:$0x3] %v5093_v41 }
 0x4de   : > { %7328 = shalt.err (!%p7325_p3)
}
 0x4df   : > { %7258 = dma.vmem_to_hbm [thread:$0]  (%p7463_p5), %s5111_s30, 32, %s5113_s12, %s5098_s16  }
 0x4e2   : > { %v5094_v42 = vpop.f32.mrf.mxu2 }
 0x4e3 PF: > { %p7264_p4 = scmp.ge.s32.totalorder %s7363_s20, 2  ;;  %s5124_s15 = sand.u32 1, %s7351_s17  }
 0x4e4   : > { %s5125_s29 = scalar_lea.sflag [#allocation6], %s5124_s15 }
 0x4e5   : > { %p7261_p7 = pnand %p7264_p4, %p7467_p6 }
 0x4e7   : > { %p7262_p8 = pneg %p7261_p7 }
 0x4e9   : > { %7346 = dma.done.wait (%p7262_p8), %s5125_s29, 32  }
 0x4ea   : > { %7348 = vsyncadd (%p7262_p8), %s5125_s29, 4294967264  ;;  %s9442_s14 = sld [smem:[#allocation8_spill]]  ;;  %p21_p9 = scmp.ge.s32.totalorder %s7450_s23, 4  }
 0x4eb   : > { %s9443_s19 = sld [smem:[#allocation9_spill]]  ;;  %s9444_s17 = smov %s7355_s18 }
 0x4ec   : > { %s9446_s20 = smov %s7450_s23  ;;  %23 = sbr.rel (!%p21_p9) target bundleno = 3 (0x3), region = 99 }
 0x4f0   : > { %s9445_s18 = smov %s9442_s14 }
 0x4f1   :  { %5131 = vsyncpa [#allocation6], 1 }
 0x4f2   :  { %5133 = vsyncpa [#allocation6 + $0x1], 1 }

</bundles_post_ra>
